<compile_context>
chip_gen: v7x
topology: tpu7x:2x2x1
jax: 0.10.0
libtpu: 0.0.40
codegen_flags: <defaults>
</compile_context>

<pallas_src>
import jax
import jax.numpy as jnp
import numpy as np
from jax.experimental import pallas as pl
from jax.experimental.pallas import tpu as pltpu

LANE = 128
BF16_ROWS = 16  # bf16 sublane packing: keep merged row counts 16-aligned so
                # the (TOH, OWm, Ci) -> (TOH*OWm, Ci) merge is layout-preserving.


def _round_up(v, m):
    return ((v + m - 1) // m) * m


def _largest_divisor_leq(n, cap):
    for d in range(min(cap, n), 0, -1):
        if n % d == 0:
            return d
    return 1


# ------------------------------ fused conv layer -----------------------------


def conv_layer(x, w, *, stride, bias=None, bn_scale_shift=None,
               act_lrelu=False, emit_stats=False, out_channels_store=None,
               out_dtype=jnp.bfloat16, negative_slope=0.2, max_m=512):
    """4x4 conv (padding=1, stride 1 or 2) as one fused Pallas kernel.

    x : (N, H, W, Ci) bf16 NHWC.  If bn_scale_shift is given, x is the *raw*
        conv output of the previous BatchNorm layer and the kernel applies
        LeakyReLU(x*scale + shift) on the fly (fused BN-apply prologue).
    w : (Cout, Cin_real, 4, 4) f32 (PyTorch OIHW).
    Returns y (N, OH, OW, Cs) and, if emit_stats, per-tile partial channel
    (sum, sumsq) of the raw conv output with shape (N, nT, 2, Cp).
    """
    N, H, W, Ci = x.shape
    Cout, Cin_real, KH, KW = w.shape
    assert KH == 4 and KW == 4 and Cin_real <= Ci
    Cp = _round_up(Cout, LANE)
    Cs = Cp if out_channels_store is None else out_channels_store
    OH = (H + 2 - 4) // stride + 1
    OW = (W + 2 - 4) // stride + 1
    OWm = _round_up(OW, BF16_ROWS)

    has_bias = bias is not None
    has_pro = bn_scale_shift is not None
    assert not (emit_stats and (has_bias or act_lrelu))

    # Weights OIHW -> (kh, kw, Ci, Cp), zero padded on both channel dims, bf16.
    wk = jnp.transpose(w, (2, 3, 1, 0))
    wk = jnp.pad(wk, ((0, 0), (0, 0), (0, Ci - Cin_real), (0, Cp - Cout)))
    wk = wk.astype(jnp.bfloat16)
    if has_bias:
        bvec = jnp.pad(bias, (0, Cp - Cout)).reshape(1, Cp).astype(jnp.float32)

    # XLA-side input prep: spatial pad=1, even/odd phase split for stride 2 so
    # every kernel tap is a contiguous slice, plus extra zero columns so the
    # 16-aligned tap slabs stay in bounds.
    xp = jnp.pad(x, ((0, 0), (1, 1), (1, 1), (0, 0)))
    if stride == 2:
        if xp.shape[1] % 2:
            xp = jnp.pad(xp, ((0, 0), (0, 1), (0, 0), (0, 0)))
        if xp.shape[2] % 2:
            xp = jnp.pad(xp, ((0, 0), (0, 0), (0, 1), (0, 0)))
        Hh, Wh0, P = xp.shape[1] // 2, xp.shape[2] // 2, 4
        xph = xp.reshape(N, Hh, 2, Wh0, 2, Ci).transpose(0, 1, 2, 4, 3, 5)
        xph = xph.reshape(N, Hh, P, Wh0, Ci)
        taps = [((kh, kw), (kh // 2, (kh % 2) * 2 + (kw % 2), kw // 2))
                for kh in range(4) for kw in range(4)]
        dc_max = 1
    else:
        Hh, Wh0, P = xp.shape[1], xp.shape[2], 1
        xph = xp.reshape(N, Hh, P, Wh0, Ci)
        taps = [((kh, kw), (kh, 0, kw)) for kh in range(4) for kw in range(4)]
        dc_max = 3
    Wh = max(Wh0, dc_max + OWm)
    if Wh > Wh0:
        xph = jnp.pad(xph, ((0, 0), (0, 0), (0, 0), (0, Wh - Wh0), (0, 0)))

    # Row tiling: M = TOH*OWm rows feed each MXU matmul (VMEM-budget-driven,
    # not capped at 8 rows).
    TOH = _largest_divisor_leq(OH, max(1, max_m // OWm))
    M = TOH * OWm
    nT = OH // TOH
    grid = (N, nT)

    def kernel(*refs):
        i = 0
        x_ref = refs[i]; i += 1
        w_ref = refs[i]; i += 1
        if has_bias:
            b_ref = refs[i]; i += 1
        if has_pro:
            ss_ref = refs[i]; i += 1
        o_ref = refs[i]; i += 1
        if emit_stats:
            st_ref = refs[i]; i += 1
        acc_ref = refs[i]; i += 1
        if has_pro:
            xs_ref = refs[i]; i += 1

        t = pl.program_id(1)

        if has_pro:
            # Fused BatchNorm-apply + LeakyReLU on the per-n resident image,
            # once per batch element (t == 0).  The zero spatial padding was
            # applied to the *raw* values, so the border (and the alignment
            # columns) are masked back to exactly zero afterwards.
            @pl.when(t == 0)
            def _():
                scale = ss_ref[0:1, :].reshape(1, 1, Ci)
                shift = ss_ref[1:2, :].reshape(1, 1, Ci)
                hh = jax.lax.broadcasted_iota(jnp.int32, (Hh, Wh, 1), 0)
                ww = jax.lax.broadcasted_iota(jnp.int32, (Hh, Wh, 1), 1)
                for p in range(P):
                    if stride == 2:
                        r = 2 * hh + (p // 2)
                        c = 2 * ww + (p % 2)
                    else:
                        r, c = hh, ww
                    interior = (r >= 1) & (r <= H) & (c >= 1) & (c <= W)
                    z = x_ref[:, p, :, :].astype(jnp.float32) * scale + shift
                    z = jnp.where(z >= 0, z, negative_slope * z)
                    z = jnp.where(interior, z, 0.0)
                    xs_ref[:, p, :, :] = z.astype(xs_ref.dtype)

        src = xs_ref if has_pro else x_ref
        oh0 = pl.multiple_of(t * TOH, TOH)

        # Implicit GEMM: 16 static taps, each ONE (M, Ci) @ (Ci, Cp) matmul.
        for ti, ((kh, kw), (dr, p, dc)) in enumerate(taps):
            v = src[pl.ds(oh0 + dr, TOH), p, pl.ds(dc, OWm), :]   # (TOH, OWm, Ci)
            lhs = v.reshape(M, Ci)                                 # layout no-op
            part = jnp.dot(lhs, w_ref[kh, kw],
                           preferred_element_type=jnp.float32)
            if ti == 0:
                acc_ref[...] = part
            else:
                acc_ref[...] += part

        acc = acc_ref[...]                                         # (M, Cp) f32
        if has_bias:
            acc = acc + b_ref[...]
        if act_lrelu:
            acc = jnp.where(acc >= 0, acc, negative_slope * acc)
        y = acc.reshape(TOH, OWm, Cp)[:, :OW, :]                   # drop align cols
        o_ref[...] = y[:, :, :Cs].astype(o_ref.dtype)
        if emit_stats:
            # Per-tile channel sums of the raw conv output (pre-BN); combined
            # outside into the next layer's BatchNorm scale/shift.
            st_ref[0:1, :] = jnp.sum(y, axis=0).sum(axis=0, keepdims=True)
            st_ref[1:2, :] = jnp.sum(y * y, axis=0).sum(axis=0, keepdims=True)

    in_specs = [
        pl.BlockSpec((None, Hh, P, Wh, Ci), lambda n, t: (n, 0, 0, 0, 0)),
        pl.BlockSpec((4, 4, Ci, Cp), lambda n, t: (0, 0, 0, 0)),
    ]
    args = [xph, wk]
    if has_bias:
        in_specs.append(pl.BlockSpec((1, Cp), lambda n, t: (0, 0)))
        args.append(bvec)
    if has_pro:
        in_specs.append(pl.BlockSpec((2, Ci), lambda n, t: (0, 0)))
        args.append(bn_scale_shift.astype(jnp.float32))

    out_shapes = [jax.ShapeDtypeStruct((N, OH, OW, Cs), out_dtype)]
    out_specs = [pl.BlockSpec((None, TOH, OW, Cs), lambda n, t: (n, t, 0, 0))]
    if emit_stats:
        out_shapes.append(jax.ShapeDtypeStruct((N, nT, 2, Cp), jnp.float32))
        out_specs.append(
            pl.BlockSpec((None, None, 2, Cp), lambda n, t: (n, t, 0, 0)))

    scratch = [pltpu.VMEM((M, Cp), jnp.float32)]          # f32 accumulator
    if has_pro:
        scratch.append(pltpu.VMEM((Hh, P, Wh, Ci), jnp.bfloat16))

    out_isz = jnp.dtype(out_dtype).itemsize
    blk_bytes = (2 * Hh * P * Wh * Ci * 2                 # double-buffered input
                 + 4 * 4 * Ci * Cp * 2                    # resident weights
                 + 2 * TOH * OW * Cs * out_isz
                 + M * Cp * 4)
    if has_pro:
        blk_bytes += Hh * P * Wh * Ci * 2
    if emit_stats:
        blk_bytes += 2 * 2 * Cp * 4
    vmem_limit = int(min(64 * 2**20, max(32 * 2**20, 4 * blk_bytes)))

    cost = pl.CostEstimate(
        flops=2 * N * OH * OWm * 16 * Ci * Cp,
        transcendentals=0,
        bytes_accessed=int(xph.size * 2 + wk.size * 2 + N * OH * OW * Cs * out_isz),
    )

    res = pl.pallas_call(
        kernel,
        out_shape=tuple(out_shapes),
        grid=grid,
        in_specs=in_specs,
        out_specs=tuple(out_specs),
        scratch_shapes=scratch,
        compiler_params=pltpu.CompilerParams(
            dimension_semantics=("parallel", "arbitrary"),
            vmem_limit_bytes=vmem_limit),
        cost_estimate=cost,
    )(*args)
    if emit_stats:
        return res[0], res[1]
    return res[0]


# --------------------- BatchNorm scale/shift from fused stats ----------------


def _bn_scale_shift(partials, gamma, beta, count, eps=1e-5):
    """Combine per-tile (sum, sumsq) partials into (scale, shift) of shape (2, Cp)."""
    cp = partials.shape[-1]
    sums = jnp.sum(partials.astype(jnp.float32), axis=(0, 1))       # (2, Cp)
    mean = sums[0] / count
    # E[x^2] - mean^2 in f32 (conv outputs are near zero-mean at these scales).
    # TODO(synk): switch to a two-pass/Welford form if cancellation ever matters.
    var = jnp.maximum(sums[1] / count - mean * mean, 0.0)
    g = jnp.pad(gamma.astype(jnp.float32), (0, cp - gamma.shape[0]))
    b = jnp.pad(beta.astype(jnp.float32), (0, cp - beta.shape[0]))
    scale = g * jax.lax.rsqrt(var + eps)
    shift = b - mean * scale
    return jnp.stack([scale, shift], axis=0)


# --------------------------------- forward -----------------------------------


def patch_discriminator_forward(x_nhwc, layers):
    """x_nhwc: (N, H, W, C).  Returns (N, OHf, OWf, 1) f32 PatchGAN logits."""
    x = x_nhwc.astype(jnp.bfloat16)
    pending_ss = None        # BatchNorm (scale, shift) to fuse into the next conv
    for li, layer in enumerate(layers):
        kind = layer["kind"]
        last = li == len(layers) - 1
        is_bn = kind == "conv_bn_lrelu"
        res = conv_layer(
            x, layer["w"],
            stride=layer["stride"],
            bias=layer.get("b"),
            bn_scale_shift=pending_ss,
            act_lrelu=(kind == "conv_lrelu"),
            emit_stats=is_bn,
            out_channels_store=(1 if last else None),
            out_dtype=(jnp.float32 if last else jnp.bfloat16),
        )
        if is_bn:
            y, partials = res
            n, oh, ow, _ = y.shape
            pending_ss = _bn_scale_shift(partials, layer["gamma"], layer["beta"],
                                         float(n * oh * ow))
            x = y
        else:
            x = res
            pending_ss = None
    return x


# --------------------------- parameter construction --------------------------


def make_params(key, input_nc, ndf, n_layers, stride):
    """Mirrors PatchDiscriminator.__init__ (norm_layer=BatchNorm2d => use_bias=False)."""
    layers = []
    keys = iter(jax.random.split(key, 64))

    def conv_w(cout, cin):
        return (0.02 * jax.random.normal(next(keys), (cout, cin, 4, 4))).astype(jnp.float32)

    layers.append(dict(
        kind="conv_lrelu", stride=2,
        w=conv_w(ndf, input_nc),
        b=(0.02 * jax.random.normal(next(keys), (ndf,))).astype(jnp.float32)))
    nf_mult = 1
    for n in range(1, n_layers):
        nf_mult_prev, nf_mult = nf_mult, min(2 ** n, 8)
        cout = ndf * nf_mult
        layers.append(dict(
            kind="conv_bn_lrelu", stride=stride,
            w=conv_w(cout, ndf * nf_mult_prev),
            gamma=(1.0 + 0.1 * jax.random.normal(next(keys), (cout,))).astype(jnp.float32),
            beta=(0.1 * jax.random.normal(next(keys), (cout,))).astype(jnp.float32)))
    nf_mult_prev, nf_mult = nf_mult, min(2 ** n_layers, 8)
    cout = ndf * nf_mult
    layers.append(dict(
        kind="conv_bn_lrelu", stride=1,
        w=conv_w(cout, ndf * nf_mult_prev),
        gamma=(1.0 + 0.1 * jax.random.normal(next(keys), (cout,))).astype(jnp.float32),
        beta=(0.1 * jax.random.normal(next(keys), (cout,))).astype(jnp.float32)))
    layers.append(dict(
        kind="conv", stride=1, w=conv_w(1, cout),
        b=(0.02 * jax.random.normal(next(keys), (1,))).astype(jnp.float32)))
    return layers


# ------------------------------ pure-JAX reference ---------------------------


def ref_forward(x, layers):
    def conv(x, w, b, s):
        y = jax.lax.conv_general_dilated(
            x, w, (s, s), ((1, 1), (1, 1)),
            dimension_numbers=("NCHW", "OIHW", "NCHW"))
        if b is not None:
            y = y + b[None, :, None, None]
        return y

    def bn(y, g, bt, eps=1e-5):
        mean = y.mean(axis=(0, 2, 3), keepdims=True)
        var = ((y - mean) ** 2).mean(axis=(0, 2, 3), keepdims=True)
        return (y - mean) / jnp.sqrt(var + eps) * g[None, :, None, None] + bt[None, :, None, None]

    lrelu = lambda v: jnp.where(v >= 0, v, 0.2 * v)

    for layer in layers:
        if layer["kind"] == "conv_lrelu":
            x = lrelu(conv(x, layer["w"], layer["b"], layer["stride"]))
        elif layer["kind"] == "conv_bn_lrelu":
            x = lrelu(bn(conv(x, layer["w"], None, layer["stride"]),
                         layer["gamma"], layer["beta"]))
        else:
            x = conv(x, layer["w"], layer["b"], layer["stride"])
    return x


# ----------------------------------- main -------------------------------------

if __name__ == "__main__":
    key = jax.random.PRNGKey(0)
    k_x, k_p = jax.random.split(key)

    # 32x32 input so the n_layers=3 PatchGAN produces a 2x2 patch map.
    N, input_nc, H, W = 2, 4, 32, 32
    ndf, n_layers, stride = 16, 3, 2

    x = jax.random.normal(k_x, (N, input_nc, H, W), dtype=jnp.float32)
    layers = make_params(k_p, input_nc, ndf, n_layers, stride)

    x_nhwc = jnp.transpose(x, (0, 2, 3, 1))               # one-time NCHW -> NHWC
    out_nhwc = jax.block_until_ready(patch_discriminator_forward(x_nhwc, layers))
    out = jnp.transpose(out_nhwc, (0, 3, 1, 2)).astype(jnp.float32)

    ref = jax.block_until_ready(ref_forward(x, layers))
    assert out.shape == ref.shape == (N, 1, 2, 2), (out.shape, ref.shape)
    # bf16 MXU inputs / bf16-stored activations (f32 accumulate + epilogues)
    # -> loosened tolerance vs f32 reference.
    np.testing.assert_allclose(np.asarray(out), np.asarray(ref), rtol=5e-2, atol=5e-2)

    print("KERNEL_OK")
</pallas_src>

<mosaic_0001>
module attributes {stable_mosaic.version = 11 : i64} {
  func.func @kernel(%arg0: i32, %arg1: i32, %arg2: memref<1x17x4x17x4xbf16, #tpu.memory_space<vmem>>, %arg3: memref<4x4x4x128xbf16, #tpu.memory_space<vmem>>, %arg4: memref<1x128xf32, #tpu.memory_space<vmem>>, %arg5: memref<1x16x16x128xbf16, #tpu.memory_space<vmem>>, %arg6: memref<256x128xf32, #tpu.memory_space<vmem>>) attributes {dimension_semantics = [#tpu.dimension_semantics<parallel>, #tpu.dimension_semantics<arbitrary>], iteration_bounds = array<i64: 2, 1>, scalar_prefetch = 0 : i64, scratch_operands = 1 : i64, tpu.core_type = #tpu.core_type<tc>, window_params = [{transform_indices = @transform_0, window_bounds = array<i64: 1, 17, 4, 17, 4>}, {pipeline_mode = #tpu.pipeline_mode<synchronous>, transform_indices = @transform_1, window_bounds = array<i64: 4, 4, 4, 128>}, {pipeline_mode = #tpu.pipeline_mode<synchronous>, transform_indices = @transform_2, window_bounds = array<i64: 1, 128>}, {transform_indices = @transform_3, window_bounds = array<i64: 1, 16, 16, 128>}]} {
    %c16_i32 = arith.constant 16 : i32
    %0 = arith.muli %arg1, %c16_i32 : i32
    %1 = tpu.assume_multiple %0, 16 : i32
    %c0_i32 = arith.constant 0 : i32
    %2 = arith.addi %1, %c0_i32 : i32
    %c0 = arith.constant 0 : index
    %3 = arith.index_cast %2 : i32 to index
    %c0_0 = arith.constant 0 : index
    %c0_1 = arith.constant 0 : index
    %c0_2 = arith.constant 0 : index
    %4 = vector.load %arg2[%c0, %3, %c0_0, %c0_1, %c0_2] : memref<1x17x4x17x4xbf16, #tpu.memory_space<vmem>>, vector<1x16x1x16x4xbf16>
    %5 = vector.shape_cast %4 : vector<1x16x1x16x4xbf16> to vector<16x16x4xbf16>
    %6 = vector.shape_cast %5 : vector<16x16x4xbf16> to vector<256x4xbf16>
    %c0_3 = arith.constant 0 : index
    %c0_4 = arith.constant 0 : index
    %c0_5 = arith.constant 0 : index
    %c0_6 = arith.constant 0 : index
    %7 = vector.load %arg3[%c0_3, %c0_4, %c0_5, %c0_6] : memref<4x4x4x128xbf16, #tpu.memory_space<vmem>>, vector<1x1x4x128xbf16>
    %8 = vector.shape_cast %7 : vector<1x1x4x128xbf16> to vector<4x128xbf16>
    %cst = arith.constant dense<0.000000e+00> : vector<256x128xf32>
    %9 = tpu.matmul %6, %8, %cst {dimension_numbers = #tpu.dot_dimension_numbers<[1], [0], [0], [1], [0, 0, 1, 1], [], []>} : vector<256x4xbf16>, vector<4x128xbf16>, vector<256x128xf32> -> vector<256x128xf32>
    %c0_7 = arith.constant 0 : index
    %c0_8 = arith.constant 0 : index
    %10 = vector.load %arg6[%c0_7, %c0_8] : memref<256x128xf32, #tpu.memory_space<vmem>>, vector<256x128xf32>
    tpu.vector_store %arg6[%c0_7, %c0_8], %9 {strides = array<i32>} : memref<256x128xf32, #tpu.memory_space<vmem>>, vector<256x128xf32>,
    %c0_i32_9 = arith.constant 0 : i32
    %11 = arith.addi %1, %c0_i32_9 : i32
    %c0_10 = arith.constant 0 : index
    %12 = arith.index_cast %11 : i32 to index
    %c1 = arith.constant 1 : index
    %c0_11 = arith.constant 0 : index
    %c0_12 = arith.constant 0 : index
    %13 = vector.load %arg2[%c0_10, %12, %c1, %c0_11, %c0_12] : memref<1x17x4x17x4xbf16, #tpu.memory_space<vmem>>, vector<1x16x1x16x4xbf16>
    %14 = vector.shape_cast %13 : vector<1x16x1x16x4xbf16> to vector<16x16x4xbf16>
    %15 = vector.shape_cast %14 : vector<16x16x4xbf16> to vector<256x4xbf16>
    %c0_13 = arith.constant 0 : index
    %c1_14 = arith.constant 1 : index
    %c0_15 = arith.constant 0 : index
    %c0_16 = arith.constant 0 : index
    %16 = vector.load %arg3[%c0_13, %c1_14, %c0_15, %c0_16] : memref<4x4x4x128xbf16, #tpu.memory_space<vmem>>, vector<1x1x4x128xbf16>
    %17 = vector.shape_cast %16 : vector<1x1x4x128xbf16> to vector<4x128xbf16>
    %cst_17 = arith.constant dense<0.000000e+00> : vector<256x128xf32>
    %18 = tpu.matmul %15, %17, %cst_17 {dimension_numbers = #tpu.dot_dimension_numbers<[1], [0], [0], [1], [0, 0, 1, 1], [], []>} : vector<256x4xbf16>, vector<4x128xbf16>, vector<256x128xf32> -> vector<256x128xf32>
    %c0_18 = arith.constant 0 : index
    %c0_19 = arith.constant 0 : index
    %19 = vector.load %arg6[%c0_18, %c0_19] : memref<256x128xf32, #tpu.memory_space<vmem>>, vector<256x128xf32>
    %20 = arith.addf %19, %18 : vector<256x128xf32>
    %c0_20 = arith.constant 0 : index
    %c0_21 = arith.constant 0 : index
    %21 = vector.load %arg6[%c0_20, %c0_21] : memref<256x128xf32, #tpu.memory_space<vmem>>, vector<256x128xf32>
    tpu.vector_store %arg6[%c0_20, %c0_21], %20 {strides = array<i32>} : memref<256x128xf32, #tpu.memory_space<vmem>>, vector<256x128xf32>,
    %c0_i32_22 = arith.constant 0 : i32
    %22 = arith.addi %1, %c0_i32_22 : i32
    %c0_23 = arith.constant 0 : index
    %23 = arith.index_cast %22 : i32 to index
    %c0_24 = arith.constant 0 : index
    %c1_25 = arith.constant 1 : index
    %c0_26 = arith.constant 0 : index
    %24 = vector.load %arg2[%c0_23, %23, %c0_24, %c1_25, %c0_26] : memref<1x17x4x17x4xbf16, #tpu.memory_space<vmem>>, vector<1x16x1x16x4xbf16>
    %25 = vector.shape_cast %24 : vector<1x16x1x16x4xbf16> to vector<16x16x4xbf16>
    %26 = vector.shape_cast %25 : vector<16x16x4xbf16> to vector<256x4xbf16>
    %c0_27 = arith.constant 0 : index
    %c2 = arith.constant 2 : index
    %c0_28 = arith.constant 0 : index
    %c0_29 = arith.constant 0 : index
    %27 = vector.load %arg3[%c0_27, %c2, %c0_28, %c0_29] : memref<4x4x4x128xbf16, #tpu.memory_space<vmem>>, vector<1x1x4x128xbf16>
    %28 = vector.shape_cast %27 : vector<1x1x4x128xbf16> to vector<4x128xbf16>
    %cst_30 = arith.constant dense<0.000000e+00> : vector<256x128xf32>
    %29 = tpu.matmul %26, %28, %cst_30 {dimension_numbers = #tpu.dot_dimension_numbers<[1], [0], [0], [1], [0, 0, 1, 1], [], []>} : vector<256x4xbf16>, vector<4x128xbf16>, vector<256x128xf32> -> vector<256x128xf32>
    %c0_31 = arith.constant 0 : index
    %c0_32 = arith.constant 0 : index
    %30 = vector.load %arg6[%c0_31, %c0_32] : memref<256x128xf32, #tpu.memory_space<vmem>>, vector<256x128xf32>
    %31 = arith.addf %30, %29 : vector<256x128xf32>
    %c0_33 = arith.constant 0 : index
    %c0_34 = arith.constant 0 : index
    %32 = vector.load %arg6[%c0_33, %c0_34] : memref<256x128xf32, #tpu.memory_space<vmem>>, vector<256x128xf32>
    tpu.vector_store %arg6[%c0_33, %c0_34], %31 {strides = array<i32>} : memref<256x128xf32, #tpu.memory_space<vmem>>, vector<256x128xf32>,
    %c0_i32_35 = arith.constant 0 : i32
    %33 = arith.addi %1, %c0_i32_35 : i32
    %c0_36 = arith.constant 0 : index
    %34 = arith.index_cast %33 : i32 to index
    %c1_37 = arith.constant 1 : index
    %c1_38 = arith.constant 1 : index
    %c0_39 = arith.constant 0 : index
    %35 = vector.load %arg2[%c0_36, %34, %c1_37, %c1_38, %c0_39] : memref<1x17x4x17x4xbf16, #tpu.memory_space<vmem>>, vector<1x16x1x16x4xbf16>
    %36 = vector.shape_cast %35 : vector<1x16x1x16x4xbf16> to vector<16x16x4xbf16>
    %37 = vector.shape_cast %36 : vector<16x16x4xbf16> to vector<256x4xbf16>
    %c0_40 = arith.constant 0 : index
    %c3 = arith.constant 3 : index
    %c0_41 = arith.constant 0 : index
    %c0_42 = arith.constant 0 : index
    %38 = vector.load %arg3[%c0_40, %c3, %c0_41, %c0_42] : memref<4x4x4x128xbf16, #tpu.memory_space<vmem>>, vector<1x1x4x128xbf16>
    %39 = vector.shape_cast %38 : vector<1x1x4x128xbf16> to vector<4x128xbf16>
    %cst_43 = arith.constant dense<0.000000e+00> : vector<256x128xf32>
    %40 = tpu.matmul %37, %39, %cst_43 {dimension_numbers = #tpu.dot_dimension_numbers<[1], [0], [0], [1], [0, 0, 1, 1], [], []>} : vector<256x4xbf16>, vector<4x128xbf16>, vector<256x128xf32> -> vector<256x128xf32>
    %c0_44 = arith.constant 0 : index
    %c0_45 = arith.constant 0 : index
    %41 = vector.load %arg6[%c0_44, %c0_45] : memref<256x128xf32, #tpu.memory_space<vmem>>, vector<256x128xf32>
    %42 = arith.addf %41, %40 : vector<256x128xf32>
    %c0_46 = arith.constant 0 : index
    %c0_47 = arith.constant 0 : index
    %43 = vector.load %arg6[%c0_46, %c0_47] : memref<256x128xf32, #tpu.memory_space<vmem>>, vector<256x128xf32>
    tpu.vector_store %arg6[%c0_46, %c0_47], %42 {strides = array<i32>} : memref<256x128xf32, #tpu.memory_space<vmem>>, vector<256x128xf32>,
    %c0_i32_48 = arith.constant 0 : i32
    %44 = arith.addi %1, %c0_i32_48 : i32
    %c0_49 = arith.constant 0 : index
    %45 = arith.index_cast %44 : i32 to index
    %c2_50 = arith.constant 2 : index
    %c0_51 = arith.constant 0 : index
    %c0_52 = arith.constant 0 : index
    %46 = vector.load %arg2[%c0_49, %45, %c2_50, %c0_51, %c0_52] : memref<1x17x4x17x4xbf16, #tpu.memory_space<vmem>>, vector<1x16x1x16x4xbf16>
    %47 = vector.shape_cast %46 : vector<1x16x1x16x4xbf16> to vector<16x16x4xbf16>
    %48 = vector.shape_cast %47 : vector<16x16x4xbf16> to vector<256x4xbf16>
    %c1_53 = arith.constant 1 : index
    %c0_54 = arith.constant 0 : index
    %c0_55 = arith.constant 0 : index
    %c0_56 = arith.constant 0 : index
    %49 = vector.load %arg3[%c1_53, %c0_54, %c0_55, %c0_56] : memref<4x4x4x128xbf16, #tpu.memory_space<vmem>>, vector<1x1x4x128xbf16>
    %50 = vector.shape_cast %49 : vector<1x1x4x128xbf16> to vector<4x128xbf16>
    %cst_57 = arith.constant dense<0.000000e+00> : vector<256x128xf32>
    %51 = tpu.matmul %48, %50, %cst_57 {dimension_numbers = #tpu.dot_dimension_numbers<[1], [0], [0], [1], [0, 0, 1, 1], [], []>} : vector<256x4xbf16>, vector<4x128xbf16>, vector<256x128xf32> -> vector<256x128xf32>
    %c0_58 = arith.constant 0 : index
    %c0_59 = arith.constant 0 : index
    %52 = vector.load %arg6[%c0_58, %c0_59] : memref<256x128xf32, #tpu.memory_space<vmem>>, vector<256x128xf32>
    %53 = arith.addf %52, %51 : vector<256x128xf32>
    %c0_60 = arith.constant 0 : index
    %c0_61 = arith.constant 0 : index
    %54 = vector.load %arg6[%c0_60, %c0_61] : memref<256x128xf32, #tpu.memory_space<vmem>>, vector<256x128xf32>
    tpu.vector_store %arg6[%c0_60, %c0_61], %53 {strides = array<i32>} : memref<256x128xf32, #tpu.memory_space<vmem>>, vector<256x128xf32>,
    %c0_i32_62 = arith.constant 0 : i32
    %55 = arith.addi %1, %c0_i32_62 : i32
    %c0_63 = arith.constant 0 : index
    %56 = arith.index_cast %55 : i32 to index
    %c3_64 = arith.constant 3 : index
    %c0_65 = arith.constant 0 : index
    %c0_66 = arith.constant 0 : index
    %57 = vector.load %arg2[%c0_63, %56, %c3_64, %c0_65, %c0_66] : memref<1x17x4x17x4xbf16, #tpu.memory_space<vmem>>, vector<1x16x1x16x4xbf16>
    %58 = vector.shape_cast %57 : vector<1x16x1x16x4xbf16> to vector<16x16x4xbf16>
    %59 = vector.shape_cast %58 : vector<16x16x4xbf16> to vector<256x4xbf16>
    %c1_67 = arith.constant 1 : index
    %c1_68 = arith.constant 1 : index
    %c0_69 = arith.constant 0 : index
    %c0_70 = arith.constant 0 : index
    %60 = vector.load %arg3[%c1_67, %c1_68, %c0_69, %c0_70] : memref<4x4x4x128xbf16, #tpu.memory_space<vmem>>, vector<1x1x4x128xbf16>
    %61 = vector.shape_cast %60 : vector<1x1x4x128xbf16> to vector<4x128xbf16>
    %cst_71 = arith.constant dense<0.000000e+00> : vector<256x128xf32>
    %62 = tpu.matmul %59, %61, %cst_71 {dimension_numbers = #tpu.dot_dimension_numbers<[1], [0], [0], [1], [0, 0, 1, 1], [], []>} : vector<256x4xbf16>, vector<4x128xbf16>, vector<256x128xf32> -> vector<256x128xf32>
    %c0_72 = arith.constant 0 : index
    %c0_73 = arith.constant 0 : index
    %63 = vector.load %arg6[%c0_72, %c0_73] : memref<256x128xf32, #tpu.memory_space<vmem>>, vector<256x128xf32>
    %64 = arith.addf %63, %62 : vector<256x128xf32>
    %c0_74 = arith.constant 0 : index
    %c0_75 = arith.constant 0 : index
    %65 = vector.load %arg6[%c0_74, %c0_75] : memref<256x128xf32, #tpu.memory_space<vmem>>, vector<256x128xf32>
    tpu.vector_store %arg6[%c0_74, %c0_75], %64 {strides = array<i32>} : memref<256x128xf32, #tpu.memory_space<vmem>>, vector<256x128xf32>,
    %c0_i32_76 = arith.constant 0 : i32
    %66 = arith.addi %1, %c0_i32_76 : i32
    %c0_77 = arith.constant 0 : index
    %67 = arith.index_cast %66 : i32 to index
    %c2_78 = arith.constant 2 : index
    %c1_79 = arith.constant 1 : index
    %c0_80 = arith.constant 0 : index
    %68 = vector.load %arg2[%c0_77, %67, %c2_78, %c1_79, %c0_80] : memref<1x17x4x17x4xbf16, #tpu.memory_space<vmem>>, vector<1x16x1x16x4xbf16>
    %69 = vector.shape_cast %68 : vector<1x16x1x16x4xbf16> to vector<16x16x4xbf16>
    %70 = vector.shape_cast %69 : vector<16x16x4xbf16> to vector<256x4xbf16>
    %c1_81 = arith.constant 1 : index
    %c2_82 = arith.constant 2 : index
    %c0_83 = arith.constant 0 : index
    %c0_84 = arith.constant 0 : index
    %71 = vector.load %arg3[%c1_81, %c2_82, %c0_83, %c0_84] : memref<4x4x4x128xbf16, #tpu.memory_space<vmem>>, vector<1x1x4x128xbf16>
    %72 = vector.shape_cast %71 : vector<1x1x4x128xbf16> to vector<4x128xbf16>
    %cst_85 = arith.constant dense<0.000000e+00> : vector<256x128xf32>
    %73 = tpu.matmul %70, %72, %cst_85 {dimension_numbers = #tpu.dot_dimension_numbers<[1], [0], [0], [1], [0, 0, 1, 1], [], []>} : vector<256x4xbf16>, vector<4x128xbf16>, vector<256x128xf32> -> vector<256x128xf32>
    %c0_86 = arith.constant 0 : index
    %c0_87 = arith.constant 0 : index
    %74 = vector.load %arg6[%c0_86, %c0_87] : memref<256x128xf32, #tpu.memory_space<vmem>>, vector<256x128xf32>
    %75 = arith.addf %74, %73 : vector<256x128xf32>
    %c0_88 = arith.constant 0 : index
    %c0_89 = arith.constant 0 : index
    %76 = vector.load %arg6[%c0_88, %c0_89] : memref<256x128xf32, #tpu.memory_space<vmem>>, vector<256x128xf32>
    tpu.vector_store %arg6[%c0_88, %c0_89], %75 {strides = array<i32>} : memref<256x128xf32, #tpu.memory_space<vmem>>, vector<256x128xf32>,
    %c0_i32_90 = arith.constant 0 : i32
    %77 = arith.addi %1, %c0_i32_90 : i32
    %c0_91 = arith.constant 0 : index
    %78 = arith.index_cast %77 : i32 to index
    %c3_92 = arith.constant 3 : index
    %c1_93 = arith.constant 1 : index
    %c0_94 = arith.constant 0 : index
    %79 = vector.load %arg2[%c0_91, %78, %c3_92, %c1_93, %c0_94] : memref<1x17x4x17x4xbf16, #tpu.memory_space<vmem>>, vector<1x16x1x16x4xbf16>
    %80 = vector.shape_cast %79 : vector<1x16x1x16x4xbf16> to vector<16x16x4xbf16>
    %81 = vector.shape_cast %80 : vector<16x16x4xbf16> to vector<256x4xbf16>
    %c1_95 = arith.constant 1 : index
    %c3_96 = arith.constant 3 : index
    %c0_97 = arith.constant 0 : index
    %c0_98 = arith.constant 0 : index
    %82 = vector.load %arg3[%c1_95, %c3_96, %c0_97, %c0_98] : memref<4x4x4x128xbf16, #tpu.memory_space<vmem>>, vector<1x1x4x128xbf16>
    %83 = vector.shape_cast %82 : vector<1x1x4x128xbf16> to vector<4x128xbf16>
    %cst_99 = arith.constant dense<0.000000e+00> : vector<256x128xf32>
    %84 = tpu.matmul %81, %83, %cst_99 {dimension_numbers = #tpu.dot_dimension_numbers<[1], [0], [0], [1], [0, 0, 1, 1], [], []>} : vector<256x4xbf16>, vector<4x128xbf16>, vector<256x128xf32> -> vector<256x128xf32>
    %c0_100 = arith.constant 0 : index
    %c0_101 = arith.constant 0 : index
    %85 = vector.load %arg6[%c0_100, %c0_101] : memref<256x128xf32, #tpu.memory_space<vmem>>, vector<256x128xf32>
    %86 = arith.addf %85, %84 : vector<256x128xf32>
    %c0_102 = arith.constant 0 : index
    %c0_103 = arith.constant 0 : index
    %87 = vector.load %arg6[%c0_102, %c0_103] : memref<256x128xf32, #tpu.memory_space<vmem>>, vector<256x128xf32>
    tpu.vector_store %arg6[%c0_102, %c0_103], %86 {strides = array<i32>} : memref<256x128xf32, #tpu.memory_space<vmem>>, vector<256x128xf32>,
    %c1_i32 = arith.constant 1 : i32
    %88 = arith.addi %1, %c1_i32 : i32
    %c0_104 = arith.constant 0 : index
    %89 = arith.index_cast %88 : i32 to index
    %c0_105 = arith.constant 0 : index
    %c0_106 = arith.constant 0 : index
    %c0_107 = arith.constant 0 : index
    %90 = vector.load %arg2[%c0_104, %89, %c0_105, %c0_106, %c0_107] : memref<1x17x4x17x4xbf16, #tpu.memory_space<vmem>>, vector<1x16x1x16x4xbf16>
    %91 = vector.shape_cast %90 : vector<1x16x1x16x4xbf16> to vector<16x16x4xbf16>
    %92 = vector.shape_cast %91 : vector<16x16x4xbf16> to vector<256x4xbf16>
    %c2_108 = arith.constant 2 : index
    %c0_109 = arith.constant 0 : index
    %c0_110 = arith.constant 0 : index
    %c0_111 = arith.constant 0 : index
    %93 = vector.load %arg3[%c2_108, %c0_109, %c0_110, %c0_111] : memref<4x4x4x128xbf16, #tpu.memory_space<vmem>>, vector<1x1x4x128xbf16>
    %94 = vector.shape_cast %93 : vector<1x1x4x128xbf16> to vector<4x128xbf16>
    %cst_112 = arith.constant dense<0.000000e+00> : vector<256x128xf32>
    %95 = tpu.matmul %92, %94, %cst_112 {dimension_numbers = #tpu.dot_dimension_numbers<[1], [0], [0], [1], [0, 0, 1, 1], [], []>} : vector<256x4xbf16>, vector<4x128xbf16>, vector<256x128xf32> -> vector<256x128xf32>
    %c0_113 = arith.constant 0 : index
    %c0_114 = arith.constant 0 : index
    %96 = vector.load %arg6[%c0_113, %c0_114] : memref<256x128xf32, #tpu.memory_space<vmem>>, vector<256x128xf32>
    %97 = arith.addf %96, %95 : vector<256x128xf32>
    %c0_115 = arith.constant 0 : index
    %c0_116 = arith.constant 0 : index
    %98 = vector.load %arg6[%c0_115, %c0_116] : memref<256x128xf32, #tpu.memory_space<vmem>>, vector<256x128xf32>
    tpu.vector_store %arg6[%c0_115, %c0_116], %97 {strides = array<i32>} : memref<256x128xf32, #tpu.memory_space<vmem>>, vector<256x128xf32>,
    %c1_i32_117 = arith.constant 1 : i32
    %99 = arith.addi %1, %c1_i32_117 : i32
    %c0_118 = arith.constant 0 : index
    %100 = arith.index_cast %99 : i32 to index
    %c1_119 = arith.constant 1 : index
    %c0_120 = arith.constant 0 : index
    %c0_121 = arith.constant 0 : index
    %101 = vector.load %arg2[%c0_118, %100, %c1_119, %c0_120, %c0_121] : memref<1x17x4x17x4xbf16, #tpu.memory_space<vmem>>, vector<1x16x1x16x4xbf16>
    %102 = vector.shape_cast %101 : vector<1x16x1x16x4xbf16> to vector<16x16x4xbf16>
    %103 = vector.shape_cast %102 : vector<16x16x4xbf16> to vector<256x4xbf16>
    %c2_122 = arith.constant 2 : index
    %c1_123 = arith.constant 1 : index
    %c0_124 = arith.constant 0 : index
    %c0_125 = arith.constant 0 : index
    %104 = vector.load %arg3[%c2_122, %c1_123, %c0_124, %c0_125] : memref<4x4x4x128xbf16, #tpu.memory_space<vmem>>, vector<1x1x4x128xbf16>
    %105 = vector.shape_cast %104 : vector<1x1x4x128xbf16> to vector<4x128xbf16>
    %cst_126 = arith.constant dense<0.000000e+00> : vector<256x128xf32>
    %106 = tpu.matmul %103, %105, %cst_126 {dimension_numbers = #tpu.dot_dimension_numbers<[1], [0], [0], [1], [0, 0, 1, 1], [], []>} : vector<256x4xbf16>, vector<4x128xbf16>, vector<256x128xf32> -> vector<256x128xf32>
    %c0_127 = arith.constant 0 : index
    %c0_128 = arith.constant 0 : index
    %107 = vector.load %arg6[%c0_127, %c0_128] : memref<256x128xf32, #tpu.memory_space<vmem>>, vector<256x128xf32>
    %108 = arith.addf %107, %106 : vector<256x128xf32>
    %c0_129 = arith.constant 0 : index
    %c0_130 = arith.constant 0 : index
    %109 = vector.load %arg6[%c0_129, %c0_130] : memref<256x128xf32, #tpu.memory_space<vmem>>, vector<256x128xf32>
    tpu.vector_store %arg6[%c0_129, %c0_130], %108 {strides = array<i32>} : memref<256x128xf32, #tpu.memory_space<vmem>>, vector<256x128xf32>,
    %c1_i32_131 = arith.constant 1 : i32
    %110 = arith.addi %1, %c1_i32_131 : i32
    %c0_132 = arith.constant 0 : index
    %111 = arith.index_cast %110 : i32 to index
    %c0_133 = arith.constant 0 : index
    %c1_134 = arith.constant 1 : index
    %c0_135 = arith.constant 0 : index
    %112 = vector.load %arg2[%c0_132, %111, %c0_133, %c1_134, %c0_135] : memref<1x17x4x17x4xbf16, #tpu.memory_space<vmem>>, vector<1x16x1x16x4xbf16>
    %113 = vector.shape_cast %112 : vector<1x16x1x16x4xbf16> to vector<16x16x4xbf16>
    %114 = vector.shape_cast %113 : vector<16x16x4xbf16> to vector<256x4xbf16>
    %c2_136 = arith.constant 2 : index
    %c2_137 = arith.constant 2 : index
    %c0_138 = arith.constant 0 : index
    %c0_139 = arith.constant 0 : index
    %115 = vector.load %arg3[%c2_136, %c2_137, %c0_138, %c0_139] : memref<4x4x4x128xbf16, #tpu.memory_space<vmem>>, vector<1x1x4x128xbf16>
    %116 = vector.shape_cast %115 : vector<1x1x4x128xbf16> to vector<4x128xbf16>
    %cst_140 = arith.constant dense<0.000000e+00> : vector<256x128xf32>
    %117 = tpu.matmul %114, %116, %cst_140 {dimension_numbers = #tpu.dot_dimension_numbers<[1], [0], [0], [1], [0, 0, 1, 1], [], []>} : vector<256x4xbf16>, vector<4x128xbf16>, vector<256x128xf32> -> vector<256x128xf32>
    %c0_141 = arith.constant 0 : index
    %c0_142 = arith.constant 0 : index
    %118 = vector.load %arg6[%c0_141, %c0_142] : memref<256x128xf32, #tpu.memory_space<vmem>>, vector<256x128xf32>
    %119 = arith.addf %118, %117 : vector<256x128xf32>
    %c0_143 = arith.constant 0 : index
    %c0_144 = arith.constant 0 : index
    %120 = vector.load %arg6[%c0_143, %c0_144] : memref<256x128xf32, #tpu.memory_space<vmem>>, vector<256x128xf32>
    tpu.vector_store %arg6[%c0_143, %c0_144], %119 {strides = array<i32>} : memref<256x128xf32, #tpu.memory_space<vmem>>, vector<256x128xf32>,
    %c1_i32_145 = arith.constant 1 : i32
    %121 = arith.addi %1, %c1_i32_145 : i32
    %c0_146 = arith.constant 0 : index
    %122 = arith.index_cast %121 : i32 to index
    %c1_147 = arith.constant 1 : index
    %c1_148 = arith.constant 1 : index
    %c0_149 = arith.constant 0 : index
    %123 = vector.load %arg2[%c0_146, %122, %c1_147, %c1_148, %c0_149] : memref<1x17x4x17x4xbf16, #tpu.memory_space<vmem>>, vector<1x16x1x16x4xbf16>
    %124 = vector.shape_cast %123 : vector<1x16x1x16x4xbf16> to vector<16x16x4xbf16>
    %125 = vector.shape_cast %124 : vector<16x16x4xbf16> to vector<256x4xbf16>
    %c2_150 = arith.constant 2 : index
    %c3_151 = arith.constant 3 : index
    %c0_152 = arith.constant 0 : index
    %c0_153 = arith.constant 0 : index
    %126 = vector.load %arg3[%c2_150, %c3_151, %c0_152, %c0_153] : memref<4x4x4x128xbf16, #tpu.memory_space<vmem>>, vector<1x1x4x128xbf16>
    %127 = vector.shape_cast %126 : vector<1x1x4x128xbf16> to vector<4x128xbf16>
    %cst_154 = arith.constant dense<0.000000e+00> : vector<256x128xf32>
    %128 = tpu.matmul %125, %127, %cst_154 {dimension_numbers = #tpu.dot_dimension_numbers<[1], [0], [0], [1], [0, 0, 1, 1], [], []>} : vector<256x4xbf16>, vector<4x128xbf16>, vector<256x128xf32> -> vector<256x128xf32>
    %c0_155 = arith.constant 0 : index
    %c0_156 = arith.constant 0 : index
    %129 = vector.load %arg6[%c0_155, %c0_156] : memref<256x128xf32, #tpu.memory_space<vmem>>, vector<256x128xf32>
    %130 = arith.addf %129, %128 : vector<256x128xf32>
    %c0_157 = arith.constant 0 : index
    %c0_158 = arith.constant 0 : index
    %131 = vector.load %arg6[%c0_157, %c0_158] : memref<256x128xf32, #tpu.memory_space<vmem>>, vector<256x128xf32>
    tpu.vector_store %arg6[%c0_157, %c0_158], %130 {strides = array<i32>} : memref<256x128xf32, #tpu.memory_space<vmem>>, vector<256x128xf32>,
    %c1_i32_159 = arith.constant 1 : i32
    %132 = arith.addi %1, %c1_i32_159 : i32
    %c0_160 = arith.constant 0 : index
    %133 = arith.index_cast %132 : i32 to index
    %c2_161 = arith.constant 2 : index
    %c0_162 = arith.constant 0 : index
    %c0_163 = arith.constant 0 : index
    %134 = vector.load %arg2[%c0_160, %133, %c2_161, %c0_162, %c0_163] : memref<1x17x4x17x4xbf16, #tpu.memory_space<vmem>>, vector<1x16x1x16x4xbf16>
    %135 = vector.shape_cast %134 : vector<1x16x1x16x4xbf16> to vector<16x16x4xbf16>
    %136 = vector.shape_cast %135 : vector<16x16x4xbf16> to vector<256x4xbf16>
    %c3_164 = arith.constant 3 : index
    %c0_165 = arith.constant 0 : index
    %c0_166 = arith.constant 0 : index
    %c0_167 = arith.constant 0 : index
    %137 = vector.load %arg3[%c3_164, %c0_165, %c0_166, %c0_167] : memref<4x4x4x128xbf16, #tpu.memory_space<vmem>>, vector<1x1x4x128xbf16>
    %138 = vector.shape_cast %137 : vector<1x1x4x128xbf16> to vector<4x128xbf16>
    %cst_168 = arith.constant dense<0.000000e+00> : vector<256x128xf32>
    %139 = tpu.matmul %136, %138, %cst_168 {dimension_numbers = #tpu.dot_dimension_numbers<[1], [0], [0], [1], [0, 0, 1, 1], [], []>} : vector<256x4xbf16>, vector<4x128xbf16>, vector<256x128xf32> -> vector<256x128xf32>
    %c0_169 = arith.constant 0 : index
    %c0_170 = arith.constant 0 : index
    %140 = vector.load %arg6[%c0_169, %c0_170] : memref<256x128xf32, #tpu.memory_space<vmem>>, vector<256x128xf32>
    %141 = arith.addf %140, %139 : vector<256x128xf32>
    %c0_171 = arith.constant 0 : index
    %c0_172 = arith.constant 0 : index
    %142 = vector.load %arg6[%c0_171, %c0_172] : memref<256x128xf32, #tpu.memory_space<vmem>>, vector<256x128xf32>
    tpu.vector_store %arg6[%c0_171, %c0_172], %141 {strides = array<i32>} : memref<256x128xf32, #tpu.memory_space<vmem>>, vector<256x128xf32>,
    %c1_i32_173 = arith.constant 1 : i32
    %143 = arith.addi %1, %c1_i32_173 : i32
    %c0_174 = arith.constant 0 : index
    %144 = arith.index_cast %143 : i32 to index
    %c3_175 = arith.constant 3 : index
    %c0_176 = arith.constant 0 : index
    %c0_177 = arith.constant 0 : index
    %145 = vector.load %arg2[%c0_174, %144, %c3_175, %c0_176, %c0_177] : memref<1x17x4x17x4xbf16, #tpu.memory_space<vmem>>, vector<1x16x1x16x4xbf16>
    %146 = vector.shape_cast %145 : vector<1x16x1x16x4xbf16> to vector<16x16x4xbf16>
    %147 = vector.shape_cast %146 : vector<16x16x4xbf16> to vector<256x4xbf16>
    %c3_178 = arith.constant 3 : index
    %c1_179 = arith.constant 1 : index
    %c0_180 = arith.constant 0 : index
    %c0_181 = arith.constant 0 : index
    %148 = vector.load %arg3[%c3_178, %c1_179, %c0_180, %c0_181] : memref<4x4x4x128xbf16, #tpu.memory_space<vmem>>, vector<1x1x4x128xbf16>
    %149 = vector.shape_cast %148 : vector<1x1x4x128xbf16> to vector<4x128xbf16>
    %cst_182 = arith.constant dense<0.000000e+00> : vector<256x128xf32>
    %150 = tpu.matmul %147, %149, %cst_182 {dimension_numbers = #tpu.dot_dimension_numbers<[1], [0], [0], [1], [0, 0, 1, 1], [], []>} : vector<256x4xbf16>, vector<4x128xbf16>, vector<256x128xf32> -> vector<256x128xf32>
    %c0_183 = arith.constant 0 : index
    %c0_184 = arith.constant 0 : index
    %151 = vector.load %arg6[%c0_183, %c0_184] : memref<256x128xf32, #tpu.memory_space<vmem>>, vector<256x128xf32>
    %152 = arith.addf %151, %150 : vector<256x128xf32>
    %c0_185 = arith.constant 0 : index
    %c0_186 = arith.constant 0 : index
    %153 = vector.load %arg6[%c0_185, %c0_186] : memref<256x128xf32, #tpu.memory_space<vmem>>, vector<256x128xf32>
    tpu.vector_store %arg6[%c0_185, %c0_186], %152 {strides = array<i32>} : memref<256x128xf32, #tpu.memory_space<vmem>>, vector<256x128xf32>,
    %c1_i32_187 = arith.constant 1 : i32
    %154 = arith.addi %1, %c1_i32_187 : i32
    %c0_188 = arith.constant 0 : index
    %155 = arith.index_cast %154 : i32 to index
    %c2_189 = arith.constant 2 : index
    %c1_190 = arith.constant 1 : index
    %c0_191 = arith.constant 0 : index
    %156 = vector.load %arg2[%c0_188, %155, %c2_189, %c1_190, %c0_191] : memref<1x17x4x17x4xbf16, #tpu.memory_space<vmem>>, vector<1x16x1x16x4xbf16>
    %157 = vector.shape_cast %156 : vector<1x16x1x16x4xbf16> to vector<16x16x4xbf16>
    %158 = vector.shape_cast %157 : vector<16x16x4xbf16> to vector<256x4xbf16>
    %c3_192 = arith.constant 3 : index
    %c2_193 = arith.constant 2 : index
    %c0_194 = arith.constant 0 : index
    %c0_195 = arith.constant 0 : index
    %159 = vector.load %arg3[%c3_192, %c2_193, %c0_194, %c0_195] : memref<4x4x4x128xbf16, #tpu.memory_space<vmem>>, vector<1x1x4x128xbf16>
    %160 = vector.shape_cast %159 : vector<1x1x4x128xbf16> to vector<4x128xbf16>
    %cst_196 = arith.constant dense<0.000000e+00> : vector<256x128xf32>
    %161 = tpu.matmul %158, %160, %cst_196 {dimension_numbers = #tpu.dot_dimension_numbers<[1], [0], [0], [1], [0, 0, 1, 1], [], []>} : vector<256x4xbf16>, vector<4x128xbf16>, vector<256x128xf32> -> vector<256x128xf32>
    %c0_197 = arith.constant 0 : index
    %c0_198 = arith.constant 0 : index
    %162 = vector.load %arg6[%c0_197, %c0_198] : memref<256x128xf32, #tpu.memory_space<vmem>>, vector<256x128xf32>
    %163 = arith.addf %162, %161 : vector<256x128xf32>
    %c0_199 = arith.constant 0 : index
    %c0_200 = arith.constant 0 : index
    %164 = vector.load %arg6[%c0_199, %c0_200] : memref<256x128xf32, #tpu.memory_space<vmem>>, vector<256x128xf32>
    tpu.vector_store %arg6[%c0_199, %c0_200], %163 {strides = array<i32>} : memref<256x128xf32, #tpu.memory_space<vmem>>, vector<256x128xf32>,
    %c1_i32_201 = arith.constant 1 : i32
    %165 = arith.addi %1, %c1_i32_201 : i32
    %c0_202 = arith.constant 0 : index
    %166 = arith.index_cast %165 : i32 to index
    %c3_203 = arith.constant 3 : index
    %c1_204 = arith.constant 1 : index
    %c0_205 = arith.constant 0 : index
    %167 = vector.load %arg2[%c0_202, %166, %c3_203, %c1_204, %c0_205] : memref<1x17x4x17x4xbf16, #tpu.memory_space<vmem>>, vector<1x16x1x16x4xbf16>
    %168 = vector.shape_cast %167 : vector<1x16x1x16x4xbf16> to vector<16x16x4xbf16>
    %169 = vector.shape_cast %168 : vector<16x16x4xbf16> to vector<256x4xbf16>
    %c3_206 = arith.constant 3 : index
    %c3_207 = arith.constant 3 : index
    %c0_208 = arith.constant 0 : index
    %c0_209 = arith.constant 0 : index
    %170 = vector.load %arg3[%c3_206, %c3_207, %c0_208, %c0_209] : memref<4x4x4x128xbf16, #tpu.memory_space<vmem>>, vector<1x1x4x128xbf16>
    %171 = vector.shape_cast %170 : vector<1x1x4x128xbf16> to vector<4x128xbf16>
    %cst_210 = arith.constant dense<0.000000e+00> : vector<256x128xf32>
    %172 = tpu.matmul %169, %171, %cst_210 {dimension_numbers = #tpu.dot_dimension_numbers<[1], [0], [0], [1], [0, 0, 1, 1], [], []>} : vector<256x4xbf16>, vector<4x128xbf16>, vector<256x128xf32> -> vector<256x128xf32>
    %c0_211 = arith.constant 0 : index
    %c0_212 = arith.constant 0 : index
    %173 = vector.load %arg6[%c0_211, %c0_212] : memref<256x128xf32, #tpu.memory_space<vmem>>, vector<256x128xf32>
    %174 = arith.addf %173, %172 : vector<256x128xf32>
    %c0_213 = arith.constant 0 : index
    %c0_214 = arith.constant 0 : index
    %175 = vector.load %arg6[%c0_213, %c0_214] : memref<256x128xf32, #tpu.memory_space<vmem>>, vector<256x128xf32>
    tpu.vector_store %arg6[%c0_213, %c0_214], %174 {strides = array<i32>} : memref<256x128xf32, #tpu.memory_space<vmem>>, vector<256x128xf32>,
    %c0_215 = arith.constant 0 : index
    %c0_216 = arith.constant 0 : index
    %176 = vector.load %arg6[%c0_215, %c0_216] : memref<256x128xf32, #tpu.memory_space<vmem>>, vector<256x128xf32>
    %c0_217 = arith.constant 0 : index
    %c0_218 = arith.constant 0 : index
    %177 = vector.load %arg4[%c0_217, %c0_218] : memref<1x128xf32, #tpu.memory_space<vmem>>, vector<1x128xf32>
    %178 = vector.broadcast %177 : vector<1x128xf32> to vector<256x128xf32>
    %179 = arith.addf %176, %178 : vector<256x128xf32>
    %cst_219 = arith.constant 0.000000e+00 : f32
    %180 = vector.broadcast %cst_219 : f32 to vector<256x128xf32>
    %181 = arith.cmpf oge, %179, %180 : vector<256x128xf32>
    %cst_220 = arith.constant 2.000000e-01 : f32
    %182 = vector.broadcast %cst_220 : f32 to vector<256x128xf32>
    %183 = arith.mulf %182, %179 : vector<256x128xf32>
    %184 = arith.select %181, %179, %183 : vector<256x128xi1>, vector<256x128xf32>
    %185 = vector.shape_cast %184 : vector<256x128xf32> to vector<16x16x128xf32>
    %186 = arith.truncf %185 : vector<16x16x128xf32> to vector<16x16x128xbf16>
    %c0_221 = arith.constant 0 : index
    %c0_222 = arith.constant 0 : index
    %c0_223 = arith.constant 0 : index
    %c0_224 = arith.constant 0 : index
    %187 = vector.load %arg5[%c0_221, %c0_222, %c0_223, %c0_224] : memref<1x16x16x128xbf16, #tpu.memory_space<vmem>>, vector<1x16x16x128xbf16>
    %188 = vector.shape_cast %187 : vector<1x16x16x128xbf16> to vector<16x16x128xbf16>
    %189 = vector.shape_cast %186 : vector<16x16x128xbf16> to vector<1x16x16x128xbf16>
    tpu.vector_store %arg5[%c0_221, %c0_222, %c0_223, %c0_224], %189 {strides = array<i32>} : memref<1x16x16x128xbf16, #tpu.memory_space<vmem>>, vector<1x16x16x128xbf16>,
    return
  }
  func.func @transform_0(%arg0: i32, %arg1: i32) -> (i32, i32, i32, i32, i32) {
    %c0_i32 = arith.constant 0 : i32
    %c0_i32_0 = arith.constant 0 : i32
    %c0_i32_1 = arith.constant 0 : i32
    %c0_i32_2 = arith.constant 0 : i32
    %c0_i32_3 = arith.constant 0 : i32
    return %arg0, %c0_i32, %c0_i32_0, %c0_i32_1, %c0_i32_2 : i32, i32, i32, i32, i32
  }
  func.func @transform_1(%arg0: i32, %arg1: i32) -> (i32, i32, i32, i32) {
    %c0_i32 = arith.constant 0 : i32
    %c0_i32_0 = arith.constant 0 : i32
    %c0_i32_1 = arith.constant 0 : i32
    %c0_i32_2 = arith.constant 0 : i32
    %c0_i32_3 = arith.constant 0 : i32
    return %c0_i32, %c0_i32_0, %c0_i32_1, %c0_i32_2 : i32, i32, i32, i32
  }
  func.func @transform_2(%arg0: i32, %arg1: i32) -> (i32, i32) {
    %c0_i32 = arith.constant 0 : i32
    %c0_i32_0 = arith.constant 0 : i32
    %c0_i32_1 = arith.constant 0 : i32
    return %c0_i32, %c0_i32_0 : i32, i32
  }
  func.func @transform_3(%arg0: i32, %arg1: i32) -> (i32, i32, i32, i32) {
    %c0_i32 = arith.constant 0 : i32
    %c0_i32_0 = arith.constant 0 : i32
    %c0_i32_1 = arith.constant 0 : i32
    return %arg0, %arg1, %c0_i32, %c0_i32_0 : i32, i32, i32, i32
  }
}

</mosaic_0001>

<bundles_post_ra>
// kernel: tpu_custom_call.1
= control target key start
LH: loop header
LB: loop body
LE: loop exit
PB: predicated region body
PF: predicated region fallthrough
CT: control target
= control target key end

     0   :  { %8 = vsyncpa [#allocation4], 0  ;;  %s14966_s0 = inlined_call_operand.vmem [shape: bf16[2,17,4,17,4], index: 0, kind: input, shape index: {}]   ;;  %s14967_s1 = inlined_call_operand.vmem [shape: bf16[4,4,4,128], index: 1, kind: input, shape index: {}]   ;;  %s14968_s2 = inlined_call_operand.vmem [shape: f32[1,128], index: 2, kind: input, shape index: {}]   ;;  %s14969_s3 = inlined_call_operand.hbm [shape: bf16[2,16,16,128], index: 3, kind: output, shape index: {}]  }
   0x1   :  { %10 = vsyncpa [#allocation4 + $0x1], 0  ;;  %s13160_s12 = smov 0   ;;  %s13162_s13 = smov 0  }
   0x2   :  { %s13164_s14 = smov 0   ;;  %s13166_s15 = smov 0  }
   0x3   :  { %s13168_s16 = smov 0   ;;  %s13170_s17 = smov 0  }
   0x4 LB: > { %s10297_s18 = sadd.s32 4294967295, %s13135_s17   ;;  %s10298_s19 = sadd.s32 4294967294, %s13135_s17   ;;  %s13135_s17 = sphi %s13170_s17, %s16_s17   ;;  %s13131_s16 = sphi %s13168_s16, %s14978_s16   ;;  %s13127_s15 = sphi %s13166_s15, %s14977_s15   ;;  %s13123_s14 = sphi %s13164_s14, %s14976_s14   ;;  %s13119_s13 = sphi %s13162_s13, %s14975_s13   ;;  %s13115_s12 = sphi %s13160_s12, %s14974_s12  }
   0x5   : > { %s28_s20 = sadd.s32 1, %s13131_s16  ;;  %s105_s21 = sadd.s32 1, %s13123_s14 }
   0x6   : > { %p30_p0 = scmp.ge.s32.totalorder %s28_s20, 2  ;;  %p115_p1 = scmp.ne.s32.totalorder %s13123_s14, %s13119_s13 }
   0x7   : > { %p116_p2 = scmp.eq.s32.totalorder %s10297_s18, 1  ;;  %p121_p3 = scmp.ne.s32.totalorder %s13119_s13, %s13115_s12 }
   0x8   : > { %s14980_s20 = smov (%p30_p0, %s28_s20), 0  ;;  %p122_p5 = scmp.eq.s32.totalorder %s10298_s19, 1 }
   0x9   : > { %p13200_p4 = por %p116_p2, %p115_p1  ;;  %s100_s23 = ssub.s32 %s13131_s16, %s14980_s20 }
   0xa   : > { %p10301_p6 = scmp.ge.s32.totalorder %s13135_s17, 1  ;;  %p103_p7 = scmp.eq.s32.totalorder %s100_s23, 0 }
   0xb   : > { %p13207_p8 = por %p122_p5, %p121_p3  ;;  %p154_p9 = scmp.lt.s32.totalorder %s13135_s17, 3 }
   0xc   : > { %s13213_s25 = scalar_select %p103_p7, %s13123_s14, %s105_s21  }
   0xd   : > { %p155_p10 = pnand %p10301_p6, %p154_p9 }
   0xe   : > { %v221_v0 = vld [vmem:[%s14967_s1] sm:$0x3] (!%p155_p10)  ;;  %vm351_vm0 = vcmask (!%p155_p10), 1041408   ;;  %v10839_v1 = vld [vmem:[%s14967_s1 + $0x10] sm:$0x3] (!%p155_p10)  ;;  %p178_p11 = scmp.lt.s32.totalorder (!%p155_p10), %s13127_s15, 1 }
   0xf   : > { %158 = sbr.rel (%p155_p10) target bundleno = 873 (0x369), region = 32  ;;  %12853 = vmatprep.subr.msk.bf16.mxu1 (!%p155_p10), %vm351_vm0, %v221_v0  ;;  %12861 = vmatprep.subr.msk.bf16.mxu0 (!%p155_p10), %vm351_vm0, %v10839_v1  ;;  %v353_v2 = vsel (!%p155_p10), %vm351_vm0, %v221_v0, 0  ;;  %v5153_v3 = vsel (!%p155_p10), %vm351_vm0, %v10839_v1, 0  ;;  %v10368_v4 = vld [vmem:[%s14967_s1 + $0x2] sm:$0x3] (!%p155_p10)  ;;  %vm302_vm1 = vcmask (!%p155_p10), 31744  }
  0x10   : > { %11830 = vmatpush3.bf16.msra.mxu1 (!%p155_p10), %v353_v2  ;;  %12102 = vmatpush3.bf16.msra.mxu0 (!%p155_p10), %v5153_v3  ;;  %v10904_v5 = vld [vmem:[%s14967_s1 + $0x12] sm:$0x3] (!%p155_p10)  ;;  %v714_v9 = vsel (!%p155_p10), %vm351_vm0, %v10368_v4, 0  ;;  %v13248_v10 = vld [vmem:[%s14967_s1 + $0x4] sm:$0x3] (!%p155_p10)  ;;  %s11461_s18 = sshll.u32 (!%p155_p10), %s13127_s15, 11 }
  0x11   : > { %12854 = vmatprep.subr.msk.bf16.mxu1 (!%p155_p10), %vm351_vm0, %v10368_v4  ;;  %12862 = vmatprep.subr.msk.bf16.mxu0 (!%p155_p10), %vm351_vm0, %v10904_v5  ;;  %v5578_v12 = vsel (!%p155_p10), %vm351_vm0, %v10904_v5, 0  ;;  %v13256_v13 = vld [vmem:[%s14967_s1 + $0x14] sm:$0x3] (!%p155_p10)  ;;  %v1507_v43 = vsel (!%p155_p10), %vm351_vm0, %v13248_v10, 0  ;;  %vm1021_vm2 = vsmask.f32 (!%p155_p10), 3328  ;;  %s14912_s26 = scalar_lea.hbm (!%p155_p10), %s14969_s3, %s11461_s18 }
  0x12   : > { %v6368_v45 = vsel (!%p155_p10), %vm351_vm0, %v13256_v13, 0  ;;  %v10482_v46 = vld [vmem:[%s14967_s1 + $0x6] sm:$0x3] (!%p155_p10)  ;;  %v11066_v47 = vld [vmem:[%s14967_s1 + $0x16] sm:$0x3] (!%p155_p10)  ;;  %s13137_s28 = smov (!%p155_p10), [#allocation3]  }
  0x13   : > { %vm1022_vm3 = vsmask.f32 (!%p155_p10), 7440  ;;  %v13336_v49 = vsel (!%p155_p10), %vm351_vm0, %v10482_v46, 0  ;;  %v13340_v51 = vsel (!%p155_p10), %vm351_vm0, %v11066_v47, 0  ;;  %s13061_s29 = sshll.u32 (!%p155_p10), %s13137_s28, 4  ;;  %s13062_s29 = int_to_ptr.vmem [resolvable:$false] %s13061_s29 }
  0x14   : > { %vm13357_vm4 = vmor (!%p155_p10), %vm1021_vm2, %vm1022_vm3  ;;  %s13063_s30 = scalar_lea.vmem (!%p155_p10), %s13062_s29, 4096 }
  0x16   : > { %s179_s5 = scalar_select %p178_p11, %s13127_s15, 1 }
  0x18   : > { %s12869_s8 = smul.u32 816, %s179_s5 }
  0x1a   : > { %s13238_s11 = scalar_lea.vmem %s14966_s0, %s12869_s8  ;;  %s175_s8 = sand.u32 1, %s13119_s13  }
  0x1b   : > { %v12927_v6 = vld [vmem:[%s13238_s11] sm:$0xff]   ;;  %v12928_v7 = vld [vmem:[%s13238_s11 + $0x30] sm:$0xff]   ;;  %v975_v55 = vld [vmem:[%s13238_s11 + $0x8] sm:$0x1]  ;;  %s10302_s9 = sshll.u32 %s175_s8, 7  ;;  %s14920_s15 = scalar_lea.sflag [#allocation4], %s175_s8 }
  0x1c   : > { %11831 = vmatprep.mubr.msk.bf16.mxu1 %vm302_vm1, %v12927_v6  ;;  %v12929_v8 = vld [vmem:[%s13238_s11 + $0x30] sm:$0xff]   ;;  %12103 = vmatprep.mubr.msk.bf16.mxu0 %vm302_vm1, %v12928_v7  ;;  %v12930_v11 = vld [vmem:[%s13238_s11 + $0x60] sm:$0xff]   ;;  %v1044_v62 = vshll.u32 %v975_v55, 16  ;;  %v10939_v0 = vld [vmem:[%s13238_s11 + $0x38] sm:$0x1]  ;;  %s14864_s10 = scalar_lea.vmem [#allocation3], %s10302_s9 }
  0x1d   : > { %11832 = vmatmul.mubr.msk.bf16.vlgmr.msra.gmra.mrb[0].mxu1 %vm302_vm1, %v12929_v8  ;;  %v12931_v14 = vld [vmem:[%s13238_s11 + $0x60] sm:$0xff]   ;;  %12104 = vmatmul.mubr.msk.bf16.vlgmr.msra.gmra.mrb[0].mxu0 %vm302_vm1, %v12930_v11  ;;  %v12932_v15 = vld [vmem:[%s13238_s11 + $0x90] sm:$0xff]   ;;  %s10191_s19 = sshll.u32 %s14864_s10, 4  ;;  %s14914_s19 = int_to_ptr.vmem [resolvable:$true] %s10191_s19 }
  0x1e   : > { %11864 = vmatpush3.bf16.msra.mxu1 %v714_v9  ;;  %12136 = vmatpush3.bf16.msra.mxu0 %v5578_v12  ;;  %v12933_v16 = vld [vmem:[%s13238_s11 + $0x90] sm:$0xff]   ;;  %v12934_v17 = vld [vmem:[%s13238_s11 + $0xc0] sm:$0xff]   ;;  %v1046_v7 = vrot.slane %v1044_v62, 5  ;;  %s13057_s27 = scalar_lea.vmem %s14914_s19, 2048  ;;  %p13064_p1 = scmp.lt.s32.totalorder %s14914_s19, %s13062_s29 }
  0x1f   : > { %11835 = vmatprep.mubr.msk.bf16.mxu1 %vm302_vm1, %v12931_v14  ;;  %12107 = vmatprep.mubr.msk.bf16.mxu0 %vm302_vm1, %v12932_v15  ;;  %v12935_v18 = vld [vmem:[%s13238_s11 + $0xc0] sm:$0xff]   ;;  %v12936_v19 = vld [vmem:[%s13238_s11 + $0xf0] sm:$0xff]   ;;  %v5905_v14 = vshll.u32 %v10939_v0, 16  ;;  %p13058_p12 = scmp.ne.s32.totalorder %s14914_s19, %s13057_s27  ;;  %p13065_p2 = scmp.lt.s32.totalorder %s13063_s30, %s13057_s27 }
  0x20   : > { %12855 = vmatprep.subr.msk.bf16.mxu1 %vm351_vm0, %v13248_v10  ;;  %12863 = vmatprep.subr.msk.bf16.mxu0 %vm351_vm0, %v13256_v13  ;;  %v12937_v20 = vld [vmem:[%s13238_s11 + $0xf0] sm:$0xff]   ;;  %v12938_v21 = vld [vmem:[%s13238_s11 + $0x120] sm:$0xff]  }
  0x21   : > { %v12939_v22 = vld [vmem:[%s13238_s11 + $0x120] sm:$0xff]   ;;  %v12940_v23 = vld [vmem:[%s13238_s11 + $0x150] sm:$0xff]   ;;  %p13059_p13 = pnand %p13058_p12, %p13200_p4  ;;  %p13066_p3 = por %p13065_p2, %p13064_p1 }
  0x22   : > { %v12941_v24 = vld [vmem:[%s13238_s11 + $0x150] sm:$0xff]   ;;  %v12942_v25 = vld [vmem:[%s13238_s11 + $0x180] sm:$0xff]  }
  0x23   : > { %v12943_v26 = vld [vmem:[%s13238_s11 + $0x180] sm:$0xff]   ;;  %v12944_v27 = vld [vmem:[%s13238_s11 + $0x1b0] sm:$0xff]   ;;  %p13060_p0 = pneg %p13059_p13 }
  0x24   : > { %v12945_v28 = vld [vmem:[%s13238_s11 + $0x1b0] sm:$0xff]   ;;  %v12946_v29 = vld [vmem:[%s13238_s11 + $0x1e0] sm:$0xff]  }
  0x25   : > { %11836 = vmatmul.mubr.msk.bf16.gmra.mrb[4].mxu1 %vm302_vm1, %v12933_v16  ;;  %12108 = vmatmul.mubr.msk.bf16.gmra.mrb[4].mxu0 %vm302_vm1, %v12934_v17  ;;  %v12947_v30 = vld [vmem:[%s13238_s11 + $0x1e0] sm:$0xff]   ;;  %v12948_v31 = vld [vmem:[%s13238_s11 + $0x210] sm:$0xff]   ;;  %p13067_p5 = pnand %p13066_p3, %p13060_p0 }
  0x26   : > { %11839 = vmatprep.mubr.msk.bf16.mxu1 %vm302_vm1, %v12935_v18  ;;  %12111 = vmatprep.mubr.msk.bf16.mxu0 %vm302_vm1, %v12936_v19  ;;  %v12949_v32 = vld [vmem:[%s13238_s11 + $0x210] sm:$0xff]   ;;  %v12950_v33 = vld [vmem:[%s13238_s11 + $0x240] sm:$0xff]  }
  0x27   : > { %v12951_v34 = vld [vmem:[%s13238_s11 + $0x240] sm:$0xff]   ;;  %v12952_v35 = vld [vmem:[%s13238_s11 + $0x270] sm:$0xff]  }
  0x28   : > { %v12953_v36 = vld [vmem:[%s13238_s11 + $0x270] sm:$0xff]   ;;  %v12954_v37 = vld [vmem:[%s13238_s11 + $0x2a0] sm:$0xff]  }
  0x29   : > { %v12955_v38 = vld [vmem:[%s13238_s11 + $0x2a0] sm:$0xff]   ;;  %v12956_v39 = vld [vmem:[%s13238_s11 + $0x2d0] sm:$0xff]  }
  0x2a   : > { %v12957_v40 = vld [vmem:[%s13238_s11 + $0x2d0] sm:$0xff]   ;;  %v12958_v41 = vld [vmem:[%s13238_s11 + $0x300] sm:$0xff]  }
  0x2b   : > { %v12959_v42 = vld [vmem:[%s13238_s11 + $0xc] sm:$0xff]   ;;  %v12960_v44 = vld [vmem:[%s13238_s11 + $0x3c] sm:$0xff]   ;;  %v974_v54 = vld [vmem:[%s13238_s11 + $0x4] sm:$0xf] }
  0x2c   : > { %v12961_v48 = vld [vmem:[%s13238_s11 + $0x3c] sm:$0xff]   ;;  %v12962_v50 = vld [vmem:[%s13238_s11 + $0x6c] sm:$0xff]   ;;  %v1034_v59 = vshll.u32 %v974_v54, 16  ;;  %v1038_v60 = vshrl.u32 %v974_v54, 16  ;;  %v10938_v63 = vld [vmem:[%s13238_s11 + $0x34] sm:$0xf] }
  0x2d   : > { %11840 = vmatmul.mubr.msk.bf16.gmra.mrb[8].mxu1 %vm302_vm1, %v12937_v20  ;;  %12112 = vmatmul.mubr.msk.bf16.gmra.mrb[8].mxu0 %vm302_vm1, %v12938_v21  ;;  %v12963_v52 = vld [vmem:[%s13238_s11 + $0x6c] sm:$0xff]   ;;  %v973_v53 = vld [vmem:[%s13238_s11] sm:$0xf]  ;;  %v5895_v10 = vshll.u32 %v10938_v63, 16  ;;  %v5899_v13 = vshrl.u32 %v10938_v63, 16 }
  0x2e   : > { %11843 = vmatprep.mubr.msk.bf16.mxu1 %vm302_vm1, %v12939_v22  ;;  %12115 = vmatprep.mubr.msk.bf16.mxu0 %vm302_vm1, %v12940_v23  ;;  %v12964_v56 = vld [vmem:[%s13238_s11 + $0x9c] sm:$0xff]   ;;  %v1025_v57 = vshrl.u32 %v973_v53, 16  ;;  %v1028_v58 = vshll.u32 %v973_v53, 16  ;;  %v10937_v61 = vld [vmem:[%s13238_s11 + $0x30] sm:$0xf]  ;;  %v1036_v4 = vrot.slane %v1034_v59, 5 }
  0x2f   : > { %v5886_v1 = vshrl.u32 %v10937_v61, 16  ;;  %v1040_v5 = vrot.slane %v1038_v60, 4  ;;  %v976_v6 = vld [vmem:[%s13238_s11 + $0x30] sm:$0xf]  ;;  %v5889_v9 = vshll.u32 %v10937_v61, 16  ;;  %v5897_v18 = vrot.slane %v5895_v10, 5 }
  0x30   : > { %v1027_v2 = vrot.slane %v1025_v57, 4  ;;  %v1030_v3 = vrot.slane %v1028_v58, 5  ;;  %v977_v15 = vld [vmem:[%s13238_s11 + $0x34] sm:$0xf]  ;;  %v1049_v19 = vshrl.u32 %v976_v6, 16  ;;  %v1052_v20 = vshll.u32 %v976_v6, 16 }
  0x31   : > { %v5888_v8 = vrot.slane %v5886_v1, 4  ;;  %v1041_v12 = vor.u32 %v1040_v5, %v1036_v4  ;;  %v5891_v17 = vrot.slane %v5889_v9, 5  ;;  %v5901_v23 = vrot.slane %v5899_v13, 4  ;;  %v979_v55 = vld [vmem:[%s13238_s11 + $0x60] sm:$0xf]  ;;  %v12971_v13 = vld [vmem:[%s13238_s11 + $0x12c] sm:$0xff]  }
  0x32   : > { %v1031_v11 = vor.u32 %v1030_v3, %v1027_v2  ;;  %v980_v60 = vld [vmem:[%s13238_s11 + $0x64] sm:$0xf]  ;;  %v12969_v61 = vld [vmem:[%s13238_s11 + $0xfc] sm:$0xff]   ;;  %v981_v5 = vld [vmem:[%s13238_s11 + $0x68] sm:$0x1]  ;;  %v1073_v6 = vshrl.u32 %v979_v55, 16 }
  0x33   : > { %v1042_v22 = vrot.slane %v1041_v12, 4  ;;  %v1076_v9 = vshll.u32 %v979_v55, 16  ;;  %v1082_v10 = vshll.u32 %v980_v60, 16  ;;  %v10943_v12 = vld [vmem:[%s13238_s11 + $0x90] sm:$0xf] }
  0x34   : > { %v1032_v21 = vrot.slane %v1031_v11, 4  ;;  %v1086_v11 = vshrl.u32 %v980_v60, 16 }
  0x35   : > { %11844 = vmatmul.mubr.msk.bf16.gmra.mrb[12].mxu1 %vm302_vm1, %v12941_v24  ;;  %12116 = vmatmul.mubr.msk.bf16.gmra.mrb[12].mxu0 %vm302_vm1, %v12942_v25  ;;  %v5907_v24 = vrot.slane %v5905_v14, 5  ;;  %v978_v25 = vld [vmem:[%s13238_s11 + $0x38] sm:$0x1] }
  0x36   : > { %11847 = vmatprep.mubr.msk.bf16.mxu1 %vm302_vm1, %v12943_v26  ;;  %12119 = vmatprep.mubr.msk.bf16.mxu0 %vm302_vm1, %v12944_v27  ;;  %v12965_v26 = vld [vmem:[%s13238_s11 + $0x9c] sm:$0xff]   ;;  %v5892_v27 = vor.u32 %v5891_v17, %v5888_v8 }
  0x3d   : > { %11848 = vmatmul.mubr.msk.bf16.gmra.mrb[16].mxu1 %vm302_vm1, %v12945_v28  ;;  %12120 = vmatmul.mubr.msk.bf16.gmra.mrb[16].mxu0 %vm302_vm1, %v12946_v29  ;;  %v1051_v28 = vrot.slane %v1049_v19, 4  ;;  %v1054_v29 = vrot.slane %v1052_v20, 5  ;;  %v10944_v19 = vld [vmem:[%s13238_s11 + $0x94] sm:$0xf]  ;;  %v12972_v20 = vld [vmem:[%s13238_s11 + $0x15c] sm:$0xff]  }
  0x3e   : > { %11851 = vmatprep.mubr.msk.bf16.mxu1 %vm302_vm1, %v12947_v30  ;;  %12123 = vmatprep.mubr.msk.bf16.mxu0 %vm302_vm1, %v12948_v31  ;;  %v1058_v30 = vshll.u32 %v977_v15, 16  ;;  %v10940_v31 = vld [vmem:[%s13238_s11 + $0x60] sm:$0xf] }
  0x3f   : > { %v5913_v53 = vshll.u32 %v10940_v31, 16 }
  0x41   : > { %v5915_v0 = vrot.slane %v5913_v53, 5 }
  0x45   : > { %11852 = vmatmul.mubr.msk.bf16.gmra.mrb[20].mxu1 %vm302_vm1, %v12949_v32  ;;  %12124 = vmatmul.mubr.msk.bf16.gmra.mrb[20].mxu0 %vm302_vm1, %v12950_v33  ;;  %v12966_v32 = vld [vmem:[%s13238_s11 + $0xcc] sm:$0xff]  }
  0x46   : > { %11855 = vmatprep.mubr.msk.bf16.mxu1 %vm302_vm1, %v12951_v34  ;;  %12127 = vmatprep.mubr.msk.bf16.mxu0 %vm302_vm1, %v12952_v35  ;;  %v12967_v33 = vld [vmem:[%s13238_s11 + $0xcc] sm:$0xff]   ;;  %v1037_v34 = vsel %vm13357_vm4, %v1032_v21, %v1036_v4  ;;  %v1047_v35 = vsel %vm13357_vm4, %v1042_v22, %v1046_v7 }
  0x47   : > { %v12970_v7 = vld [vmem:[%s13238_s11 + $0x12c] sm:$0xff]  }
  0x4d   : > { %11856 = vmatmul.mubr.msk.bf16.gmra.mrb[24].mxu1 %vm302_vm1, %v12953_v36  ;;  %12128 = vmatmul.mubr.msk.bf16.gmra.mrb[24].mxu0 %vm302_vm1, %v12954_v37  ;;  %v5902_v36 = vor.u32 %v5901_v23, %v5897_v18  ;;  %v1062_v37 = vshrl.u32 %v977_v15, 16  ;;  %v1078_v23 = vrot.slane %v1076_v9, 5  ;;  %v10947_v9 = vld [vmem:[%s13238_s11 + $0xc4] sm:$0xf] }
  0x4e   : > { %11859 = vmatprep.mubr.msk.bf16.mxu1 %vm302_vm1, %v12955_v38  ;;  %12131 = vmatprep.mubr.msk.bf16.mxu0 %vm302_vm1, %v12956_v39  ;;  %v10941_v38 = vld [vmem:[%s13238_s11 + $0x64] sm:$0xf]  ;;  %v12968_v39 = vld [vmem:[%s13238_s11 + $0xfc] sm:$0xff]  }
  0x4f   : > { %v5919_v54 = vshll.u32 %v10941_v38, 16  ;;  %v5923_v3 = vshrl.u32 %v10941_v38, 16 }
  0x51   : > { %v5921_v1 = vrot.slane %v5919_v54, 5  ;;  %v5925_v15 = vrot.slane %v5923_v3, 4 }
  0x55   : > { %11860 = vmatmul.mubr.msk.bf16.gmra.mrb[28].mxu1 %vm302_vm1, %v12957_v40  ;;  %12132 = vmatmul.mubr.msk.bf16.gmra.mrb[28].mxu0 %vm302_vm1, %v12958_v41  ;;  %v13375_v40 = vcombine.low %v1037_v34, %v1047_v35  ;;  %v5893_v41 = vrot.slane %v5892_v27, 4  ;;  %v1092_v27 = vshll.u32 %v981_v5, 16  ;;  %v982_v34 = vld [vmem:[%s13238_s11 + $0x90] sm:$0xf] }
  0x56   : > { %11865 = vmatprep.mubr.msk.bf16.mxu1 %vm302_vm1, %v12959_v42  ;;  %12137 = vmatprep.mubr.msk.bf16.mxu0 %vm302_vm1, %v12960_v44  ;;  %v1055_v42 = vor.u32 %v1054_v29, %v1051_v28  ;;  %v5903_v44 = vrot.slane %v5902_v36, 4  ;;  %v5934_v28 = vshrl.u32 %v10943_v12, 16 }
  0x58   : > { %v5936_v38 = vrot.slane %v5934_v28, 4 }
  0x5d   : > { %11866 = vmatmul.mubr.msk.bf16.vlgmr.msra.gmra.mrb[0].mxu1 %vm302_vm1, %v12961_v48  ;;  %12138 = vmatmul.mubr.msk.bf16.vlgmr.msra.gmra.mrb[0].mxu0 %vm302_vm1, %v12962_v50  ;;  %v5910_v48 = vshrl.u32 %v10940_v31, 16  ;;  %v5898_v50 = vsel %vm13357_vm4, %v5893_v41, %v5897_v18  ;;  %v1075_v18 = vrot.slane %v1073_v6, 4  ;;  %v10945_v31 = vld [vmem:[%s13238_s11 + $0x98] sm:$0x1] }
  0x5e   : > { %11898 = vmatpush3.bf16.msra.mxu1 %v1507_v43  ;;  %12170 = vmatpush3.bf16.msra.mxu0 %v6368_v45  ;;  %v1060_v43 = vrot.slane %v1058_v30, 5  ;;  %v1064_v45 = vrot.slane %v1062_v37, 4  ;;  %v1094_v37 = vrot.slane %v1092_v27, 5 }
  0x5f   : > { %11869 = vmatprep.mubr.msk.bf16.mxu1 %vm302_vm1, %v12963_v52  ;;  %12141 = vmatprep.mubr.msk.bf16.mxu0 %vm302_vm1, %v12964_v56  ;;  %v1056_v52 = vrot.slane %v1055_v42, 4  ;;  %v5908_v56 = vsel %vm13357_vm4, %v5903_v44, %v5907_v24  ;;  %v5912_v59 = vrot.slane %v5910_v48, 4  ;;  %v1084_v24 = vrot.slane %v1082_v10, 5 }
  0x60   : > { %12856 = vmatprep.subr.msk.bf16.mxu1 %vm351_vm0, %v10482_v46  ;;  %12864 = vmatprep.subr.msk.bf16.mxu0 %vm351_vm0, %v11066_v47  ;;  %v1068_v46 = vshll.u32 %v978_v25, 16  ;;  %v10942_v47 = vld [vmem:[%s13238_s11 + $0x68] sm:$0x1]  ;;  %v1065_v57 = vor.u32 %v1064_v45, %v1060_v43  ;;  %v13389_v62 = vcombine.low %v5898_v50, %v5908_v56  ;;  %v5926_v25 = vor.u32 %v5925_v15, %v5921_v1  ;;  %v12973_v50 = vld [vmem:[%s13238_s11 + $0x15c] sm:$0xff]   ;;  %v984_v56 = vld [vmem:[%s13238_s11 + $0x98] sm:$0x1] }
  0x61   : > { %v1061_v63 = vsel %vm13357_vm4, %v1056_v52, %v1060_v43  ;;  %v5929_v4 = vshll.u32 %v10942_v47, 16  ;;  %v5916_v8 = vor.u32 %v5915_v0, %v5912_v59  ;;  %v1079_v30 = vor.u32 %v1078_v23, %v1075_v18  ;;  %v983_v47 = vld [vmem:[%s13238_s11 + $0x94] sm:$0xf]  ;;  %v12975_v59 = vld [vmem:[%s13238_s11 + $0x18c] sm:$0xff]  }
  0x62   : > { %v1070_v58 = vrot.slane %v1068_v46, 5  ;;  %v1066_v2 = vrot.slane %v1065_v57, 4  ;;  %v5927_v35 = vrot.slane %v5926_v25, 4  ;;  %v5947_v43 = vshrl.u32 %v10944_v19, 16  ;;  %v10946_v57 = vld [vmem:[%s13238_s11 + $0xc0] sm:$0xf] }
  0x63   : > { %v5931_v17 = vrot.slane %v5929_v4, 5  ;;  %v5917_v22 = vrot.slane %v5916_v8, 4  ;;  %v5953_v46 = vshll.u32 %v10945_v31, 16  ;;  %v1097_v48 = vshrl.u32 %v982_v34, 16  ;;  %v986_v31 = vld [vmem:[%s13238_s11 + $0xc4] sm:$0xf] }
  0x64   : > { %v1071_v14 = vsel %vm13357_vm4, %v1066_v2, %v1070_v58  ;;  %v5949_v55 = vrot.slane %v5947_v43, 4  ;;  %v12974_v58 = vld [vmem:[%s13238_s11 + $0x18c] sm:$0xff]   ;;  %v1100_v0 = vshll.u32 %v982_v34, 16  ;;  %v1106_v5 = vshll.u32 %v983_v47, 16 }
  0x65   : > { %11870 = vmatmul.mubr.msk.bf16.gmra.mrb[4].mxu1 %vm302_vm1, %v12965_v26  ;;  %12142 = vmatmul.mubr.msk.bf16.gmra.mrb[4].mxu0 %vm302_vm1, %v12966_v32  ;;  %v13401_v21 = vcombine.low %v1061_v63, %v1071_v14  ;;  %v1088_v26 = vrot.slane %v1086_v11, 4  ;;  %v5922_v29 = vsel %vm13357_vm4, %v5917_v22, %v5921_v1  ;;  %v5937_v32 = vshll.u32 %v10943_v12, 16  ;;  %v12976_v1 = vld [vmem:[%s13238_s11 + $0x1bc] sm:$0xff]   ;;  %v10948_v14 = vld [vmem:[%s13238_s11 + $0xc8] sm:$0x1] }
  0x66   : > { %11873 = vmatprep.mubr.msk.bf16.mxu1 %vm302_vm1, %v12967_v33  ;;  %12145 = vmatprep.mubr.msk.bf16.mxu0 %vm302_vm1, %v12968_v39  ;;  %v5943_v33 = vshll.u32 %v10944_v19, 16  ;;  %v1080_v39 = vrot.slane %v1079_v30, 4  ;;  %v5932_v44 = vsel %vm13357_vm4, %v5927_v35, %v5931_v17  ;;  %v1099_v63 = vrot.slane %v1097_v48, 4  ;;  %v985_v22 = vld [vmem:[%s13238_s11 + $0xc0] sm:$0xf] }
  0x67   : > { %v1089_v36 = vor.u32 %v1088_v26, %v1084_v24  ;;  %v5939_v41 = vrot.slane %v5937_v32, 5  ;;  %v13415_v52 = vcombine.low %v5922_v29, %v5932_v44  ;;  %v1102_v6 = vrot.slane %v1100_v0, 5  ;;  %v12977_v32 = vld [vmem:[%s13238_s11 + $0x1bc] sm:$0xff]  }
  0x68   : > { %v5945_v42 = vrot.slane %v5943_v33, 5  ;;  %v1085_v53 = vsel %vm13357_vm4, %v1080_v39, %v1084_v24  ;;  %v1116_v8 = vshll.u32 %v984_v56, 16  ;;  %v5958_v10 = vshrl.u32 %v10946_v57, 16  ;;  %v12979_v39 = vld [vmem:[%s13238_s11 + $0x1ec] sm:$0xff]  }
  0x69   : > { %v1090_v45 = vrot.slane %v1089_v36, 4  ;;  %v5940_v54 = vor.u32 %v5939_v41, %v5936_v38  ;;  %v5961_v15 = vshll.u32 %v10946_v57, 16  ;;  %v1103_v17 = vor.u32 %v1102_v6, %v1099_v63  ;;  %v987_v36 = vld [vmem:[%s13238_s11 + $0xc8] sm:$0x1]  ;;  %v12978_v38 = vld [vmem:[%s13238_s11 + $0x1ec] sm:$0xff]  }
  0x6a   : > { %v5950_v4 = vor.u32 %v5949_v55, %v5945_v42  ;;  %v1118_v19 = vrot.slane %v1116_v8, 5  ;;  %v5967_v25 = vshll.u32 %v10947_v9, 16  ;;  %v5971_v26 = vshrl.u32 %v10947_v9, 16 }
  0x6b   : > { %v1095_v60 = vsel %vm13357_vm4, %v1090_v45, %v1094_v37  ;;  %v5941_v3 = vrot.slane %v5940_v54, 4  ;;  %v5963_v24 = vrot.slane %v5961_v15, 5  ;;  %v1104_v28 = vrot.slane %v1103_v17, 4  ;;  %v12980_v45 = vld [vmem:[%s13238_s11 + $0x21c] sm:$0xff]   ;;  %v989_v15 = vld [vmem:[%s13238_s11 + $0xf4] sm:$0xf] }
  0x6c   : > { %v13426_v2 = vcombine.low %v1085_v53, %v1095_v60  ;;  %v5951_v12 = vrot.slane %v5950_v4, 4  ;;  %v5977_v30 = vshll.u32 %v10948_v14, 16  ;;  %v5969_v34 = vrot.slane %v5967_v25, 5  ;;  %v10949_v53 = vld [vmem:[%s13238_s11 + $0xf0] sm:$0xf]  ;;  %v12981_v17 = vld [vmem:[%s13238_s11 + $0x21c] sm:$0xff]  }
  0x6d   : > { %11874 = vmatmul.mubr.msk.bf16.gmra.mrb[8].mxu1 %vm302_vm1, %v12969_v61  ;;  %12146 = vmatmul.mubr.msk.bf16.gmra.mrb[8].mxu0 %vm302_vm1, %v12970_v7  ;;  %v5955_v61 = vrot.slane %v5953_v46, 5  ;;  %v1110_v7 = vshrl.u32 %v983_v47, 16  ;;  %v5946_v11 = vsel %vm13357_vm4, %v5941_v3, %v5945_v42  ;;  %v5973_v35 = vrot.slane %v5971_v26, 4  ;;  %v10951_v4 = vld [vmem:[%s13238_s11 + $0xf8] sm:$0x1]  ;;  %v12984_v25 = vld [vmem:[%s13238_s11 + $0x27c] sm:$0xff]  }
  0x6e   : > { %11877 = vmatprep.mubr.msk.bf16.mxu1 %vm302_vm1, %v12971_v13  ;;  %12149 = vmatprep.mubr.msk.bf16.mxu0 %vm302_vm1, %v12972_v20  ;;  %v1108_v13 = vrot.slane %v1106_v5, 5  ;;  %v5960_v20 = vrot.slane %v5958_v10, 4  ;;  %v1121_v37 = vshrl.u32 %v985_v22, 16  ;;  %v5979_v43 = vrot.slane %v5977_v30, 5  ;;  %v988_v10 = vld [vmem:[%s13238_s11 + $0xf0] sm:$0xf] }
  0x6f   : > { %v1112_v18 = vrot.slane %v1110_v7, 4  ;;  %v5956_v23 = vsel %vm13357_vm4, %v5951_v12, %v5955_v61  ;;  %v1124_v44 = vshll.u32 %v985_v22, 16  ;;  %v5974_v47 = vor.u32 %v5973_v35, %v5969_v34 }
  0x70   : > { %v13439_v27 = vcombine.low %v5946_v11, %v5956_v23  ;;  %v5964_v33 = vor.u32 %v5963_v24, %v5960_v20  ;;  %v1109_v41 = vsel %vm13357_vm4, %v1104_v28, %v1108_v13  ;;  %v1123_v48 = vrot.slane %v1121_v37, 4  ;;  %v12982_v23 = vld [vmem:[%s13238_s11 + $0x24c] sm:$0xff]  }
  0x71   : > { %v1113_v29 = vor.u32 %v1112_v18, %v1108_v13  ;;  %v1126_v55 = vrot.slane %v1124_v44, 5  ;;  %v1134_v56 = vshrl.u32 %v986_v31, 16  ;;  %v1140_v57 = vshll.u32 %v987_v36, 16  ;;  %v12983_v24 = vld [vmem:[%s13238_s11 + $0x24c] sm:$0xff]   ;;  %v10952_v36 = vld [vmem:[%s13238_s11 + $0x120] sm:$0xf] }
  0x72   : > { %v5965_v46 = vrot.slane %v5964_v33, 4  ;;  %v5975_v61 = vrot.slane %v5974_v47, 4  ;;  %v5982_v5 = vshrl.u32 %v10949_v53, 16  ;;  %v5985_v7 = vshll.u32 %v10949_v53, 16 }
  0x73   : > { %v1114_v42 = vrot.slane %v1113_v29, 4  ;;  %v1127_v0 = vor.u32 %v1126_v55, %v1123_v48  ;;  %v1142_v3 = vrot.slane %v1140_v57, 5  ;;  %v6001_v22 = vshll.u32 %v10951_v4, 16  ;;  %v12985_v4 = vld [vmem:[%s13238_s11 + $0x27c] sm:$0xff]  }
  0x74   : > { %v5970_v60 = vsel %vm13357_vm4, %v5965_v46, %v5969_v34  ;;  %v5980_v6 = vsel %vm13357_vm4, %v5975_v61, %v5979_v43  ;;  %v5984_v14 = vrot.slane %v5982_v5, 4  ;;  %v5987_v18 = vrot.slane %v5985_v7, 5  ;;  %v990_v34 = vld [vmem:[%s13238_s11 + $0xf8] sm:$0x1]  ;;  %v12986_v5 = vld [vmem:[%s13238_s11 + $0x2ac] sm:$0xff]  }
  0x75   : > { %11878 = vmatmul.mubr.msk.bf16.gmra.mrb[12].mxu1 %vm302_vm1, %v12973_v50  ;;  %12150 = vmatmul.mubr.msk.bf16.gmra.mrb[12].mxu0 %vm302_vm1, %v12974_v58  ;;  %v1130_v50 = vshll.u32 %v986_v31, 16  ;;  %v1119_v54 = vsel %vm13357_vm4, %v1114_v42, %v1118_v19  ;;  %v10950_v58 = vld [vmem:[%s13238_s11 + $0xf4] sm:$0xf]  ;;  %v13465_v11 = vcombine.low %v5970_v60, %v5980_v6  ;;  %v1128_v12 = vrot.slane %v1127_v0, 4  ;;  %v10953_v42 = vld [vmem:[%s13238_s11 + $0x124] sm:$0xf] }
  0x76   : > { %11881 = vmatprep.mubr.msk.bf16.mxu1 %vm302_vm1, %v12975_v59  ;;  %12153 = vmatprep.mubr.msk.bf16.mxu0 %vm302_vm1, %v12976_v1  ;;  %v13454_v59 = vcombine.low %v1109_v41, %v1119_v54  ;;  %v1136_v1 = vrot.slane %v1134_v56, 4  ;;  %v5991_v8 = vshll.u32 %v10950_v58, 16  ;;  %v5995_v9 = vshrl.u32 %v10950_v58, 16  ;;  %v10954_v56 = vld [vmem:[%s13238_s11 + $0x128] sm:$0x1] }
  0x77   : > { %v1132_v63 = vrot.slane %v1130_v50, 5  ;;  %v1145_v29 = vshrl.u32 %v988_v10, 16  ;;  %v1148_v30 = vshll.u32 %v988_v10, 16  ;;  %v5988_v31 = vor.u32 %v5987_v18, %v5984_v14  ;;  %v991_v60 = vld [vmem:[%s13238_s11 + $0x120] sm:$0xf]  ;;  %v12987_v10 = vld [vmem:[%s13238_s11 + $0x2ac] sm:$0xff]  }
  0x78   : > { %v5993_v19 = vrot.slane %v5991_v8, 5  ;;  %v5997_v20 = vrot.slane %v5995_v9, 4  ;;  %v6003_v33 = vrot.slane %v6001_v22, 5  ;;  %v1154_v35 = vshll.u32 %v989_v15, 16  ;;  %v12988_v18 = vld [vmem:[%s13238_s11 + $0x2dc] sm:$0xff]  }
  0x79   : > { %v1137_v13 = vor.u32 %v1136_v1, %v1132_v63  ;;  %v1133_v26 = vsel %vm13357_vm4, %v1128_v12, %v1132_v63  ;;  %v1158_v41 = vshrl.u32 %v989_v15, 16  ;;  %v5989_v44 = vrot.slane %v5988_v31, 4  ;;  %v993_v15 = vld [vmem:[%s13238_s11 + $0x128] sm:$0x1] }
  0x7a   : > { %v1156_v46 = vrot.slane %v1154_v35, 5  ;;  %v1164_v50 = vshll.u32 %v990_v34, 16  ;;  %v6006_v53 = vshrl.u32 %v10952_v36, 16  ;;  %v6009_v57 = vshll.u32 %v10952_v36, 16  ;;  %v10956_v34 = vld [vmem:[%s13238_s11 + $0x154] sm:$0xf] }
  0x7b   : > { %v1138_v28 = vrot.slane %v1137_v13, 4  ;;  %v1160_v48 = vrot.slane %v1158_v41, 4  ;;  %v5994_v54 = vsel %vm13357_vm4, %v5989_v44, %v5993_v19  ;;  %v6015_v58 = vshll.u32 %v10953_v42, 16  ;;  %v10957_v44 = vld [vmem:[%s13238_s11 + $0x158] sm:$0x1] }
  0x7c   : > { %v1166_v1 = vrot.slane %v1164_v50, 5  ;;  %v6008_v6 = vrot.slane %v6006_v53, 4  ;;  %v6011_v7 = vrot.slane %v6009_v57, 5  ;;  %v6019_v9 = vshrl.u32 %v10953_v42, 16  ;;  %v994_v53 = vld [vmem:[%s13238_s11 + $0x150] sm:$0xf] }
  0x7d   : > { %11882 = vmatmul.mubr.msk.bf16.gmra.mrb[16].mxu1 %vm302_vm1, %v12977_v32  ;;  %12154 = vmatmul.mubr.msk.bf16.gmra.mrb[16].mxu0 %vm302_vm1, %v12978_v38  ;;  %v5998_v32 = vor.u32 %v5997_v20, %v5993_v19  ;;  %v1143_v37 = vsel %vm13357_vm4, %v1138_v28, %v1142_v3  ;;  %v1147_v38 = vrot.slane %v1145_v29, 4  ;;  %v1161_v0 = vor.u32 %v1160_v48, %v1156_v46  ;;  %v992_v3 = vld [vmem:[%s13238_s11 + $0x124] sm:$0xf] }
  0x7e   : > { %11885 = vmatprep.mubr.msk.bf16.mxu1 %vm302_vm1, %v12979_v39  ;;  %12157 = vmatprep.mubr.msk.bf16.mxu0 %vm302_vm1, %v12980_v45  ;;  %v1150_v39 = vrot.slane %v1148_v30, 5  ;;  %v13480_v43 = vcombine.low %v1133_v26, %v1143_v37  ;;  %v6017_v8 = vrot.slane %v6015_v58, 5  ;;  %v6025_v14 = vshll.u32 %v10954_v56, 16 }
  0x7f   : > { %v5999_v45 = vrot.slane %v5998_v32, 4  ;;  %v1162_v13 = vrot.slane %v1161_v0, 4  ;;  %v6012_v19 = vor.u32 %v6011_v7, %v6008_v6  ;;  %v6021_v20 = vrot.slane %v6019_v9, 4 }
  0x80   : > { %v1151_v47 = vor.u32 %v1150_v39, %v1147_v38  ;;  %v1172_v22 = vshll.u32 %v991_v60, 16  ;;  %v6027_v26 = vrot.slane %v6025_v14, 5  ;;  %v1182_v29 = vshrl.u32 %v992_v3, 16 }
  0x81   : > { %v6004_v55 = vsel %vm13357_vm4, %v5999_v45, %v6003_v33  ;;  %v6013_v31 = vrot.slane %v6012_v19, 4  ;;  %v6022_v32 = vor.u32 %v6021_v20, %v6017_v8  ;;  %v1188_v37 = vshll.u32 %v993_v15, 16  ;;  %v10958_v15 = vld [vmem:[%s13238_s11 + $0x180] sm:$0xf] }
  0x82   : > { %v13491_v61 = vcombine.low %v5994_v54, %v6004_v55  ;;  %v1152_v63 = vrot.slane %v1151_v47, 4  ;;  %v1174_v33 = vrot.slane %v1172_v22, 5  ;;  %v1184_v36 = vrot.slane %v1182_v29, 4  ;;  %v12989_v54 = vld [vmem:[%s13238_s11 + $0x2dc] sm:$0xff]   ;;  %v10959_v22 = vld [vmem:[%s13238_s11 + $0x184] sm:$0xf] }
  0x83   : > { %v6018_v39 = vsel %vm13357_vm4, %v6013_v31, %v6017_v8  ;;  %v6023_v41 = vrot.slane %v6022_v32, 4  ;;  %v1190_v47 = vrot.slane %v1188_v37, 5  ;;  %v6039_v50 = vshll.u32 %v10956_v34, 16  ;;  %v996_v8 = vld [vmem:[%s13238_s11 + $0x158] sm:$0x1] }
  0x84   : > { %v1157_v12 = vsel %vm13357_vm4, %v1152_v63, %v1156_v46  ;;  %v6043_v58 = vshrl.u32 %v10956_v34, 16  ;;  %v12990_v63 = vld [vmem:[%s13238_s11 + $0x30c] sm:$0xff]   ;;  %v1193_v9 = vshrl.u32 %v994_v53, 16  ;;  %v10960_v31 = vld [vmem:[%s13238_s11 + $0x188] sm:$0x1]  ;;  %v6054_v32 = vshrl.u32 %v10958_v15, 16 }
  0x85   : > { %11886 = vmatmul.mubr.msk.bf16.gmra.mrb[20].mxu1 %vm302_vm1, %v12981_v17  ;;  %12158 = vmatmul.mubr.msk.bf16.gmra.mrb[20].mxu0 %vm302_vm1, %v12982_v23  ;;  %v1169_v17 = vshrl.u32 %v991_v60, 16  ;;  %v1178_v23 = vshll.u32 %v992_v3, 16  ;;  %v6028_v55 = vsel %vm13357_vm4, %v6023_v41, %v6027_v26  ;;  %v995_v60 = vld [vmem:[%s13238_s11 + $0x154] sm:$0xf]  ;;  %v6041_v3 = vrot.slane %v6039_v50, 5 }
  0x86   : > { %11889 = vmatprep.mubr.msk.bf16.mxu1 %vm302_vm1, %v12983_v24  ;;  %12161 = vmatprep.mubr.msk.bf16.mxu0 %vm302_vm1, %v12984_v25  ;;  %v10955_v24 = vld [vmem:[%s13238_s11 + $0x150] sm:$0xf]  ;;  %v1167_v25 = vsel %vm13357_vm4, %v1162_v13, %v1166_v1  ;;  %v13520_v0 = vcombine.low %v6018_v39, %v6028_v55  ;;  %v6045_v7 = vrot.slane %v6043_v58, 4  ;;  %v1196_v13 = vshll.u32 %v994_v53, 16 }
  0x87   : > { %v1171_v28 = vrot.slane %v1169_v17, 4  ;;  %v13505_v30 = vcombine.low %v1157_v12, %v1167_v25  ;;  %v1180_v35 = vrot.slane %v1178_v23, 5  ;;  %v6030_v38 = vshrl.u32 %v10955_v24, 16 }
  0x88   : > { %v6033_v45 = vshll.u32 %v10955_v24, 16  ;;  %v1202_v14 = vshll.u32 %v995_v60, 16  ;;  %v6046_v19 = vor.u32 %v6045_v7, %v6041_v3  ;;  %v1195_v20 = vrot.slane %v1193_v9, 4 }
  0x89   : > { %v1175_v42 = vor.u32 %v1174_v33, %v1171_v28  ;;  %v1185_v46 = vor.u32 %v1184_v36, %v1180_v35  ;;  %v6032_v48 = vrot.slane %v6030_v38, 4  ;;  %v1198_v23 = vrot.slane %v1196_v13, 5 }
  0x8a   : > { %v6035_v57 = vrot.slane %v6033_v45, 5  ;;  %v1204_v24 = vrot.slane %v1202_v14, 5  ;;  %v1206_v25 = vshrl.u32 %v995_v60, 16  ;;  %v1212_v26 = vshll.u32 %v996_v8, 16 }
  0x8b   : > { %v1176_v56 = vrot.slane %v1175_v42, 4  ;;  %v1186_v1 = vrot.slane %v1185_v46, 4  ;;  %v6047_v29 = vrot.slane %v6046_v19, 4  ;;  %v6057_v33 = vshll.u32 %v10958_v15, 16  ;;  %v10963_v15 = vld [vmem:[%s13238_s11 + $0x1b8] sm:$0x1] }
  0x8c   : > { %v6036_v6 = vor.u32 %v6035_v57, %v6032_v48  ;;  %v1199_v34 = vor.u32 %v1198_v23, %v1195_v20  ;;  %v1214_v36 = vrot.slane %v1212_v26, 5  ;;  %v6063_v37 = vshll.u32 %v10959_v22, 16  ;;  %v999_v57 = vld [vmem:[%s13238_s11 + $0x188] sm:$0x1]  ;;  %v1000_v23 = vld [vmem:[%s13238_s11 + $0x1b0] sm:$0xf] }
  0x8d   : > { %11890 = vmatmul.mubr.msk.bf16.gmra.mrb[24].mxu1 %vm302_vm1, %v12985_v4  ;;  %12162 = vmatmul.mubr.msk.bf16.gmra.mrb[24].mxu0 %vm302_vm1, %v12986_v5  ;;  %v6049_v4 = vshll.u32 %v10957_v44, 16  ;;  %v1181_v5 = vsel %vm13357_vm4, %v1176_v56, %v1180_v35  ;;  %v1208_v35 = vrot.slane %v1206_v25, 4  ;;  %v6056_v39 = vrot.slane %v6054_v32, 4 }
  0x8e   : > { %11893 = vmatprep.mubr.msk.bf16.mxu1 %vm302_vm1, %v12987_v10  ;;  %12165 = vmatprep.mubr.msk.bf16.mxu0 %vm302_vm1, %v12988_v18  ;;  %v1191_v10 = vsel %vm13357_vm4, %v1186_v1, %v1190_v47  ;;  %v6037_v18 = vrot.slane %v6036_v6, 4  ;;  %v6059_v41 = vrot.slane %v6057_v33, 5  ;;  %v6067_v42 = vshrl.u32 %v10959_v22, 16 }
  0x8f   : > { %v6051_v12 = vrot.slane %v6049_v4, 5  ;;  %v13529_v17 = vcombine.low %v1181_v5, %v1191_v10  ;;  %v1200_v45 = vrot.slane %v1199_v34, 4  ;;  %v1209_v46 = vor.u32 %v1208_v35, %v1204_v24  ;;  %v10961_v5 = vld [vmem:[%s13238_s11 + $0x1b0] sm:$0xf]  ;;  %v10962_v10 = vld [vmem:[%s13238_s11 + $0x1b4] sm:$0xf] }
  0x90   : > { %v6042_v28 = vsel %vm13357_vm4, %v6037_v18, %v6041_v3  ;;  %v6065_v47 = vrot.slane %v6063_v37, 5  ;;  %v6060_v48 = vor.u32 %v6059_v41, %v6056_v39  ;;  %v6069_v50 = vrot.slane %v6067_v42, 4  ;;  %v1002_v42 = vld [vmem:[%s13238_s11 + $0x1b8] sm:$0x1] }
  0x91   : > { %v6052_v38 = vsel %vm13357_vm4, %v6047_v29, %v6051_v12  ;;  %v6073_v53 = vshll.u32 %v10960_v31, 16  ;;  %v1205_v55 = vsel %vm13357_vm4, %v1200_v45, %v1204_v24  ;;  %v1210_v56 = vrot.slane %v1209_v46, 4  ;;  %v1001_v29 = vld [vmem:[%s13238_s11 + $0x1b4] sm:$0xf]  ;;  %v10964_v45 = vld [vmem:[%s13238_s11 + $0x1e0] sm:$0xf] }
  0x92   : > { %v13544_v44 = vcombine.low %v6042_v28, %v6052_v38  ;;  %v6070_v1 = vor.u32 %v6069_v50, %v6065_v47  ;;  %v6078_v18 = vshrl.u32 %v10961_v5, 16  ;;  %v6087_v20 = vshll.u32 %v10962_v10, 16  ;;  %v10965_v50 = vld [vmem:[%s13238_s11 + $0x1e4] sm:$0xf] }
  0x93   : > { %v6075_v3 = vrot.slane %v6073_v53, 5  ;;  %v1215_v6 = vsel %vm13357_vm4, %v1210_v56, %v1214_v36  ;;  %v6091_v22 = vshrl.u32 %v10962_v10, 16  ;;  %v6097_v33 = vshll.u32 %v10963_v15, 16  ;;  %v1004_v10 = vld [vmem:[%s13238_s11 + $0x1e4] sm:$0xf] }
  0x94   : > { %v6071_v12 = vrot.slane %v6070_v1, 4  ;;  %v6080_v28 = vrot.slane %v6078_v18, 4  ;;  %v6089_v31 = vrot.slane %v6087_v20, 5  ;;  %v1241_v36 = vshrl.u32 %v1000_v23, 16  ;;  %v10966_v1 = vld [vmem:[%s13238_s11 + $0x1e8] sm:$0x1] }
  0x95   : > { %11894 = vmatmul.mubr.msk.bf16.gmra.mrb[28].mxu1 %vm302_vm1, %v12989_v54  ;;  %12166 = vmatmul.mubr.msk.bf16.gmra.mrb[28].mxu0 %vm302_vm1, %v12990_v63  ;;  %v6061_v63 = vrot.slane %v6060_v48, 4  ;;  %v6093_v32 = vrot.slane %v6091_v22, 4  ;;  %v1244_v37 = vshll.u32 %v1000_v23, 16  ;;  %v6099_v41 = vrot.slane %v6097_v33, 5 }
  0x96   : > { %11899 = vmatprep.mubr.msk.bf16.mxu1 %vm302_vm1, %v13375_v40  ;;  %12171 = vmatprep.mubr.msk.bf16.mxu0 %vm302_vm1, %v13389_v62  ;;  %v997_v40 = vld [vmem:[%s13238_s11 + $0x180] sm:$0xf]  ;;  %v998_v62 = vld [vmem:[%s13238_s11 + $0x184] sm:$0xf]  ;;  %v6076_v19 = vsel %vm13357_vm4, %v6071_v12, %v6075_v3  ;;  %v1254_v48 = vshrl.u32 %v1001_v29, 16  ;;  %v6105_v3 = vshll.u32 %v10964_v45, 16 }
  0x97   : > { %v1217_v54 = vshrl.u32 %v997_v40, 16  ;;  %v1220_v58 = vshll.u32 %v997_v40, 16  ;;  %v1226_v60 = vshll.u32 %v998_v62, 16  ;;  %v1230_v9 = vshrl.u32 %v998_v62, 16  ;;  %v13579_v40 = vld [vmem:[%s14967_s1 + $0x8] sm:$0x3] }
  0x98   : > { %v6094_v39 = vor.u32 %v6093_v32, %v6089_v31  ;;  %v1250_v62 = vshll.u32 %v1001_v29, 16  ;;  %v6107_v12 = vrot.slane %v6105_v3, 5  ;;  %v6121_v18 = vshll.u32 %v10966_v1, 16  ;;  %v1008_v1 = vld [vmem:[%s13238_s11 + $0x218] sm:$0x1] }
  0x99   : > { %v1219_v4 = vrot.slane %v1217_v54, 4  ;;  %v1222_v7 = vrot.slane %v1220_v58, 5  ;;  %v1228_v8 = vrot.slane %v1226_v60, 5  ;;  %v1232_v14 = vrot.slane %v1230_v9, 4 }
  0x9a   : > { %v1260_v58 = vshll.u32 %v1002_v42, 16  ;;  %v6102_v60 = vshrl.u32 %v10964_v45, 16  ;;  %v1274_v23 = vshll.u32 %v1004_v10, 16 }
  0x9b   : > { %v1223_v13 = vor.u32 %v1222_v7, %v1219_v4  ;;  %v1233_v26 = vor.u32 %v1232_v14, %v1228_v8  ;;  %v6111_v4 = vshll.u32 %v10965_v50, 16 }
  0x9c   : > { %v1262_v9 = vrot.slane %v1260_v58, 5 }
  0x9d   : > { %11900 = vmatmul.mubr.msk.bf16.vlgmr.msra.gmra.mrb[0].mxu1 %vm302_vm1, %v13401_v21  ;;  %12172 = vmatmul.mubr.msk.bf16.vlgmr.msra.gmra.mrb[0].mxu0 %vm302_vm1, %v13415_v52  ;;  %v13561_v21 = vcombine.low %v1205_v55, %v1215_v6  ;;  %v1236_v52 = vshll.u32 %v999_v57, 16  ;;  %v1224_v25 = vrot.slane %v1223_v13, 4  ;;  %v1234_v35 = vrot.slane %v1233_v26, 4 }
  0x9e   : > { %11932 = vmatpush3.bf16.msra.mxu1 %v13336_v49  ;;  %12204 = vmatpush3.bf16.msra.mxu0 %v13340_v51  ;;  %v6066_v49 = vsel %vm13357_vm4, %v6061_v63, %v6065_v47  ;;  %v6081_v51 = vshll.u32 %v10961_v5, 16  ;;  %v1243_v47 = vrot.slane %v1241_v36, 4  ;;  %v6095_v55 = vrot.slane %v6094_v39, 4  ;;  %v1003_v5 = vld [vmem:[%s13238_s11 + $0x1e0] sm:$0xf] }
  0x9f   : > { %11903 = vmatprep.mubr.msk.bf16.mxu1 %vm302_vm1, %v13426_v2  ;;  %12175 = vmatprep.mubr.msk.bf16.mxu0 %vm302_vm1, %v13439_v27  ;;  %v1238_v2 = vrot.slane %v1236_v52, 5  ;;  %v13571_v24 = vcombine.low %v6066_v49, %v6076_v19  ;;  %v1229_v34 = vsel %vm13357_vm4, %v1224_v25, %v1228_v8  ;;  %v1256_v57 = vrot.slane %v1254_v48, 4  ;;  %v10967_v25 = vld [vmem:[%s13238_s11 + $0x210] sm:$0xf] }
  0xa0   : > { %v6083_v27 = vrot.slane %v6081_v51, 5  ;;  %12857 = vmatprep.subr.msk.bf16.mxu1 %vm351_vm0, %v13579_v40  ;;  %v6100_v63 = vsel %vm13357_vm4, %v6095_v55, %v6099_v41  ;;  %v6104_v49 = vrot.slane %v6102_v60, 4  ;;  %v6113_v52 = vrot.slane %v6111_v4, 5  ;;  %v1005_v51 = vld [vmem:[%s13238_s11 + $0x1e8] sm:$0x1] }
  0xa1   : > { %v1239_v46 = vsel %vm13357_vm4, %v1234_v35, %v1238_v2  ;;  %v6115_v13 = vshrl.u32 %v10965_v50, 16  ;;  %v1265_v19 = vshrl.u32 %v1003_v5, 16  ;;  %v1268_v22 = vshll.u32 %v1003_v5, 16  ;;  %v10969_v41 = vld [vmem:[%s13238_s11 + $0x218] sm:$0x1] }
  0xa2   : > { %v6084_v38 = vor.u32 %v6083_v27, %v6080_v28  ;;  %v13596_v53 = vcombine.low %v1229_v34, %v1239_v46  ;;  %v6108_v2 = vor.u32 %v6107_v12, %v6104_v49  ;;  %v6123_v28 = vrot.slane %v6121_v18, 5  ;;  %v1007_v55 = vld [vmem:[%s13238_s11 + $0x214] sm:$0xf] }
  0xa3   : > { %v6117_v20 = vrot.slane %v6115_v13, 4  ;;  %v1267_v29 = vrot.slane %v1265_v19, 4  ;;  %v1278_v27 = vshrl.u32 %v1004_v10, 16  ;;  %v1270_v33 = vrot.slane %v1268_v22, 5 }
  0xa4   : > { %v6085_v54 = vrot.slane %v6084_v38, 4  ;;  %v1276_v34 = vrot.slane %v1274_v23, 5  ;;  %v6126_v36 = vshrl.u32 %v10967_v25, 16  ;;  %v6129_v42 = vshll.u32 %v10967_v25, 16  ;;  %v1009_v25 = vld [vmem:[%s13238_s11 + $0x240] sm:$0xf] }
  0xa5   : > { %11904 = vmatmul.mubr.msk.bf16.gmra.mrb[4].mxu1 %vm302_vm1, %v13454_v59  ;;  %12176 = vmatmul.mubr.msk.bf16.gmra.mrb[4].mxu0 %vm302_vm1, %v13465_v11  ;;  %v1246_v59 = vrot.slane %v1244_v37, 5  ;;  %v1252_v11 = vrot.slane %v1250_v62, 5  ;;  %v6118_v32 = vor.u32 %v6117_v20, %v6113_v52  ;;  %v1280_v35 = vrot.slane %v1278_v27, 4 }
  0xa6   : > { %11907 = vmatprep.mubr.msk.bf16.mxu1 %vm302_vm1, %v13480_v43  ;;  %12179 = vmatprep.mubr.msk.bf16.mxu0 %vm302_vm1, %v13491_v61  ;;  %v13601_v43 = vld [vmem:[%s14967_s1 + $0x18] sm:$0x3]  ;;  %v6090_v61 = vsel %vm13357_vm4, %v6085_v54, %v6089_v31  ;;  %v6109_v31 = vrot.slane %v6108_v2, 4  ;;  %v1271_v39 = vor.u32 %v1270_v33, %v1267_v29  ;;  %v6128_v45 = vrot.slane %v6126_v36, 4 }
  0xa7   : > { %v1247_v56 = vor.u32 %v1246_v59, %v1243_v47  ;;  %12865 = vmatprep.subr.msk.bf16.mxu0 %vm351_vm0, %v13601_v43  ;;  %v13611_v6 = vcombine.low %v6090_v61, %v6100_v63  ;;  %v1257_v8 = vor.u32 %v1256_v57, %v1252_v11  ;;  %v6119_v38 = vrot.slane %v6118_v32, 4  ;;  %v1006_v47 = vld [vmem:[%s13238_s11 + $0x210] sm:$0xf] }
  0xa8   : > { %v6114_v37 = vsel %vm13357_vm4, %v6109_v31, %v6113_v52  ;;  %v1272_v48 = vrot.slane %v1271_v39, 4  ;;  %v6131_v50 = vrot.slane %v6129_v42, 5  ;;  %v6145_v58 = vshll.u32 %v10969_v41, 16  ;;  %v1010_v31 = vld [vmem:[%s13238_s11 + $0x244] sm:$0xf] }
  0xa9   : > { %v1248_v7 = vrot.slane %v1247_v56, 4  ;;  %v1258_v15 = vrot.slane %v1257_v8, 4  ;;  %v6124_v59 = vsel %vm13357_vm4, %v6119_v38, %v6123_v28  ;;  %v1289_v3 = vshrl.u32 %v1006_v47, 16  ;;  %v10970_v8 = vld [vmem:[%s13238_s11 + $0x240] sm:$0xf] }
  0xaa   : > { %v1277_v60 = vsel %vm13357_vm4, %v1272_v48, %v1276_v34  ;;  %v6132_v61 = vor.u32 %v6131_v50, %v6128_v45  ;;  %v6147_v5 = vrot.slane %v6145_v58, 5  ;;  %v6150_v19 = vshrl.u32 %v10970_v8, 16  ;;  %v1011_v41 = vld [vmem:[%s13238_s11 + $0x248] sm:$0x1] }
  0xab   : > { %v1253_v14 = vsel %vm13357_vm4, %v1248_v7, %v1252_v11  ;;  %v1263_v26 = vsel %vm13357_vm4, %v1258_v15, %v1262_v9  ;;  %v10995_v11 = vcombine.low %v6114_v37, %v6124_v59  ;;  %v1298_v7 = vshll.u32 %v1007_v55, 16 }
  0xac   : > { %v6133_v10 = vrot.slane %v6132_v61, 4  ;;  %v1291_v12 = vrot.slane %v1289_v3, 4  ;;  %v6153_v2 = vshll.u32 %v10970_v8, 16  ;;  %v6152_v28 = vrot.slane %v6150_v19, 4  ;;  %v1012_v8 = vld [vmem:[%s13238_s11 + $0x270] sm:$0xf] }
  0xad   : > { %11908 = vmatmul.mubr.msk.bf16.gmra.mrb[8].mxu1 %vm302_vm1, %v13505_v30  ;;  %12180 = vmatmul.mubr.msk.bf16.gmra.mrb[8].mxu0 %vm302_vm1, %v13520_v0  ;;  %v13628_v30 = vcombine.low %v1253_v14, %v1263_v26  ;;  %v10968_v0 = vld [vmem:[%s13238_s11 + $0x214] sm:$0xf]  ;;  %v1300_v13 = vrot.slane %v1298_v7, 5  ;;  %v1308_v14 = vshll.u32 %v1008_v1, 16  ;;  %v1313_v37 = vshrl.u32 %v1009_v25, 16 }
  0xae   : > { %11911 = vmatprep.mubr.msk.bf16.mxu1 %vm302_vm1, %v13529_v17  ;;  %12183 = vmatprep.mubr.msk.bf16.mxu0 %vm302_vm1, %v13544_v44  ;;  %v1284_v17 = vshll.u32 %v1005_v51, 16  ;;  %v1281_v44 = vor.u32 %v1280_v35, %v1276_v34  ;;  %v6135_v46 = vshll.u32 %v10968_v0, 16  ;;  %v6139_v54 = vshrl.u32 %v10968_v0, 16  ;;  %v10972_v51 = vld [vmem:[%s13238_s11 + $0x248] sm:$0x1] }
  0xaf   : > { %v1310_v22 = vrot.slane %v1308_v14, 5  ;;  %v6155_v29 = vrot.slane %v6153_v2, 5  ;;  %v6169_v36 = vshll.u32 %v10972_v51, 16  ;;  %v1316_v42 = vshll.u32 %v1009_v25, 16  ;;  %v10976_v25 = vld [vmem:[%s13238_s11 + $0x2a0] sm:$0xf] }
  0xb0   : > { %v1286_v62 = vrot.slane %v1284_v17, 5  ;;  %v1282_v56 = vrot.slane %v1281_v44, 4  ;;  %v6137_v57 = vrot.slane %v6135_v46, 5  ;;  %v6141_v63 = vrot.slane %v6139_v54, 4 }
  0xb1   : > { %v6156_v35 = vor.u32 %v6155_v29, %v6152_v28  ;;  %v1322_v44 = vshll.u32 %v1010_v31, 16  ;;  %v6171_v45 = vrot.slane %v6169_v36, 5  ;;  %v1315_v46 = vrot.slane %v1313_v37, 4 }
  0xb2   : > { %v1287_v4 = vsel %vm13357_vm4, %v1282_v56, %v1286_v62  ;;  %v6142_v49 = vor.u32 %v6141_v63, %v6137_v57  ;;  %v6138_v15 = vsel %vm13357_vm4, %v6133_v10, %v6137_v57  ;;  %v1318_v48 = vrot.slane %v1316_v42, 5  ;;  %v10975_v63 = vld [vmem:[%s13238_s11 + $0x278] sm:$0x1] }
  0xb3   : > { %v10412_v9 = vcombine.low %v1277_v60, %v1287_v4  ;;  %v1324_v50 = vrot.slane %v1322_v44, 5  ;;  %v1326_v54 = vshrl.u32 %v1010_v31, 16  ;;  %v1332_v58 = vshll.u32 %v1011_v41, 16  ;;  %v10977_v31 = vld [vmem:[%s13238_s11 + $0x2a4] sm:$0xf] }
  0xb4   : > { %v6143_v18 = vrot.slane %v6142_v49, 4  ;;  %v1319_v60 = vor.u32 %v1318_v48, %v1315_v46  ;;  %v6193_v14 = vshll.u32 %v10975_v63, 16  ;;  %v1337_v51 = vshrl.u32 %v1012_v8, 16  ;;  %v10978_v41 = vld [vmem:[%s13238_s11 + $0x2a8] sm:$0x1] }
  0xb5   : > { %11912 = vmatmul.mubr.msk.bf16.gmra.mrb[12].mxu1 %vm302_vm1, %v13561_v21  ;;  %12184 = vmatmul.mubr.msk.bf16.gmra.mrb[12].mxu0 %vm302_vm1, %v13571_v24  ;;  %v1292_v21 = vshll.u32 %v1006_v47, 16  ;;  %v10971_v24 = vld [vmem:[%s13238_s11 + $0x244] sm:$0xf]  ;;  %v10973_v47 = vld [vmem:[%s13238_s11 + $0x270] sm:$0xf]  ;;  %v1328_v61 = vrot.slane %v1326_v54, 4 }
  0xb6   : > { %11915 = vmatprep.mubr.msk.bf16.mxu1 %vm302_vm1, %v13596_v53  ;;  %12187 = vmatprep.mubr.msk.bf16.mxu0 %vm302_vm1, %v13611_v6  ;;  %v1302_v53 = vshrl.u32 %v1007_v55, 16  ;;  %v6159_v23 = vshll.u32 %v10971_v24, 16  ;;  %v6148_v26 = vsel %vm13357_vm4, %v6143_v18, %v6147_v5  ;;  %v6163_v27 = vshrl.u32 %v10971_v24, 16  ;;  %v10974_v55 = vld [vmem:[%s13238_s11 + $0x274] sm:$0xf] }
  0xb7   : > { %v1294_v52 = vrot.slane %v1292_v21, 5  ;;  %v10996_v32 = vcombine.low %v6138_v15, %v6148_v26  ;;  %v6174_v1 = vshrl.u32 %v10973_v47, 16  ;;  %v6177_v3 = vshll.u32 %v10973_v47, 16  ;;  %v1013_v24 = vld [vmem:[%s13238_s11 + $0x274] sm:$0xf] }
  0xb8   : > { %v1304_v6 = vrot.slane %v1302_v53, 4  ;;  %v6161_v34 = vrot.slane %v6159_v23, 5  ;;  %v6165_v17 = vrot.slane %v6163_v27, 4  ;;  %v1334_v5 = vrot.slane %v1332_v58, 5  ;;  %v1017_v58 = vld [vmem:[%s13238_s11 + $0x2a8] sm:$0x1] }
  0xb9   : > { %v1295_v20 = vor.u32 %v1294_v52, %v1291_v12  ;;  %v6183_v21 = vshll.u32 %v10974_v55, 16  ;;  %v6187_v7 = vshrl.u32 %v10974_v55, 16  ;;  %v1320_v10 = vrot.slane %v1319_v60, 4 }
  0xba   : > { %v1305_v0 = vor.u32 %v1304_v6, %v1300_v13  ;;  %v6166_v62 = vor.u32 %v6165_v17, %v6161_v34  ;;  %v1329_v49 = vor.u32 %v1328_v61, %v1324_v50  ;;  %v6176_v12 = vrot.slane %v6174_v1, 4 }
  0xbb   : > { %v1296_v33 = vrot.slane %v1295_v20, 4  ;;  %v6179_v52 = vrot.slane %v6177_v3, 5  ;;  %v6189_v53 = vrot.slane %v6187_v7, 4  ;;  %v1325_v15 = vsel %vm13357_vm4, %v1320_v10, %v1324_v50 }
  0xbc   : > { %v1306_v39 = vrot.slane %v1305_v0, 4  ;;  %v6167_v57 = vrot.slane %v6166_v62, 4  ;;  %v1330_v18 = vrot.slane %v1329_v49, 4  ;;  %v1340_v19 = vshll.u32 %v1012_v8, 16 }
  0xbd   : > { %11916 = vmatmul.mubr.msk.bf16.gmra.mrb[16].mxu1 %vm302_vm1, %v13628_v30  ;;  %12188 = vmatmul.mubr.msk.bf16.gmra.mrb[16].mxu0 %vm302_vm1, %v10995_v11  ;;  %v1301_v38 = vsel %vm13357_vm4, %v1296_v33, %v1300_v13  ;;  %v6157_v30 = vrot.slane %v6156_v35, 4  ;;  %v6185_v13 = vrot.slane %v6183_v21, 5  ;;  %v6180_v2 = vor.u32 %v6179_v52, %v6176_v12 }
  0xbe   : > { %11919 = vmatprep.mubr.msk.bf16.mxu1 %vm302_vm1, %v10412_v9  ;;  %12191 = vmatprep.mubr.msk.bf16.mxu0 %vm302_vm1, %v10996_v32  ;;  %v1311_v59 = vsel %vm13357_vm4, %v1306_v39, %v1310_v22  ;;  %v6172_v4 = vsel %vm13357_vm4, %v6167_v57, %v6171_v45  ;;  %v6195_v6 = vrot.slane %v6193_v14, 5  ;;  %v1014_v22 = vld [vmem:[%s13238_s11 + $0x278] sm:$0x1]  ;;  %v1346_v23 = vshll.u32 %v1013_v24, 16 }
  0xbf   : > { %v10413_v11 = vcombine.low %v1301_v38, %v1311_v59  ;;  %v6162_v56 = vsel %vm13357_vm4, %v6157_v30, %v6161_v34  ;;  %v6190_v20 = vor.u32 %v6189_v53, %v6185_v13  ;;  %v1335_v26 = vsel %vm13357_vm4, %v1330_v18, %v1334_v5  ;;  %v1015_v30 = vld [vmem:[%s13238_s11 + $0x2a0] sm:$0xf]  ;;  %v1016_v59 = vld [vmem:[%s13238_s11 + $0x2a4] sm:$0xf] }
  0xc0   : > { %v10997_v9 = vcombine.low %v6162_v56, %v6172_v4  ;;  %v1339_v28 = vrot.slane %v1337_v51, 4  ;;  %v1342_v29 = vrot.slane %v1340_v19, 5  ;;  %v1350_v27 = vshrl.u32 %v1013_v24, 16  ;;  %v10979_v4 = vld [vmem:[%s13238_s11 + $0x2d0] sm:$0xf] }
  0xc1   : > { %v10414_v32 = vcombine.low %v1325_v15, %v1335_v26  ;;  %v6181_v33 = vrot.slane %v6180_v2, 4  ;;  %v6191_v0 = vrot.slane %v6190_v20, 4  ;;  %v1348_v34 = vrot.slane %v1346_v23, 5  ;;  %v10980_v24 = vld [vmem:[%s13238_s11 + $0x2d4] sm:$0xf] }
  0xc2   : > { %v1343_v35 = vor.u32 %v1342_v29, %v1339_v28  ;;  %v1352_v17 = vrot.slane %v1350_v27, 4  ;;  %v1356_v36 = vshll.u32 %v1014_v22, 16  ;;  %v6198_v37 = vshrl.u32 %v10976_v25, 16  ;;  %v10981_v19 = vld [vmem:[%s13238_s11 + $0x2d8] sm:$0x1] }
  0xc3   : > { %v6186_v38 = vsel %vm13357_vm4, %v6181_v33, %v6185_v13  ;;  %v6196_v39 = vsel %vm13357_vm4, %v6191_v0, %v6195_v6  ;;  %v6201_v42 = vshll.u32 %v10976_v25, 16  ;;  %v6207_v44 = vshll.u32 %v10977_v31, 16  ;;  %v1018_v25 = vld [vmem:[%s13238_s11 + $0x2d0] sm:$0xf] }
  0xc4   : > { %v10998_v62 = vcombine.low %v6186_v38, %v6196_v39  ;;  %v1344_v45 = vrot.slane %v1343_v35, 4  ;;  %v1353_v46 = vor.u32 %v1352_v17, %v1348_v34  ;;  %v1358_v47 = vrot.slane %v1356_v36, 5 }
  0xc5   : > { %11920 = vmatmul.mubr.msk.bf16.gmra.mrb[20].mxu1 %vm302_vm1, %v10413_v11  ;;  %12192 = vmatmul.mubr.msk.bf16.gmra.mrb[20].mxu0 %vm302_vm1, %v10997_v9  ;;  %v6200_v48 = vrot.slane %v6198_v37, 4  ;;  %v6203_v50 = vrot.slane %v6201_v42, 5  ;;  %v6209_v54 = vrot.slane %v6207_v44, 5  ;;  %v6211_v55 = vshrl.u32 %v10977_v31, 16  ;;  %v1019_v31 = vld [vmem:[%s13238_s11 + $0x2d4] sm:$0xf] }
  0xc6   : > { %11923 = vmatprep.mubr.msk.bf16.mxu1 %vm302_vm1, %v10414_v32  ;;  %12195 = vmatprep.mubr.msk.bf16.mxu0 %vm302_vm1, %v10998_v62  ;;  %v1349_v11 = vsel %vm13357_vm4, %v1344_v45, %v1348_v34  ;;  %v1354_v56 = vrot.slane %v1353_v46, 4  ;;  %v6217_v57 = vshll.u32 %v10978_v41, 16  ;;  %v1361_v60 = vshrl.u32 %v1015_v30, 16  ;;  %v1020_v37 = vld [vmem:[%s13238_s11 + $0x2d8] sm:$0x1] }
  0xc7   : > { %v6204_v61 = vor.u32 %v6203_v50, %v6200_v48  ;;  %v6213_v63 = vrot.slane %v6211_v55, 4  ;;  %v1364_v1 = vshll.u32 %v1015_v30, 16  ;;  %v1370_v3 = vshll.u32 %v1016_v59, 16  ;;  %v10982_v30 = vld [vmem:[%s13238_s11 + $0x300] sm:$0xf] }
  0xc8   : > { %v1359_v5 = vsel %vm13357_vm4, %v1354_v56, %v1358_v47  ;;  %v6219_v21 = vrot.slane %v6217_v57, 5  ;;  %v1363_v7 = vrot.slane %v1361_v60, 4  ;;  %v1374_v8 = vshrl.u32 %v1016_v59, 16  ;;  %v10983_v59 = vld [vmem:[%s13238_s11 + $0x304] sm:$0xf] }
  0xc9   : > { %v10415_v9 = vcombine.low %v1349_v11, %v1359_v5  ;;  %v6205_v10 = vrot.slane %v6204_v61, 4  ;;  %v6214_v49 = vor.u32 %v6213_v63, %v6209_v54  ;;  %v1366_v12 = vrot.slane %v1364_v1, 5  ;;  %v10984_v57 = vld [vmem:[%s13238_s11 + $0x308] sm:$0x1] }
  0xca   : > { %v1372_v52 = vrot.slane %v1370_v3, 5  ;;  %v1376_v13 = vrot.slane %v1374_v8, 4  ;;  %v1380_v53 = vshll.u32 %v1017_v58, 16  ;;  %v6222_v14 = vshrl.u32 %v10979_v4, 16 }
  0xcb   : > { %v6210_v15 = vsel %vm13357_vm4, %v6205_v10, %v6209_v54  ;;  %v6215_v18 = vrot.slane %v6214_v49, 4  ;;  %v1367_v51 = vor.u32 %v1366_v12, %v1363_v7  ;;  %v6225_v2 = vshll.u32 %v10979_v4, 16  ;;  %v10434_v4 = vld [vmem:[%s13238_s11 + $0xc] sm:$0xf] }
  0xcc   : > { %v1377_v20 = vor.u32 %v1376_v13, %v1372_v52  ;;  %v1382_v6 = vrot.slane %v1380_v53, 5  ;;  %v6224_v22 = vrot.slane %v6222_v14, 4  ;;  %v6231_v23 = vshll.u32 %v10980_v24, 16 }
  0xcd   : > { %11924 = vmatmul.mubr.msk.bf16.gmra.mrb[24].mxu1 %vm302_vm1, %v10415_v9  ;;  %v6220_v26 = vsel %vm13357_vm4, %v6215_v18, %v6219_v21  ;;  %v1368_v28 = vrot.slane %v1367_v51, 4  ;;  %v6227_v29 = vrot.slane %v6225_v2, 5  ;;  %v6235_v27 = vshrl.u32 %v10980_v24, 16  ;;  %v10435_v9 = vld [vmem:[%s13238_s11 + $0x10] sm:$0xf] }
  0xce   : > { %v10999_v32 = vcombine.low %v6210_v15, %v6220_v26  ;;  %v1378_v33 = vrot.slane %v1377_v20, 4  ;;  %v6233_v0 = vrot.slane %v6231_v23, 5  ;;  %v6241_v34 = vshll.u32 %v10981_v19, 16  ;;  %v10436_v51 = vld [vmem:[%s13238_s11 + $0x14] sm:$0x1] }
  0xcf   : > { %v1373_v35 = vsel %vm13357_vm4, %v1368_v28, %v1372_v52  ;;  %v6228_v17 = vor.u32 %v6227_v29, %v6224_v22  ;;  %v6237_v36 = vrot.slane %v6235_v27, 4  ;;  %v1385_v38 = vshrl.u32 %v1018_v25, 16 }
  0xd0   : > { %12196 = vmatmul.mubr.msk.bf16.gmra.mrb[24].mxu0 %vm302_vm1, %v10999_v32  ;;  %v1383_v39 = vsel %vm13357_vm4, %v1378_v33, %v1382_v6  ;;  %v6243_v41 = vrot.slane %v6241_v34, 5  ;;  %v1388_v42 = vshll.u32 %v1018_v25, 16  ;;  %v1394_v44 = vshll.u32 %v1019_v31, 16  ;;  %v11018_v25 = vld [vmem:[%s13238_s11 + $0x3c] sm:$0xf] }
  0xd1   : > { %v10416_v62 = vcombine.low %v1373_v35, %v1383_v39  ;;  %v6229_v45 = vrot.slane %v6228_v17, 4  ;;  %v6238_v46 = vor.u32 %v6237_v36, %v6233_v0  ;;  %v1387_v47 = vrot.slane %v1385_v38, 4  ;;  %v11020_v36 = vld [vmem:[%s13238_s11 + $0x44] sm:$0x1] }
  0xd2   : > { %v1390_v48 = vrot.slane %v1388_v42, 5  ;;  %v1396_v50 = vrot.slane %v1394_v44, 5  ;;  %v1398_v54 = vshrl.u32 %v1019_v31, 16  ;;  %v1404_v55 = vshll.u32 %v1020_v37, 16  ;;  %v11019_v31 = vld [vmem:[%s13238_s11 + $0x40] sm:$0xf] }
  0xd3   : > { %11927 = vmatprep.mubr.msk.bf16.mxu1 %vm302_vm1, %v10416_v62  ;;  %v6234_v11 = vsel %vm13357_vm4, %v6229_v45, %v6233_v0  ;;  %v6239_v56 = vrot.slane %v6238_v46, 4  ;;  %v6246_v58 = vshrl.u32 %v10982_v30, 16  ;;  %v6249_v60 = vshll.u32 %v10982_v30, 16  ;;  %v10437_v30 = vld [vmem:[%s13238_s11 + $0x3c] sm:$0xf] }
  0xd4   : > { %v1391_v61 = vor.u32 %v1390_v48, %v1387_v47  ;;  %v1400_v63 = vrot.slane %v1398_v54, 4  ;;  %v1406_v1 = vrot.slane %v1404_v55, 5  ;;  %v6255_v3 = vshll.u32 %v10983_v59, 16 }
  0xd5   : > { %v6244_v5 = vsel %vm13357_vm4, %v6239_v56, %v6243_v41  ;;  %v6248_v21 = vrot.slane %v6246_v58, 4  ;;  %v6251_v7 = vrot.slane %v6249_v60, 5  ;;  %v6259_v8 = vshrl.u32 %v10983_v59, 16  ;;  %v10438_v59 = vld [vmem:[%s13238_s11 + $0x40] sm:$0xf] }
  0xd6   : > { %v11000_v10 = vcombine.low %v6234_v11, %v6244_v5  ;;  %v1392_v49 = vrot.slane %v1391_v61, 4  ;;  %v1401_v12 = vor.u32 %v1400_v63, %v1396_v50  ;;  %v6257_v24 = vrot.slane %v6255_v3, 5 }
  0xd7   : > { %v6252_v52 = vor.u32 %v6251_v7, %v6248_v21  ;;  %v6261_v13 = vrot.slane %v6259_v8, 4  ;;  %v6265_v53 = vshll.u32 %v10984_v57, 16  ;;  %v1815_v14 = vshrl.u32 %v10434_v4, 16 }
  0xd8   : > { %12199 = vmatprep.mubr.msk.bf16.mxu0 %vm302_vm1, %v11000_v10  ;;  %v1397_v15 = vsel %vm13357_vm4, %v1392_v49, %v1396_v50  ;;  %v1402_v18 = vrot.slane %v1401_v12, 4  ;;  %v1818_v19 = vshll.u32 %v10434_v4, 16  ;;  %v1824_v2 = vshll.u32 %v10435_v9, 16  ;;  %v11021_v4 = vld [vmem:[%s13238_s11 + $0x6c] sm:$0xf] }
  0xd9   : > { %v6253_v20 = vrot.slane %v6252_v52, 4  ;;  %v6262_v6 = vor.u32 %v6261_v13, %v6257_v24  ;;  %v6267_v22 = vrot.slane %v6265_v53, 5  ;;  %v1817_v23 = vrot.slane %v1815_v14, 4  ;;  %v11023_v52 = vld [vmem:[%s13238_s11 + $0x74] sm:$0x1] }
  0xda   : > { %v1407_v26 = vsel %vm13357_vm4, %v1402_v18, %v1406_v1  ;;  %v1820_v28 = vrot.slane %v1818_v19, 5  ;;  %v1826_v29 = vrot.slane %v1824_v2, 5  ;;  %v1828_v27 = vshrl.u32 %v10435_v9, 16  ;;  %v10439_v1 = vld [vmem:[%s13238_s11 + $0x44] sm:$0x1] }
  0xdb   : > { %v10417_v32 = vcombine.low %v1397_v15, %v1407_v26  ;;  %v6258_v33 = vsel %vm13357_vm4, %v6253_v20, %v6257_v24  ;;  %v6263_v0 = vrot.slane %v6262_v6, 4  ;;  %v1834_v34 = vshll.u32 %v10436_v51, 16  ;;  %v11022_v9 = vld [vmem:[%s13238_s11 + $0x70] sm:$0xf]  ;;  %v10440_v18 = vld [vmem:[%s13238_s11 + $0x6c] sm:$0xf] }
  0xdc   : > { %v1821_v35 = vor.u32 %v1820_v28, %v1817_v23  ;;  %v1830_v17 = vrot.slane %v1828_v27, 4  ;;  %v6676_v37 = vshrl.u32 %v11018_v25, 16  ;;  %v6679_v38 = vshll.u32 %v11018_v25, 16  ;;  %v10441_v6 = vld [vmem:[%s13238_s11 + $0x70] sm:$0xf] }
  0xdd   : > { %11928 = vmatmul.mubr.msk.bf16.gmra.mrb[28].mxu1 %vm302_vm1, %v10417_v32  ;;  %v6268_v39 = vsel %vm13357_vm4, %v6263_v0, %v6267_v22  ;;  %v1836_v41 = vrot.slane %v1834_v34, 5  ;;  %v6685_v42 = vshll.u32 %v11019_v31, 16  ;;  %v6689_v44 = vshrl.u32 %v11019_v31, 16  ;;  %v10442_v31 = vld [vmem:[%s13238_s11 + $0x74] sm:$0x1] }
  0xde   : > { %v11001_v62 = vcombine.low %v6258_v33, %v6268_v39  ;;  %v1822_v45 = vrot.slane %v1821_v35, 4  ;;  %v1831_v46 = vor.u32 %v1830_v17, %v1826_v29  ;;  %v6678_v47 = vrot.slane %v6676_v37, 4  ;;  %v11024_v35 = vld [vmem:[%s13238_s11 + $0x9c] sm:$0xf]  ;;  %v11025_v39 = vld [vmem:[%s13238_s11 + $0xa0] sm:$0xf] }
  0xdf   : > { %v6681_v48 = vrot.slane %v6679_v38, 5  ;;  %v6687_v50 = vrot.slane %v6685_v42, 5  ;;  %v6691_v54 = vrot.slane %v6689_v44, 4  ;;  %v6695_v55 = vshll.u32 %v11020_v36, 16 }
  0xe0   : > { %12200 = vmatmul.mubr.msk.bf16.gmra.mrb[28].mxu0 %vm302_vm1, %v11001_v62  ;;  %v1827_v11 = vsel %vm13357_vm4, %v1822_v45, %v1826_v29  ;;  %v1832_v56 = vrot.slane %v1831_v46, 4  ;;  %v1839_v57 = vshrl.u32 %v10437_v30, 16  ;;  %v1842_v58 = vshll.u32 %v10437_v30, 16  ;;  %v10612_v62 = vld [vmem:[%s14967_s1 + $0xa] sm:$0x3] }
  0xe1   : > { %v6682_v60 = vor.u32 %v6681_v48, %v6678_v47  ;;  %v6692_v61 = vor.u32 %v6691_v54, %v6687_v50  ;;  %v6697_v63 = vrot.slane %v6695_v55, 5  ;;  %v1848_v3 = vshll.u32 %v10438_v59, 16  ;;  %v11026_v55 = vld [vmem:[%s13238_s11 + $0xa4] sm:$0x1] }
  0xe2   : > { %v1837_v5 = vsel %vm13357_vm4, %v1832_v56, %v1836_v41  ;;  %v1841_v21 = vrot.slane %v1839_v57, 4  ;;  %v1844_v7 = vrot.slane %v1842_v58, 5  ;;  %v1852_v8 = vshrl.u32 %v10438_v59, 16 }
  0xe3   : > { %v10483_v10 = vcombine.low %v1827_v11, %v1837_v5  ;;  %v6683_v49 = vrot.slane %v6682_v60, 4  ;;  %v6693_v12 = vrot.slane %v6692_v61, 4  ;;  %v1850_v24 = vrot.slane %v1848_v3, 5  ;;  %v10443_v11 = vld [vmem:[%s13238_s11 + $0x9c] sm:$0xf] }
  0xe4   : > { %v1845_v13 = vor.u32 %v1844_v7, %v1841_v21  ;;  %v1854_v53 = vrot.slane %v1852_v8, 4  ;;  %v1858_v14 = vshll.u32 %v10439_v1, 16  ;;  %v2722_v15 = vsel %vm351_vm0, %v13579_v40, 0  ;;  %v10444_v61 = vld [vmem:[%s13238_s11 + $0xa0] sm:$0xf] }
  0xe5   : > { %11933 = vmatprep.mubr.msk.bf16.mxu1 %vm302_vm1, %v10483_v10  ;;  %v6688_v51 = vsel %vm13357_vm4, %v6683_v49, %v6687_v50  ;;  %v6698_v19 = vsel %vm13357_vm4, %v6693_v12, %v6697_v63  ;;  %v6700_v2 = vshrl.u32 %v11021_v4, 16  ;;  %v6703_v20 = vshll.u32 %v11021_v4, 16 }
  0xe6   : > { %v11067_v22 = vcombine.low %v6688_v51, %v6698_v19  ;;  %v1846_v23 = vrot.slane %v1845_v13, 4  ;;  %v1855_v25 = vor.u32 %v1854_v53, %v1850_v24  ;;  %v1860_v26 = vrot.slane %v1858_v14, 5 }
  0xe7   : > { %v6702_v40 = vrot.slane %v6700_v2, 4  ;;  %v6705_v28 = vrot.slane %v6703_v20, 5  ;;  %v6709_v29 = vshll.u32 %v11022_v9, 16  ;;  %v6713_v27 = vshrl.u32 %v11022_v9, 16 }
  0xe8   : > { %12205 = vmatprep.mubr.msk.bf16.mxu0 %vm302_vm1, %v11067_v22  ;;  %v1851_v32 = vsel %vm13357_vm4, %v1846_v23, %v1850_v24  ;;  %v1856_v33 = vrot.slane %v1855_v25, 4  ;;  %v6719_v0 = vshll.u32 %v11023_v52, 16  ;;  %v7583_v34 = vsel %vm351_vm0, %v13601_v43, 0  ;;  %v10445_v24 = vld [vmem:[%s13238_s11 + $0xa4] sm:$0x1] }
  0xe9   : > { %v6706_v17 = vor.u32 %v6705_v28, %v6702_v40  ;;  %v6711_v36 = vrot.slane %v6709_v29, 5  ;;  %v6715_v37 = vrot.slane %v6713_v27, 4  ;;  %v1863_v38 = vshrl.u32 %v10440_v18, 16 }
  0xea   : > { %v1861_v41 = vsel %vm13357_vm4, %v1856_v33, %v1860_v26  ;;  %v6721_v42 = vrot.slane %v6719_v0, 5  ;;  %v1866_v44 = vshll.u32 %v10440_v18, 16  ;;  %v1872_v30 = vshll.u32 %v10441_v6, 16  ;;  %v11196_v18 = vld [vmem:[%s14967_s1 + $0x1a] sm:$0x3] }
  0xeb   : > { %v10484_v43 = vcombine.low %v1851_v32, %v1861_v41  ;;  %v6707_v45 = vrot.slane %v6706_v17, 4  ;;  %v6716_v46 = vor.u32 %v6715_v37, %v6711_v36  ;;  %v1865_v47 = vrot.slane %v1863_v38, 4 }
  0xec   : > { %v1868_v59 = vrot.slane %v1866_v44, 5  ;;  %v1874_v48 = vrot.slane %v1872_v30, 5  ;;  %v1876_v50 = vshrl.u32 %v10441_v6, 16  ;;  %v1882_v54 = vshll.u32 %v10442_v31, 16  ;;  %v11028_v6 = vld [vmem:[%s13238_s11 + $0xd0] sm:$0xf] }
  0xed   : > { %11934 = vmatmul.mubr.msk.bf16.vlgmr.msra.gmra.mrb[0].mxu1 %vm302_vm1, %v10484_v43  ;;  %v6712_v56 = vsel %vm13357_vm4, %v6707_v45, %v6711_v36  ;;  %v6717_v57 = vrot.slane %v6716_v46, 4  ;;  %v6724_v58 = vshrl.u32 %v11024_v35, 16  ;;  %v6727_v60 = vshll.u32 %v11024_v35, 16  ;;  %v11029_v31 = vld [vmem:[%s13238_s11 + $0xd4] sm:$0x1] }
  0xee   : > { %11966 = vmatpush3.bf16.msra.mxu1 %v2722_v15  ;;  %v1869_v63 = vor.u32 %v1868_v59, %v1865_v47  ;;  %v1878_v1 = vrot.slane %v1876_v50, 4  ;;  %v1884_v3 = vrot.slane %v1882_v54, 5  ;;  %v6733_v4 = vshll.u32 %v11025_v39, 16  ;;  %v11027_v15 = vld [vmem:[%s13238_s11 + $0xcc] sm:$0xf] }
  0xef   : > { %v6722_v5 = vsel %vm13357_vm4, %v6717_v57, %v6721_v42  ;;  %v6726_v21 = vrot.slane %v6724_v58, 4  ;;  %v6729_v7 = vrot.slane %v6727_v60, 5  ;;  %v6737_v8 = vshrl.u32 %v11025_v39, 16  ;;  %12858 = vmatprep.subr.msk.bf16.mxu1 %vm351_vm0, %v10612_v62  ;;  %v10446_v35 = vld [vmem:[%s13238_s11 + $0xcc] sm:$0xf] }
  0xf0   : > { %v11068_v9 = vcombine.low %v6712_v56, %v6722_v5  ;;  %v1870_v10 = vrot.slane %v1869_v63, 4  ;;  %v1879_v49 = vor.u32 %v1878_v1, %v1874_v48  ;;  %v6735_v12 = vrot.slane %v6733_v4, 5  ;;  %v10447_v46 = vld [vmem:[%s13238_s11 + $0xd0] sm:$0xf]  ;;  %v10448_v54 = vld [vmem:[%s13238_s11 + $0xd4] sm:$0x1] }
  0xf1   : > { %v6730_v52 = vor.u32 %v6729_v7, %v6726_v21  ;;  %v6739_v13 = vrot.slane %v6737_v8, 4  ;;  %v6743_v53 = vshll.u32 %v11026_v55, 16  ;;  %v1887_v14 = vshrl.u32 %v10443_v11, 16  ;;  %v11030_v55 = vld [vmem:[%s13238_s11 + $0xfc] sm:$0xf] }
  0xf2   : > { %12206 = vmatmul.mubr.msk.bf16.vlgmr.msra.gmra.mrb[0].mxu0 %vm302_vm1, %v11068_v9  ;;  %v1875_v51 = vsel %vm13357_vm4, %v1870_v10, %v1874_v48  ;;  %v1880_v19 = vrot.slane %v1879_v49, 4  ;;  %v1890_v2 = vshll.u32 %v10443_v11, 16  ;;  %v1896_v20 = vshll.u32 %v10444_v61, 16  ;;  %v11031_v60 = vld [vmem:[%s13238_s11 + $0x100] sm:$0xf] }
  0xf3   : > { %12238 = vmatpush3.bf16.msra.mxu0 %v7583_v34  ;;  %v6731_v22 = vrot.slane %v6730_v52, 4  ;;  %v6740_v23 = vor.u32 %v6739_v13, %v6735_v12  ;;  %v6745_v25 = vrot.slane %v6743_v53, 5  ;;  %v1889_v26 = vrot.slane %v1887_v14, 4 }
  0xf4   : > { %v1885_v40 = vsel %vm13357_vm4, %v1880_v19, %v1884_v3  ;;  %v1892_v28 = vrot.slane %v1890_v2, 5  ;;  %v1898_v29 = vrot.slane %v1896_v20, 5  ;;  %v1900_v27 = vshrl.u32 %v10444_v61, 16  ;;  %12866 = vmatprep.subr.msk.bf16.mxu0 %vm351_vm0, %v11196_v18 }
  0xf5   : > { %v10485_v32 = vcombine.low %v1875_v51, %v1885_v40  ;;  %v6736_v33 = vsel %vm13357_vm4, %v6731_v22, %v6735_v12  ;;  %v6741_v0 = vrot.slane %v6740_v23, 4  ;;  %v1906_v34 = vshll.u32 %v10445_v24, 16  ;;  %v11032_v12 = vld [vmem:[%s13238_s11 + $0x104] sm:$0x1]  ;;  %v10449_v24 = vld [vmem:[%s13238_s11 + $0xfc] sm:$0xf] }
  0xf6   : > { %v1893_v17 = vor.u32 %v1892_v28, %v1889_v26  ;;  %v1902_v36 = vrot.slane %v1900_v27, 4  ;;  %v6748_v37 = vshrl.u32 %v11027_v15, 16  ;;  %v6751_v38 = vshll.u32 %v11027_v15, 16  ;;  %v10450_v23 = vld [vmem:[%s13238_s11 + $0x100] sm:$0xf] }
  0xf7   : > { %11937 = vmatprep.mubr.msk.bf16.mxu1 %vm302_vm1, %v10485_v32  ;;  %v6746_v39 = vsel %vm13357_vm4, %v6741_v0, %v6745_v25  ;;  %v1908_v41 = vrot.slane %v1906_v34, 5  ;;  %v6757_v42 = vshll.u32 %v11028_v6, 16  ;;  %v6761_v44 = vshrl.u32 %v11028_v6, 16  ;;  %v11033_v27 = vld [vmem:[%s13238_s11 + $0x12c] sm:$0xf] }
  0xf8   : > { %v11069_v30 = vcombine.low %v6736_v33, %v6746_v39  ;;  %v1894_v62 = vrot.slane %v1893_v17, 4  ;;  %v1903_v43 = vor.u32 %v1902_v36, %v1898_v29  ;;  %v6750_v45 = vrot.slane %v6748_v37, 4  ;;  %v11034_v37 = vld [vmem:[%s13238_s11 + $0x130] sm:$0xf] }
  0xf9   : > { %v6753_v47 = vrot.slane %v6751_v38, 5  ;;  %v6759_v59 = vrot.slane %v6757_v42, 5  ;;  %v6763_v48 = vrot.slane %v6761_v44, 4  ;;  %v6767_v50 = vshll.u32 %v11029_v31, 16 }
  0xfa   : > { %12209 = vmatprep.mubr.msk.bf16.mxu0 %vm302_vm1, %v11069_v30  ;;  %v1899_v11 = vsel %vm13357_vm4, %v1894_v62, %v1898_v29  ;;  %v1904_v56 = vrot.slane %v1903_v43, 4  ;;  %v1911_v57 = vshrl.u32 %v10446_v35, 16  ;;  %v1914_v58 = vshll.u32 %v10446_v35, 16  ;;  %v10451_v29 = vld [vmem:[%s13238_s11 + $0x104] sm:$0x1] }
  0xfb   : > { %v6754_v61 = vor.u32 %v6753_v47, %v6750_v45  ;;  %v6764_v63 = vor.u32 %v6763_v48, %v6759_v59  ;;  %v6769_v1 = vrot.slane %v6767_v50, 5  ;;  %v1920_v3 = vshll.u32 %v10447_v46, 16  ;;  %v11035_v45 = vld [vmem:[%s13238_s11 + $0x134] sm:$0x1]  ;;  %v10452_v50 = vld [vmem:[%s13238_s11 + $0x12c] sm:$0xf] }
  0xfc   : > { %v1909_v4 = vsel %vm13357_vm4, %v1904_v56, %v1908_v41  ;;  %v1913_v5 = vrot.slane %v1911_v57, 4  ;;  %v1916_v21 = vrot.slane %v1914_v58, 5  ;;  %v1924_v7 = vshrl.u32 %v10447_v46, 16 }
  0xfd   : > { %v10486_v8 = vcombine.low %v1899_v11, %v1909_v4  ;;  %v6755_v9 = vrot.slane %v6754_v61, 4  ;;  %v6765_v10 = vrot.slane %v6764_v63, 4  ;;  %v1922_v49 = vrot.slane %v1920_v3, 5  ;;  %v10453_v63 = vld [vmem:[%s13238_s11 + $0x130] sm:$0xf] }
  0xfe   : > { %v1917_v52 = vor.u32 %v1916_v21, %v1913_v5  ;;  %v1926_v13 = vrot.slane %v1924_v7, 4  ;;  %v1930_v53 = vshll.u32 %v10448_v54, 16  ;;  %v6772_v14 = vshrl.u32 %v11030_v55, 16  ;;  %v10454_v21 = vld [vmem:[%s13238_s11 + $0x134] sm:$0x1] }
  0xff   : > { %11938 = vmatmul.mubr.msk.bf16.gmra.mrb[4].mxu1 %vm302_vm1, %v10486_v8  ;;  %v6760_v15 = vsel %vm13357_vm4, %v6755_v9, %v6759_v59  ;;  %v6770_v18 = vsel %vm13357_vm4, %v6765_v10, %v6769_v1  ;;  %v6775_v51 = vshll.u32 %v11030_v55, 16  ;;  %v6781_v19 = vshll.u32 %v11031_v60, 16 }
 0x100   : > { %v11070_v2 = vcombine.low %v6760_v15, %v6770_v18  ;;  %v1918_v20 = vrot.slane %v1917_v52, 4  ;;  %v1927_v6 = vor.u32 %v1926_v13, %v1922_v49  ;;  %v1932_v22 = vrot.slane %v1930_v53, 5 }
 0x101   : > { %v6774_v25 = vrot.slane %v6772_v14, 4  ;;  %v6777_v26 = vrot.slane %v6775_v51, 5  ;;  %v6783_v40 = vrot.slane %v6781_v19, 5  ;;  %v6785_v28 = vshrl.u32 %v11031_v60, 16 }
 0x102   : > { %12210 = vmatmul.mubr.msk.bf16.gmra.mrb[4].mxu0 %vm302_vm1, %v11070_v2  ;;  %v1923_v31 = vsel %vm13357_vm4, %v1918_v20, %v1922_v49  ;;  %v1928_v32 = vrot.slane %v1927_v6, 4  ;;  %v6791_v33 = vshll.u32 %v11032_v12, 16  ;;  %v1935_v0 = vshrl.u32 %v10449_v24, 16  ;;  %v11036_v49 = vld [vmem:[%s13238_s11 + $0x15c] sm:$0xf] }
 0x103   : > { %v6778_v34 = vor.u32 %v6777_v26, %v6774_v25  ;;  %v6787_v35 = vrot.slane %v6785_v28, 4  ;;  %v1938_v17 = vshll.u32 %v10449_v24, 16  ;;  %v1944_v36 = vshll.u32 %v10450_v23, 16  ;;  %v11037_v6 = vld [vmem:[%s13238_s11 + $0x160] sm:$0xf] }
 0x104   : > { %v1933_v38 = vsel %vm13357_vm4, %v1928_v32, %v1932_v22  ;;  %v6793_v39 = vrot.slane %v6791_v33, 5  ;;  %v1937_v41 = vrot.slane %v1935_v0, 4  ;;  %v1948_v42 = vshrl.u32 %v10450_v23, 16  ;;  %v10455_v28 = vld [vmem:[%s13238_s11 + $0x15c] sm:$0xf] }
 0x105   : > { %v10487_v44 = vcombine.low %v1923_v31, %v1933_v38  ;;  %v6779_v30 = vrot.slane %v6778_v34, 4  ;;  %v6788_v62 = vor.u32 %v6787_v35, %v6783_v40  ;;  %v1940_v43 = vrot.slane %v1938_v17, 5  ;;  %v10456_v17 = vld [vmem:[%s13238_s11 + $0x160] sm:$0xf] }
 0x106   : > { %v1946_v46 = vrot.slane %v1944_v36, 5  ;;  %v1950_v47 = vrot.slane %v1948_v42, 4  ;;  %v1954_v59 = vshll.u32 %v10451_v29, 16  ;;  %v6796_v48 = vshrl.u32 %v11033_v27, 16 }
 0x107   : > { %11941 = vmatprep.mubr.msk.bf16.mxu1 %vm302_vm1, %v10487_v44  ;;  %v6784_v54 = vsel %vm13357_vm4, %v6779_v30, %v6783_v40  ;;  %v6789_v55 = vrot.slane %v6788_v62, 4  ;;  %v1941_v11 = vor.u32 %v1940_v43, %v1937_v41  ;;  %v6799_v56 = vshll.u32 %v11033_v27, 16  ;;  %v11038_v40 = vld [vmem:[%s13238_s11 + $0x164] sm:$0x1] }
 0x108   : > { %v1951_v57 = vor.u32 %v1950_v47, %v1946_v46  ;;  %v1956_v58 = vrot.slane %v1954_v59, 5  ;;  %v6798_v60 = vrot.slane %v6796_v48, 4  ;;  %v6805_v61 = vshll.u32 %v11034_v37, 16  ;;  %v10457_v62 = vld [vmem:[%s13238_s11 + $0x164] sm:$0x1] }
 0x109   : > { %v6794_v1 = vsel %vm13357_vm4, %v6789_v55, %v6793_v39  ;;  %v1942_v3 = vrot.slane %v1941_v11, 4  ;;  %v6801_v4 = vrot.slane %v6799_v56, 5  ;;  %v6809_v5 = vshrl.u32 %v11034_v37, 16  ;;  %v11039_v59 = vld [vmem:[%s13238_s11 + $0x18c] sm:$0xf] }
 0x10a   : > { %v11071_v7 = vcombine.low %v6784_v54, %v6794_v1  ;;  %v1952_v8 = vrot.slane %v1951_v57, 4  ;;  %v6807_v9 = vrot.slane %v6805_v61, 5  ;;  %v6815_v10 = vshll.u32 %v11035_v45, 16  ;;  %v11040_v11 = vld [vmem:[%s13238_s11 + $0x190] sm:$0xf] }
 0x10b   : > { %v1947_v12 = vsel %vm13357_vm4, %v1942_v3, %v1946_v46  ;;  %v6802_v24 = vor.u32 %v6801_v4, %v6798_v60  ;;  %v6811_v52 = vrot.slane %v6809_v5, 4  ;;  %v1959_v13 = vshrl.u32 %v10452_v50, 16  ;;  %v11041_v4 = vld [vmem:[%s13238_s11 + $0x194] sm:$0x1] }
 0x10c   : > { %12213 = vmatprep.mubr.msk.bf16.mxu0 %vm302_vm1, %v11071_v7  ;;  %v1957_v53 = vsel %vm13357_vm4, %v1952_v8, %v1956_v58  ;;  %v6817_v14 = vrot.slane %v6815_v10, 5  ;;  %v1962_v15 = vshll.u32 %v10452_v50, 16  ;;  %v1968_v18 = vshll.u32 %v10453_v63, 16 }
 0x10d   : > { %v10488_v51 = vcombine.low %v1947_v12, %v1957_v53  ;;  %v6803_v19 = vrot.slane %v6802_v24, 4  ;;  %v6812_v2 = vor.u32 %v6811_v52, %v6807_v9  ;;  %v1961_v20 = vrot.slane %v1959_v13, 4  ;;  %v10459_v52 = vld [vmem:[%s13238_s11 + $0x190] sm:$0xf] }
 0x10e   : > { %v1964_v22 = vrot.slane %v1962_v15, 5  ;;  %v1970_v23 = vrot.slane %v1968_v18, 5  ;;  %v1972_v25 = vshrl.u32 %v10453_v63, 16  ;;  %v1978_v26 = vshll.u32 %v10454_v21, 16 }
 0x10f   : > { %11942 = vmatmul.mubr.msk.bf16.gmra.mrb[8].mxu1 %vm302_vm1, %v10488_v51  ;;  %v6808_v29 = vsel %vm13357_vm4, %v6803_v19, %v6807_v9  ;;  %v6813_v27 = vrot.slane %v6812_v2, 4  ;;  %v6820_v31 = vshrl.u32 %v11036_v49, 16  ;;  %v6823_v32 = vshll.u32 %v11036_v49, 16  ;;  %v10458_v9 = vld [vmem:[%s13238_s11 + $0x18c] sm:$0xf] }
 0x110   : > { %v1965_v33 = vor.u32 %v1964_v22, %v1961_v20  ;;  %v1974_v0 = vrot.slane %v1972_v25, 4  ;;  %v1980_v34 = vrot.slane %v1978_v26, 5  ;;  %v6829_v35 = vshll.u32 %v11037_v6, 16  ;;  %v10460_v25 = vld [vmem:[%s13238_s11 + $0x194] sm:$0x1] }
 0x111   : > { %v6818_v36 = vsel %vm13357_vm4, %v6813_v27, %v6817_v14  ;;  %v6822_v37 = vrot.slane %v6820_v31, 4  ;;  %v6825_v38 = vrot.slane %v6823_v32, 5  ;;  %v6833_v39 = vshrl.u32 %v11037_v6, 16  ;;  %v11042_v26 = vld [vmem:[%s13238_s11 + $0x1bc] sm:$0xf] }
 0x112   : > { %v11072_v41 = vcombine.low %v6808_v29, %v6818_v36  ;;  %v1966_v42 = vrot.slane %v1965_v33, 4  ;;  %v1975_v44 = vor.u32 %v1974_v0, %v1970_v23  ;;  %v6831_v30 = vrot.slane %v6829_v35, 5 }
 0x113   : > { %v6826_v43 = vor.u32 %v6825_v38, %v6822_v37  ;;  %v6835_v45 = vrot.slane %v6833_v39, 4  ;;  %v6839_v46 = vshll.u32 %v11038_v40, 16  ;;  %v1983_v47 = vshrl.u32 %v10455_v28, 16 }
 0x114   : > { %12214 = vmatmul.mubr.msk.bf16.gmra.mrb[8].mxu0 %vm302_vm1, %v11072_v41  ;;  %v1971_v48 = vsel %vm13357_vm4, %v1966_v42, %v1970_v23  ;;  %v1976_v50 = vrot.slane %v1975_v44, 4  ;;  %v1986_v54 = vshll.u32 %v10455_v28, 16  ;;  %v1992_v55 = vshll.u32 %v10456_v17, 16  ;;  %v11044_v44 = vld [vmem:[%s13238_s11 + $0x1c4] sm:$0x1] }
 0x115   : > { %v6827_v56 = vrot.slane %v6826_v43, 4  ;;  %v6836_v57 = vor.u32 %v6835_v45, %v6831_v30  ;;  %v6841_v58 = vrot.slane %v6839_v46, 5  ;;  %v1985_v60 = vrot.slane %v1983_v47, 4  ;;  %v10461_v46 = vld [vmem:[%s13238_s11 + $0x1bc] sm:$0xf] }
 0x116   : > { %v1981_v61 = vsel %vm13357_vm4, %v1976_v50, %v1980_v34  ;;  %v1988_v63 = vrot.slane %v1986_v54, 5  ;;  %v1994_v1 = vrot.slane %v1992_v55, 5  ;;  %v1996_v3 = vshrl.u32 %v10456_v17, 16  ;;  %v11043_v34 = vld [vmem:[%s13238_s11 + $0x1c0] sm:$0xf] }
 0x117   : > { %v10489_v5 = vcombine.low %v1971_v48, %v1981_v61  ;;  %v6832_v21 = vsel %vm13357_vm4, %v6827_v56, %v6831_v30  ;;  %v6837_v7 = vrot.slane %v6836_v57, 4  ;;  %v2002_v8 = vshll.u32 %v10457_v62, 16  ;;  %v10462_v54 = vld [vmem:[%s13238_s11 + $0x1c0] sm:$0xf] }
 0x118   : > { %v1989_v10 = vor.u32 %v1988_v63, %v1985_v60  ;;  %v1998_v49 = vrot.slane %v1996_v3, 4  ;;  %v6844_v12 = vshrl.u32 %v11039_v59, 16  ;;  %v6847_v24 = vshll.u32 %v11039_v59, 16  ;;  %v11045_v3 = vld [vmem:[%s13238_s11 + $0x1ec] sm:$0xf] }
 0x119   : > { %11945 = vmatprep.mubr.msk.bf16.mxu1 %vm302_vm1, %v10489_v5  ;;  %v6842_v13 = vsel %vm13357_vm4, %v6837_v7, %v6841_v58  ;;  %v2004_v53 = vrot.slane %v2002_v8, 5  ;;  %v6853_v14 = vshll.u32 %v11040_v11, 16  ;;  %v6857_v15 = vshrl.u32 %v11040_v11, 16 }
 0x11a   : > { %v11073_v18 = vcombine.low %v6832_v21, %v6842_v13  ;;  %v1990_v51 = vrot.slane %v1989_v10, 4  ;;  %v1999_v19 = vor.u32 %v1998_v49, %v1994_v1  ;;  %v6846_v2 = vrot.slane %v6844_v12, 4  ;;  %v11046_v12 = vld [vmem:[%s13238_s11 + $0x1f0] sm:$0xf] }
 0x11b   : > { %v6849_v20 = vrot.slane %v6847_v24, 5  ;;  %v6855_v6 = vrot.slane %v6853_v14, 5  ;;  %v6859_v22 = vrot.slane %v6857_v15, 4  ;;  %v6863_v23 = vshll.u32 %v11041_v4, 16 }
 0x11c   : > { %12217 = vmatprep.mubr.msk.bf16.mxu0 %vm302_vm1, %v11073_v18  ;;  %v1995_v40 = vsel %vm13357_vm4, %v1990_v51, %v1994_v1  ;;  %v2000_v28 = vrot.slane %v1999_v19, 4  ;;  %v2007_v29 = vshrl.u32 %v10458_v9, 16  ;;  %v2010_v27 = vshll.u32 %v10458_v9, 16  ;;  %v10463_v1 = vld [vmem:[%s13238_s11 + $0x1c4] sm:$0x1] }
 0x11d   : > { %v6850_v31 = vor.u32 %v6849_v20, %v6846_v2  ;;  %v6860_v32 = vor.u32 %v6859_v22, %v6855_v6  ;;  %v6865_v33 = vrot.slane %v6863_v23, 5  ;;  %v2016_v0 = vshll.u32 %v10459_v52, 16 }
 0x11e   : > { %v2005_v35 = vsel %vm13357_vm4, %v2000_v28, %v2004_v53  ;;  %v2009_v17 = vrot.slane %v2007_v29, 4  ;;  %v2012_v36 = vrot.slane %v2010_v27, 5  ;;  %v2020_v37 = vshrl.u32 %v10459_v52, 16  ;;  %v10464_v28 = vld [vmem:[%s13238_s11 + $0x1ec] sm:$0xf] }
 0x11f   : > { %v10490_v38 = vcombine.low %v1995_v40, %v2005_v35  ;;  %v6851_v39 = vrot.slane %v6850_v31, 4  ;;  %v6861_v41 = vrot.slane %v6860_v32, 4  ;;  %v2018_v42 = vrot.slane %v2016_v0, 5  ;;  %v10465_v29 = vld [vmem:[%s13238_s11 + $0x1f0] sm:$0xf] }
 0x120   : > { %v2013_v30 = vor.u32 %v2012_v36, %v2009_v17  ;;  %v2022_v62 = vrot.slane %v2020_v37, 4  ;;  %v2026_v43 = vshll.u32 %v10460_v25, 16  ;;  %v6868_v45 = vshrl.u32 %v11042_v26, 16  ;;  %v10466_v36 = vld [vmem:[%s13238_s11 + $0x1f4] sm:$0x1] }
 0x121   : > { %11946 = vmatmul.mubr.msk.bf16.gmra.mrb[12].mxu1 %vm302_vm1, %v10490_v38  ;;  %v6856_v47 = vsel %vm13357_vm4, %v6851_v39, %v6855_v6  ;;  %v6866_v59 = vsel %vm13357_vm4, %v6861_v41, %v6865_v33  ;;  %v6871_v48 = vshll.u32 %v11042_v26, 16  ;;  %v6877_v50 = vshll.u32 %v11043_v34, 16  ;;  %v11047_v6 = vld [vmem:[%s13238_s11 + $0x1f4] sm:$0x1] }
 0x122   : > { %v11074_v55 = vcombine.low %v6856_v47, %v6866_v59  ;;  %v2014_v11 = vrot.slane %v2013_v30, 4  ;;  %v2023_v56 = vor.u32 %v2022_v62, %v2018_v42  ;;  %v2028_v57 = vrot.slane %v2026_v43, 5 }
 0x123   : > { %v6870_v58 = vrot.slane %v6868_v45, 4  ;;  %v6873_v60 = vrot.slane %v6871_v48, 5  ;;  %v6879_v61 = vrot.slane %v6877_v50, 5  ;;  %v6881_v63 = vshrl.u32 %v11043_v34, 16  ;;  %v11049_v45 = vld [vmem:[%s13238_s11 + $0x220] sm:$0xf] }
 0x124   : > { %12218 = vmatmul.mubr.msk.bf16.gmra.mrb[12].mxu0 %vm302_vm1, %v11074_v55  ;;  %v2019_v4 = vsel %vm13357_vm4, %v2014_v11, %v2018_v42  ;;  %v2024_v5 = vrot.slane %v2023_v56, 4  ;;  %v6887_v21 = vshll.u32 %v11044_v44, 16  ;;  %v2031_v7 = vshrl.u32 %v10461_v46, 16  ;;  %v11048_v42 = vld [vmem:[%s13238_s11 + $0x21c] sm:$0xf] }
 0x125   : > { %v6874_v8 = vor.u32 %v6873_v60, %v6870_v58  ;;  %v6883_v9 = vrot.slane %v6881_v63, 4  ;;  %v2034_v10 = vshll.u32 %v10461_v46, 16  ;;  %v2040_v49 = vshll.u32 %v10462_v54, 16  ;;  %v10467_v63 = vld [vmem:[%s13238_s11 + $0x21c] sm:$0xf] }
 0x126   : > { %v2029_v24 = vsel %vm13357_vm4, %v2024_v5, %v2028_v57  ;;  %v6889_v52 = vrot.slane %v6887_v21, 5  ;;  %v2033_v13 = vrot.slane %v2031_v7, 4  ;;  %v2044_v53 = vshrl.u32 %v10462_v54, 16  ;;  %v10468_v21 = vld [vmem:[%s13238_s11 + $0x220] sm:$0xf] }
 0x127   : > { %v10491_v14 = vcombine.low %v2019_v4, %v2029_v24  ;;  %v6875_v15 = vrot.slane %v6874_v8, 4  ;;  %v6884_v18 = vor.u32 %v6883_v9, %v6879_v61  ;;  %v2036_v51 = vrot.slane %v2034_v10, 5 }
 0x128   : > { %v2042_v19 = vrot.slane %v2040_v49, 5  ;;  %v2046_v2 = vrot.slane %v2044_v53, 4  ;;  %v2050_v20 = vshll.u32 %v10463_v1, 16  ;;  %v6892_v22 = vshrl.u32 %v11045_v3, 16 }
 0x129   : > { %11949 = vmatprep.mubr.msk.bf16.mxu1 %vm302_vm1, %v10491_v14  ;;  %v6880_v23 = vsel %vm13357_vm4, %v6875_v15, %v6879_v61  ;;  %v6885_v25 = vrot.slane %v6884_v18, 4  ;;  %v2037_v26 = vor.u32 %v2036_v51, %v2033_v13  ;;  %v6895_v40 = vshll.u32 %v11045_v3, 16  ;;  %v11050_v61 = vld [vmem:[%s13238_s11 + $0x224] sm:$0x1] }
 0x12a   : > { %v2047_v27 = vor.u32 %v2046_v2, %v2042_v19  ;;  %v2052_v31 = vrot.slane %v2050_v20, 5  ;;  %v6894_v32 = vrot.slane %v6892_v22, 4  ;;  %v6901_v33 = vshll.u32 %v11046_v12, 16  ;;  %v10469_v18 = vld [vmem:[%s13238_s11 + $0x224] sm:$0x1] }
 0x12b   : > { %v6890_v0 = vsel %vm13357_vm4, %v6885_v25, %v6889_v52  ;;  %v2038_v34 = vrot.slane %v2037_v26, 4  ;;  %v6897_v35 = vrot.slane %v6895_v40, 5  ;;  %v6905_v17 = vshrl.u32 %v11046_v12, 16  ;;  %v11052_v40 = vld [vmem:[%s13238_s11 + $0x250] sm:$0xf] }
 0x12c   : > { %v11075_v37 = vcombine.low %v6880_v23, %v6890_v0  ;;  %v2048_v38 = vrot.slane %v2047_v27, 4  ;;  %v6903_v39 = vrot.slane %v6901_v33, 5  ;;  %v6911_v41 = vshll.u32 %v11047_v6, 16  ;;  %v11051_v6 = vld [vmem:[%s13238_s11 + $0x24c] sm:$0xf] }
 0x12d   : > { %v2043_v44 = vsel %vm13357_vm4, %v2038_v34, %v2042_v19  ;;  %v6898_v30 = vor.u32 %v6897_v35, %v6894_v32  ;;  %v6907_v62 = vrot.slane %v6905_v17, 4  ;;  %v2055_v43 = vshrl.u32 %v10464_v28, 16  ;;  %v11053_v35 = vld [vmem:[%s13238_s11 + $0x254] sm:$0x1] }
 0x12e   : > { %12221 = vmatprep.mubr.msk.bf16.mxu0 %vm302_vm1, %v11075_v37  ;;  %v2053_v46 = vsel %vm13357_vm4, %v2048_v38, %v2052_v31  ;;  %v6913_v47 = vrot.slane %v6911_v41, 5  ;;  %v2058_v59 = vshll.u32 %v10464_v28, 16  ;;  %v2064_v48 = vshll.u32 %v10465_v29, 16 }
 0x12f   : > { %v10492_v50 = vcombine.low %v2043_v44, %v2053_v46  ;;  %v6899_v54 = vrot.slane %v6898_v30, 4  ;;  %v6908_v55 = vor.u32 %v6907_v62, %v6903_v39  ;;  %v2057_v11 = vrot.slane %v2055_v43, 4  ;;  %v10471_v62 = vld [vmem:[%s13238_s11 + $0x250] sm:$0xf] }
 0x130   : > { %v2060_v56 = vrot.slane %v2058_v59, 5  ;;  %v2066_v57 = vrot.slane %v2064_v48, 5  ;;  %v2068_v58 = vshrl.u32 %v10465_v29, 16  ;;  %v2074_v60 = vshll.u32 %v10466_v36, 16 }
 0x131   : > { %11950 = vmatmul.mubr.msk.bf16.gmra.mrb[16].mxu1 %vm302_vm1, %v10492_v50  ;;  %v6904_v1 = vsel %vm13357_vm4, %v6899_v54, %v6903_v39  ;;  %v6909_v3 = vrot.slane %v6908_v55, 4  ;;  %v6916_v4 = vshrl.u32 %v11048_v42, 16  ;;  %v6919_v5 = vshll.u32 %v11048_v42, 16  ;;  %v10470_v39 = vld [vmem:[%s13238_s11 + $0x24c] sm:$0xf] }
 0x132   : > { %v2061_v7 = vor.u32 %v2060_v56, %v2057_v11  ;;  %v2070_v8 = vrot.slane %v2068_v58, 4  ;;  %v2076_v9 = vrot.slane %v2074_v60, 5  ;;  %v6925_v10 = vshll.u32 %v11049_v45, 16  ;;  %v10472_v58 = vld [vmem:[%s13238_s11 + $0x254] sm:$0x1] }
 0x133   : > { %v6914_v49 = vsel %vm13357_vm4, %v6909_v3, %v6913_v47  ;;  %v6918_v12 = vrot.slane %v6916_v4, 4  ;;  %v6921_v24 = vrot.slane %v6919_v5, 5  ;;  %v6929_v52 = vshrl.u32 %v11049_v45, 16  ;;  %v11054_v60 = vld [vmem:[%s13238_s11 + $0x27c] sm:$0xf] }
 0x134   : > { %v11076_v13 = vcombine.low %v6904_v1, %v6914_v49  ;;  %v2062_v53 = vrot.slane %v2061_v7, 4  ;;  %v2071_v14 = vor.u32 %v2070_v8, %v2066_v57  ;;  %v6927_v15 = vrot.slane %v6925_v10, 5 }
 0x135   : > { %v6922_v51 = vor.u32 %v6921_v24, %v6918_v12  ;;  %v6931_v19 = vrot.slane %v6929_v52, 4  ;;  %v6935_v2 = vshll.u32 %v11050_v61, 16  ;;  %v2079_v20 = vshrl.u32 %v10467_v63, 16  ;;  %v11055_v12 = vld [vmem:[%s13238_s11 + $0x280] sm:$0xf] }
 0x136   : > { %12222 = vmatmul.mubr.msk.bf16.gmra.mrb[16].mxu0 %vm302_vm1, %v11076_v13  ;;  %v2067_v22 = vsel %vm13357_vm4, %v2062_v53, %v2066_v57  ;;  %v2072_v23 = vrot.slane %v2071_v14, 4  ;;  %v2082_v25 = vshll.u32 %v10467_v63, 16  ;;  %v2088_v26 = vshll.u32 %v10468_v21, 16  ;;  %v11056_v14 = vld [vmem:[%s13238_s11 + $0x284] sm:$0x1] }
 0x137   : > { %v6923_v28 = vrot.slane %v6922_v51, 4  ;;  %v6932_v29 = vor.u32 %v6931_v19, %v6927_v15  ;;  %v6937_v27 = vrot.slane %v6935_v2, 5  ;;  %v2081_v31 = vrot.slane %v2079_v20, 4  ;;  %v10474_v20 = vld [vmem:[%s13238_s11 + $0x280] sm:$0xf] }
 0x138   : > { %v2077_v32 = vsel %vm13357_vm4, %v2072_v23, %v2076_v9  ;;  %v2084_v33 = vrot.slane %v2082_v25, 5  ;;  %v2090_v0 = vrot.slane %v2088_v26, 5  ;;  %v2092_v34 = vshrl.u32 %v10468_v21, 16 }
 0x139   : > { %v10493_v17 = vcombine.low %v2067_v22, %v2077_v32  ;;  %v6928_v36 = vsel %vm13357_vm4, %v6923_v28, %v6927_v15  ;;  %v6933_v37 = vrot.slane %v6932_v29, 4  ;;  %v2098_v38 = vshll.u32 %v10469_v18, 16  ;;  %v10473_v15 = vld [vmem:[%s13238_s11 + $0x27c] sm:$0xf] }
 0x13a   : > { %v2085_v41 = vor.u32 %v2084_v33, %v2081_v31  ;;  %v2094_v42 = vrot.slane %v2092_v34, 4  ;;  %v6940_v44 = vshrl.u32 %v11051_v6, 16  ;;  %v6943_v30 = vshll.u32 %v11051_v6, 16  ;;  %v11057_v34 = vld [vmem:[%s13238_s11 + $0x2ac] sm:$0xf] }
 0x13b   : > { %11953 = vmatprep.mubr.msk.bf16.mxu1 %vm302_vm1, %v10493_v17  ;;  %v6938_v43 = vsel %vm13357_vm4, %v6933_v37, %v6937_v27  ;;  %v2100_v45 = vrot.slane %v2098_v38, 5  ;;  %v6949_v46 = vshll.u32 %v11052_v40, 16  ;;  %v6953_v47 = vshrl.u32 %v11052_v40, 16 }
 0x13c   : > { %v11077_v59 = vcombine.low %v6928_v36, %v6938_v43  ;;  %v2086_v48 = vrot.slane %v2085_v41, 4  ;;  %v2095_v50 = vor.u32 %v2094_v42, %v2090_v0  ;;  %v6942_v54 = vrot.slane %v6940_v44, 4 }
 0x13d   : > { %v6945_v55 = vrot.slane %v6943_v30, 5  ;;  %v6951_v11 = vrot.slane %v6949_v46, 5  ;;  %v6955_v56 = vrot.slane %v6953_v47, 4  ;;  %v6959_v57 = vshll.u32 %v11053_v35, 16 }
 0x13e   : > { %12225 = vmatprep.mubr.msk.bf16.mxu0 %vm302_vm1, %v11077_v59  ;;  %v2091_v61 = vsel %vm13357_vm4, %v2086_v48, %v2090_v0  ;;  %v2096_v63 = vrot.slane %v2095_v50, 4  ;;  %v2103_v1 = vshrl.u32 %v10470_v39, 16  ;;  %v2106_v3 = vshll.u32 %v10470_v39, 16  ;;  %v10475_v0 = vld [vmem:[%s13238_s11 + $0x284] sm:$0x1] }
 0x13f   : > { %v6946_v4 = vor.u32 %v6945_v55, %v6942_v54  ;;  %v6956_v5 = vor.u32 %v6955_v56, %v6951_v11  ;;  %v6961_v21 = vrot.slane %v6959_v57, 5  ;;  %v2112_v7 = vshll.u32 %v10471_v62, 16  ;;  %v11059_v50 = vld [vmem:[%s13238_s11 + $0x2b4] sm:$0x1]  ;;  %v10476_v57 = vld [vmem:[%s13238_s11 + $0x2ac] sm:$0xf] }
 0x140   : > { %v2101_v8 = vsel %vm13357_vm4, %v2096_v63, %v2100_v45  ;;  %v2105_v9 = vrot.slane %v2103_v1, 4  ;;  %v2108_v10 = vrot.slane %v2106_v3, 5  ;;  %v2116_v49 = vshrl.u32 %v10471_v62, 16  ;;  %v11058_v45 = vld [vmem:[%s13238_s11 + $0x2b0] sm:$0xf] }
 0x141   : > { %v10494_v24 = vcombine.low %v2091_v61, %v2101_v8  ;;  %v6947_v52 = vrot.slane %v6946_v4, 4  ;;  %v6957_v13 = vrot.slane %v6956_v5, 4  ;;  %v2114_v53 = vrot.slane %v2112_v7, 5  ;;  %v10477_v1 = vld [vmem:[%s13238_s11 + $0x2b0] sm:$0xf] }
 0x142   : > { %v2109_v18 = vor.u32 %v2108_v10, %v2105_v9  ;;  %v2118_v51 = vrot.slane %v2116_v49, 4  ;;  %v2122_v19 = vshll.u32 %v10472_v58, 16  ;;  %v6964_v2 = vshrl.u32 %v11054_v60, 16  ;;  %v10478_v49 = vld [vmem:[%s13238_s11 + $0x2b4] sm:$0x1] }
 0x143   : > { %11954 = vmatmul.mubr.msk.bf16.gmra.mrb[20].mxu1 %vm302_vm1, %v10494_v24  ;;  %v6952_v6 = vsel %vm13357_vm4, %v6947_v52, %v6951_v11  ;;  %v6962_v22 = vsel %vm13357_vm4, %v6957_v13, %v6961_v21  ;;  %v6967_v23 = vshll.u32 %v11054_v60, 16  ;;  %v6973_v25 = vshll.u32 %v11055_v12, 16 }
 0x144   : > { %v11078_v26 = vcombine.low %v6952_v6, %v6962_v22  ;;  %v2110_v40 = vrot.slane %v2109_v18, 4  ;;  %v2119_v28 = vor.u32 %v2118_v51, %v2114_v53  ;;  %v2124_v29 = vrot.slane %v2122_v19, 5  ;;  %v11060_v6 = vld [vmem:[%s13238_s11 + $0x2dc] sm:$0xf] }
 0x145   : > { %v6966_v27 = vrot.slane %v6964_v2, 4  ;;  %v6969_v31 = vrot.slane %v6967_v23, 5  ;;  %v6975_v32 = vrot.slane %v6973_v25, 5  ;;  %v6977_v33 = vshrl.u32 %v11055_v12, 16 }
 0x146   : > { %12226 = vmatmul.mubr.msk.bf16.gmra.mrb[20].mxu0 %vm302_vm1, %v11078_v26  ;;  %v2115_v35 = vsel %vm13357_vm4, %v2110_v40, %v2114_v53  ;;  %v2120_v17 = vrot.slane %v2119_v28, 4  ;;  %v6983_v36 = vshll.u32 %v11056_v14, 16  ;;  %v2127_v37 = vshrl.u32 %v10473_v15, 16  ;;  %v11061_v40 = vld [vmem:[%s13238_s11 + $0x2e0] sm:$0xf] }
 0x147   : > { %v6970_v38 = vor.u32 %v6969_v31, %v6966_v27  ;;  %v6979_v39 = vrot.slane %v6977_v33, 4  ;;  %v2130_v41 = vshll.u32 %v10473_v15, 16  ;;  %v2136_v42 = vshll.u32 %v10474_v20, 16  ;;  %v10479_v33 = vld [vmem:[%s13238_s11 + $0x2dc] sm:$0xf] }
 0x148   : > { %v2125_v44 = vsel %vm13357_vm4, %v2120_v17, %v2124_v29  ;;  %v6985_v30 = vrot.slane %v6983_v36, 5  ;;  %v2129_v62 = vrot.slane %v2127_v37, 4  ;;  %v2140_v43 = vshrl.u32 %v10474_v20, 16  ;;  %v10480_v36 = vld [vmem:[%s13238_s11 + $0x2e0] sm:$0xf] }
 0x149   : > { %v10495_v46 = vcombine.low %v2115_v35, %v2125_v44  ;;  %v6971_v47 = vrot.slane %v6970_v38, 4  ;;  %v6980_v59 = vor.u32 %v6979_v39, %v6975_v32  ;;  %v2132_v48 = vrot.slane %v2130_v41, 5 }
 0x14a   : > { %v2138_v54 = vrot.slane %v2136_v42, 5  ;;  %v2142_v55 = vrot.slane %v2140_v43, 4  ;;  %v2146_v11 = vshll.u32 %v10475_v0, 16  ;;  %v6988_v56 = vshrl.u32 %v11057_v34, 16 }
 0x14b   : > { %11957 = vmatprep.mubr.msk.bf16.mxu1 %vm302_vm1, %v10495_v46  ;;  %v6976_v58 = vsel %vm13357_vm4, %v6971_v47, %v6975_v32  ;;  %v6981_v60 = vrot.slane %v6980_v59, 4  ;;  %v2133_v61 = vor.u32 %v2132_v48, %v2129_v62  ;;  %v6991_v63 = vshll.u32 %v11057_v34, 16  ;;  %v11062_v32 = vld [vmem:[%s13238_s11 + $0x2e4] sm:$0x1] }
 0x14c   : > { %v2143_v3 = vor.u32 %v2142_v55, %v2138_v54  ;;  %v2148_v4 = vrot.slane %v2146_v11, 5  ;;  %v6990_v5 = vrot.slane %v6988_v56, 4  ;;  %v6997_v21 = vshll.u32 %v11058_v45, 16  ;;  %v10481_v59 = vld [vmem:[%s13238_s11 + $0x2e4] sm:$0x1] }
 0x14d   : > { %v6986_v7 = vsel %vm13357_vm4, %v6981_v60, %v6985_v30  ;;  %v2134_v8 = vrot.slane %v2133_v61, 4  ;;  %v6993_v9 = vrot.slane %v6991_v63, 5  ;;  %v7001_v10 = vshrl.u32 %v11058_v45, 16  ;;  %v11063_v11 = vld [vmem:[%s13238_s11 + $0x30c] sm:$0xf] }
 0x14e   : > { %v11079_v12 = vcombine.low %v6976_v58, %v6986_v7  ;;  %v2144_v24 = vrot.slane %v2143_v3, 4  ;;  %v6999_v52 = vrot.slane %v6997_v21, 5  ;;  %v7007_v13 = vshll.u32 %v11059_v50, 16  ;;  %v11064_v61 = vld [vmem:[%s13238_s11 + $0x310] sm:$0xf] }
 0x14f   : > { %v2139_v53 = vsel %vm13357_vm4, %v2134_v8, %v2138_v54  ;;  %v6994_v14 = vor.u32 %v6993_v9, %v6990_v5  ;;  %v7003_v15 = vrot.slane %v7001_v10, 4  ;;  %v2151_v18 = vshrl.u32 %v10476_v57, 16  ;;  %v11065_v9 = vld [vmem:[%s13238_s11 + $0x314] sm:$0x1] }
 0x150   : > { %12229 = vmatprep.mubr.msk.bf16.mxu0 %vm302_vm1, %v11079_v12  ;;  %v2149_v51 = vsel %vm13357_vm4, %v2144_v24, %v2148_v4  ;;  %v7009_v19 = vrot.slane %v7007_v13, 5  ;;  %v2154_v2 = vshll.u32 %v10476_v57, 16  ;;  %v2160_v20 = vshll.u32 %v10477_v1, 16 }
 0x151   : > { %v10496_v22 = vcombine.low %v2139_v53, %v2149_v51  ;;  %v6995_v23 = vrot.slane %v6994_v14, 4  ;;  %v7004_v25 = vor.u32 %v7003_v15, %v6999_v52  ;;  %v2153_v26 = vrot.slane %v2151_v18, 4 }
 0x152   : > { %v2156_v28 = vrot.slane %v2154_v2, 5  ;;  %v2162_v29 = vrot.slane %v2160_v20, 5  ;;  %v2164_v27 = vshrl.u32 %v10477_v1, 16  ;;  %v2170_v31 = vshll.u32 %v10478_v49, 16 }
 0x153   : > { %11958 = vmatmul.mubr.msk.bf16.gmra.mrb[24].mxu1 %vm302_vm1, %v10496_v22  ;;  %v7000_v0 = vsel %vm13357_vm4, %v6995_v23, %v6999_v52  ;;  %v7005_v34 = vrot.slane %v7004_v25, 4  ;;  %v7012_v35 = vshrl.u32 %v11060_v6, 16  ;;  %v7015_v17 = vshll.u32 %v11060_v6, 16 }
 0x154   : > { %v2157_v37 = vor.u32 %v2156_v28, %v2153_v26  ;;  %v2166_v38 = vrot.slane %v2164_v27, 4  ;;  %v2172_v39 = vrot.slane %v2170_v31, 5  ;;  %v7021_v41 = vshll.u32 %v11061_v40, 16  ;;  %v13997_v28 = vld [vmem:[%s14967_s1 + $0xc] sm:$0x3] }
 0x155   : > { %v7010_v42 = vsel %vm13357_vm4, %v7005_v34, %v7009_v19  ;;  %v7014_v44 = vrot.slane %v7012_v35, 4  ;;  %v7017_v30 = vrot.slane %v7015_v17, 5  ;;  %v7025_v62 = vshrl.u32 %v11061_v40, 16  ;;  %v12991_v34 = vld [vmem:[%s13238_s11 + $0x18] sm:$0xff]   ;;  %v13055_v35 = vld [vmem:[%s14967_s1 + $0xa] sm:$0x3] }
 0x156   : > { %v11080_v43 = vcombine.low %v7000_v0, %v7010_v42  ;;  %v2158_v45 = vrot.slane %v2157_v37, 4  ;;  %v2167_v46 = vor.u32 %v2166_v38, %v2162_v29  ;;  %v7023_v47 = vrot.slane %v7021_v41, 5 }
 0x157   : > { %v7018_v48 = vor.u32 %v7017_v30, %v7014_v44  ;;  %v7027_v50 = vrot.slane %v7025_v62, 4  ;;  %v7031_v54 = vshll.u32 %v11062_v32, 16  ;;  %v2175_v55 = vshrl.u32 %v10479_v33, 16  ;;  %v10645_v44 = vld [vmem:[%s13238_s11 + $0x18] sm:$0xf] }
 0x158   : > { %12230 = vmatmul.mubr.msk.bf16.gmra.mrb[24].mxu0 %vm302_vm1, %v11080_v43  ;;  %v2163_v56 = vsel %vm13357_vm4, %v2158_v45, %v2162_v29  ;;  %v2168_v57 = vrot.slane %v2167_v46, 4  ;;  %v2178_v58 = vshll.u32 %v10479_v33, 16  ;;  %v2184_v60 = vshll.u32 %v10480_v36, 16  ;;  %v10646_v30 = vld [vmem:[%s13238_s11 + $0x1c] sm:$0xf] }
 0x159   : > { %v7019_v63 = vrot.slane %v7018_v48, 4  ;;  %v7028_v1 = vor.u32 %v7027_v50, %v7023_v47  ;;  %v7033_v3 = vrot.slane %v7031_v54, 5  ;;  %v2177_v4 = vrot.slane %v2175_v55, 4  ;;  %v12992_v50 = vld [vmem:[%s13238_s11 + $0x48] sm:$0xff]  }
 0x15a   : > { %v2173_v5 = vsel %vm13357_vm4, %v2168_v57, %v2172_v39  ;;  %v2180_v21 = vrot.slane %v2178_v58, 5  ;;  %v2186_v7 = vrot.slane %v2184_v60, 5  ;;  %v2188_v8 = vshrl.u32 %v10480_v36, 16  ;;  %v13056_v36 = vld [vmem:[%s14967_s1 + $0x1a] sm:$0x3] }
 0x15b   : > { %v10497_v10 = vcombine.low %v2163_v56, %v2173_v5  ;;  %v7024_v49 = vsel %vm13357_vm4, %v7019_v63, %v7023_v47  ;;  %v7029_v12 = vrot.slane %v7028_v1, 4  ;;  %v2194_v24 = vshll.u32 %v10481_v59, 16  ;;  %v11229_v47 = vld [vmem:[%s13238_s11 + $0x48] sm:$0xf]  ;;  %v11230_v54 = vld [vmem:[%s13238_s11 + $0x4c] sm:$0xf] }
 0x15c   : > { %v2181_v52 = vor.u32 %v2180_v21, %v2177_v4  ;;  %v2190_v13 = vrot.slane %v2188_v8, 4  ;;  %v7036_v53 = vshrl.u32 %v11063_v11, 16  ;;  %v7039_v14 = vshll.u32 %v11063_v11, 16  ;;  %v14035_v57 = vld [vmem:[%s14967_s1 + $0x1c] sm:$0x3] }
 0x15d   : > { %11961 = vmatprep.mubr.msk.bf16.mxu1 %vm302_vm1, %v10497_v10  ;;  %v7034_v15 = vsel %vm13357_vm4, %v7029_v12, %v7033_v3  ;;  %v2196_v18 = vrot.slane %v2194_v24, 5  ;;  %v7045_v51 = vshll.u32 %v11064_v61, 16  ;;  %v7049_v19 = vshrl.u32 %v11064_v61, 16  ;;  %v10647_v63 = vld [vmem:[%s13238_s11 + $0x20] sm:$0x1]  ;;  %v12993_v10 = vld [vmem:[%s13238_s11 + $0x48] sm:$0xff]  }
 0x15e   : > { %v11081_v2 = vcombine.low %v7024_v49, %v7034_v15  ;;  %v2182_v20 = vrot.slane %v2181_v52, 4  ;;  %v2191_v6 = vor.u32 %v2190_v13, %v2186_v7  ;;  %v7038_v22 = vrot.slane %v7036_v53, 4  ;;  %v11231_v3 = vld [vmem:[%s13238_s11 + $0x50] sm:$0x1]  ;;  %v10649_v13 = vld [vmem:[%s13238_s11 + $0x4c] sm:$0xf] }
 0x15f   : > { %v7041_v23 = vrot.slane %v7039_v14, 5  ;;  %v7047_v25 = vrot.slane %v7045_v51, 5  ;;  %v7051_v26 = vrot.slane %v7049_v19, 4  ;;  %v7055_v40 = vshll.u32 %v11065_v9, 16  ;;  %v10648_v9 = vld [vmem:[%s13238_s11 + $0x48] sm:$0xf] }
 0x160   : > { %12233 = vmatprep.mubr.msk.bf16.mxu0 %vm302_vm1, %v11081_v2  ;;  %v2187_v29 = vsel %vm13357_vm4, %v2182_v20, %v2186_v7  ;;  %v2192_v27 = vrot.slane %v2191_v6, 4  ;;  %v14009_v17 = vsel %vm351_vm0, %v13055_v35, 0  ;;  %v14015_v37 = vsel %vm351_vm0, %v13056_v36, 0  ;;  %v12994_v53 = vld [vmem:[%s13238_s11 + $0x78] sm:$0xff]   ;;  %v14053_v20 = vld [vmem:[%s14967_s1 + $0xe] sm:$0x3] }
 0x161   : > { %v7042_v31 = vor.u32 %v7041_v23, %v7038_v22  ;;  %v7052_v32 = vor.u32 %v7051_v26, %v7047_v25  ;;  %v7057_v33 = vrot.slane %v7055_v40, 5  ;;  %v14019_v38 = vsel %vm351_vm0, %v13997_v28, 0  ;;  %v12995_v14 = vld [vmem:[%s13238_s11 + $0x78] sm:$0xff]  }
 0x162   : > { %v2197_v0 = vsel %vm13357_vm4, %v2192_v27, %v2196_v18  ;;  %v3455_v62 = vshrl.u32 %v10645_v44, 16  ;;  %v3458_v43 = vshll.u32 %v10645_v44, 16  ;;  %v3464_v45 = vshll.u32 %v10646_v30, 16  ;;  %v11232_v35 = vld [vmem:[%s13238_s11 + $0x78] sm:$0xf] }
 0x163   : > { %v10498_v39 = vcombine.low %v2187_v29, %v2197_v0  ;;  %v7043_v41 = vrot.slane %v7042_v31, 4  ;;  %v7053_v42 = vrot.slane %v7052_v32, 4  ;;  %v3468_v46 = vshrl.u32 %v10646_v30, 16  ;;  %v10650_v29 = vld [vmem:[%s13238_s11 + $0x50] sm:$0x1] }
 0x164   : > { %v8316_v55 = vshrl.u32 %v11229_v47, 16  ;;  %v8319_v11 = vshll.u32 %v11229_v47, 16  ;;  %v3457_v58 = vrot.slane %v3455_v62, 4  ;;  %v3460_v60 = vrot.slane %v3458_v43, 5  ;;  %v11233_v36 = vld [vmem:[%s13238_s11 + $0x7c] sm:$0xf] }
 0x165   : > { %11962 = vmatmul.mubr.msk.bf16.gmra.mrb[28].mxu1 %vm302_vm1, %v10498_v39  ;;  %v7048_v59 = vsel %vm13357_vm4, %v7043_v41, %v7047_v25  ;;  %v7058_v48 = vsel %vm13357_vm4, %v7053_v42, %v7057_v33  ;;  %v3466_v61 = vrot.slane %v3464_v45, 5  ;;  %v3470_v1 = vrot.slane %v3468_v46, 4  ;;  %v12996_v25 = vld [vmem:[%s13238_s11 + $0xa8] sm:$0xff]   ;;  %v11234_v47 = vld [vmem:[%s13238_s11 + $0x80] sm:$0x1] }
 0x166   : > { %v11082_v56 = vcombine.low %v7048_v59, %v7058_v48  ;;  %11967 = vmatprep.mubr.msk.bf16.mxu1 %vm302_vm1, %v12991_v34  ;;  %v8318_v4 = vrot.slane %v8316_v55, 4  ;;  %v3461_v5 = vor.u32 %v3460_v60, %v3457_v58  ;;  %v3474_v21 = vshll.u32 %v10647_v63, 16  ;;  %v10651_v58 = vld [vmem:[%s13238_s11 + $0x78] sm:$0xf] }
 0x167   : > { %v8321_v7 = vrot.slane %v8319_v11, 5  ;;  %v8325_v8 = vshll.u32 %v11230_v54, 16  ;;  %v14045_v49 = vsel %vm351_vm0, %v14035_v57, 0  ;;  %v3471_v12 = vor.u32 %v3470_v1, %v3466_v61  ;;  %v12999_v60 = vld [vmem:[%s13238_s11 + $0xd8] sm:$0xff]  }
 0x168   : > { %12234 = vmatmul.mubr.msk.bf16.gmra.mrb[28].mxu0 %vm302_vm1, %v11082_v56  ;;  %v8329_v24 = vshrl.u32 %v11230_v54, 16  ;;  %v8335_v52 = vshll.u32 %v11231_v3, 16  ;;  %v3462_v15 = vrot.slane %v3461_v5, 4  ;;  %v3476_v18 = vrot.slane %v3474_v21, 5  ;;  %v14086_v54 = vld [vmem:[%s14967_s1 + $0x1e] sm:$0x3] }
 0x169   : > { %12239 = vmatprep.mubr.msk.bf16.mxu0 %vm302_vm1, %v12992_v50  ;;  %v8322_v51 = vor.u32 %v8321_v7, %v8318_v4  ;;  %v8327_v19 = vrot.slane %v8325_v8, 5  ;;  %v3472_v2 = vrot.slane %v3471_v12, 4  ;;  %v3479_v23 = vshrl.u32 %v10648_v9, 16  ;;  %v10652_v7 = vld [vmem:[%s13238_s11 + $0x7c] sm:$0xf] }
 0x16a   : > { %v8331_v6 = vrot.slane %v8329_v24, 4  ;;  %v8337_v22 = vrot.slane %v8335_v52, 5  ;;  %v3467_v26 = vsel %vm13357_vm4, %v3462_v15, %v3466_v61  ;;  %v3482_v27 = vshll.u32 %v10648_v9, 16  ;;  %v12998_v8 = vld [vmem:[%s13238_s11 + $0xd8] sm:$0xff]   ;;  %v10653_v12 = vld [vmem:[%s13238_s11 + $0x80] sm:$0x1] }
 0x16b   : > { %v8323_v40 = vrot.slane %v8322_v51, 4  ;;  %v3488_v31 = vshll.u32 %v10649_v13, 16  ;;  %v3477_v32 = vsel %vm13357_vm4, %v3472_v2, %v3476_v18  ;;  %v3481_v0 = vrot.slane %v3479_v23, 4  ;;  %v13000_v52 = vld [vmem:[%s13238_s11 + $0x108] sm:$0xff]  }
 0x16c   : > { %v8332_v33 = vor.u32 %v8331_v6, %v8327_v19  ;;  %v3492_v34 = vshrl.u32 %v10649_v13, 16  ;;  %v14066_v39 = vcombine.low %v3467_v26, %v3477_v32  ;;  %v3484_v42 = vrot.slane %v3482_v27, 5  ;;  %v11235_v18 = vld [vmem:[%s13238_s11 + $0xa8] sm:$0xf] }
 0x16d   : > { %11968 = vmatmul.mubr.msk.bf16.vlgmr.msra.gmra.mrb[0].mxu1 %vm302_vm1, %v12993_v10  ;;  %v8328_v41 = vsel %vm13357_vm4, %v8323_v40, %v8327_v19  ;;  %v3490_v44 = vrot.slane %v3488_v31, 5  ;;  %v3498_v43 = vshll.u32 %v10650_v29, 16  ;;  %v14074_v45 = vsel %vm351_vm0, %v14053_v20, 0  ;;  %v11236_v40 = vld [vmem:[%s13238_s11 + $0xac] sm:$0xf] }
 0x16e   : > { %12000 = vmatpush3.bf16.msra.mxu1 %v14009_v17  ;;  %11971 = vmatprep.mubr.msk.bf16.mxu1 %vm302_vm1, %v12995_v14  ;;  %v8333_v30 = vrot.slane %v8332_v33, 4  ;;  %v3494_v62 = vrot.slane %v3492_v34, 4  ;;  %v12997_v17 = vld [vmem:[%s13238_s11 + $0xa8] sm:$0xff]   ;;  %v3485_v46 = vor.u32 %v3484_v42, %v3481_v0  ;;  %v8340_v59 = vshrl.u32 %v11232_v35, 16  ;;  %v11237_v31 = vld [vmem:[%s13238_s11 + $0xb0] sm:$0x1] }
 0x16f   : > { %12859 = vmatprep.subr.msk.bf16.mxu1 %vm351_vm0, %v13997_v28  ;;  %v8343_v48 = vshll.u32 %v11232_v35, 16  ;;  %v8349_v50 = vshll.u32 %v11233_v36, 16  ;;  %v3500_v11 = vrot.slane %v3498_v43, 5  ;;  %v8353_v56 = vshrl.u32 %v11233_v36, 16  ;;  %v13001_v0 = vld [vmem:[%s13238_s11 + $0x108] sm:$0xff]  }
 0x170   : > { %12240 = vmatmul.mubr.msk.bf16.vlgmr.msra.gmra.mrb[0].mxu0 %vm302_vm1, %v12994_v53  ;;  %v8338_v28 = vsel %vm13357_vm4, %v8333_v30, %v8337_v22  ;;  %v3495_v55 = vor.u32 %v3494_v62, %v3490_v44  ;;  %v3486_v61 = vrot.slane %v3485_v46, 4  ;;  %v8342_v63 = vrot.slane %v8340_v59, 4  ;;  %v10654_v42 = vld [vmem:[%s13238_s11 + $0xa8] sm:$0xf] }
 0x171   : > { %12272 = vmatpush3.bf16.msra.mxu0 %v14015_v37  ;;  %12243 = vmatprep.mubr.msk.bf16.mxu0 %vm302_vm1, %v12996_v25  ;;  %v14092_v37 = vcombine.low %v8328_v41, %v8338_v28  ;;  %v8345_v1 = vrot.slane %v8343_v48, 5  ;;  %v8351_v4 = vrot.slane %v8349_v50, 5  ;;  %v8355_v5 = vrot.slane %v8353_v56, 4  ;;  %v10655_v50 = vld [vmem:[%s13238_s11 + $0xac] sm:$0xf]  ;;  %v13002_v28 = vld [vmem:[%s13238_s11 + $0x138] sm:$0xff]  }
 0x172   : > { %12867 = vmatprep.subr.msk.bf16.mxu0 %vm351_vm0, %v14035_v57  ;;  %v3496_v3 = vrot.slane %v3495_v55, 4  ;;  %v8359_v21 = vshll.u32 %v11234_v47, 16  ;;  %v3491_v9 = vsel %vm13357_vm4, %v3486_v61, %v3490_v44  ;;  %v14100_v57 = vsel %vm351_vm0, %v14086_v54, 0  ;;  %v13003_v44 = vld [vmem:[%s13238_s11 + $0x138] sm:$0xff]   ;;  %v10656_v56 = vld [vmem:[%s13238_s11 + $0xb0] sm:$0x1] }
 0x173   : > { %v8346_v10 = vor.u32 %v8345_v1, %v8342_v63  ;;  %v3503_v24 = vshrl.u32 %v10651_v58, 16  ;;  %v8356_v53 = vor.u32 %v8355_v5, %v8351_v4  ;;  %v3506_v15 = vshll.u32 %v10651_v58, 16  ;;  %v13004_v61 = vld [vmem:[%s13238_s11 + $0x168] sm:$0xff]  }
 0x174   : > { %v3501_v13 = vsel %vm13357_vm4, %v3496_v3, %v3500_v11  ;;  %v8361_v14 = vrot.slane %v8359_v21, 5  ;;  %v3512_v6 = vshll.u32 %v10652_v7, 16  ;;  %v3516_v25 = vshrl.u32 %v10652_v7, 16 }
 0x175   : > { %11972 = vmatmul.mubr.msk.bf16.gmra.mrb[4].mxu1 %vm302_vm1, %v12997_v17  ;;  %v14109_v51 = vcombine.low %v3491_v9, %v3501_v13  ;;  %v8347_v19 = vrot.slane %v8346_v10, 4  ;;  %v3505_v2 = vrot.slane %v3503_v24, 4  ;;  %v8357_v22 = vrot.slane %v8356_v53, 4  ;;  %v11238_v9 = vld [vmem:[%s13238_s11 + $0xd8] sm:$0xf] }
 0x176   : > { %11975 = vmatprep.mubr.msk.bf16.mxu1 %vm302_vm1, %v12999_v60  ;;  %v3508_v23 = vrot.slane %v3506_v15, 5  ;;  %v3522_v26 = vshll.u32 %v10653_v12, 16  ;;  %v3514_v27 = vrot.slane %v3512_v6, 5  ;;  %v8364_v32 = vshrl.u32 %v11235_v18, 16  ;;  %v11239_v13 = vld [vmem:[%s13238_s11 + $0xdc] sm:$0xf] }
 0x177   : > { %v8352_v29 = vsel %vm13357_vm4, %v8347_v19, %v8351_v4  ;;  %v8367_v33 = vshll.u32 %v11235_v18, 16  ;;  %v8362_v34 = vsel %vm13357_vm4, %v8357_v22, %v8361_v14  ;;  %v3518_v36 = vrot.slane %v3516_v25, 4  ;;  %v11240_v19 = vld [vmem:[%s13238_s11 + $0xe0] sm:$0x1]  ;;  %v13007_v6 = vld [vmem:[%s13238_s11 + $0x198] sm:$0xff]  }
 0x178   : > { %12244 = vmatmul.mubr.msk.bf16.gmra.mrb[4].mxu0 %vm302_vm1, %v12998_v8  ;;  %v3509_v35 = vor.u32 %v3508_v23, %v3505_v2  ;;  %v3524_v41 = vrot.slane %v3522_v26, 5  ;;  %v14122_v30 = vcombine.low %v8352_v29, %v8362_v34  ;;  %v8366_v62 = vrot.slane %v8364_v32, 4  ;;  %v13005_v2 = vld [vmem:[%s13238_s11 + $0x168] sm:$0xff]   ;;  %v10657_v32 = vld [vmem:[%s13238_s11 + $0xd8] sm:$0xf] }
 0x179   : > { %12247 = vmatprep.mubr.msk.bf16.mxu0 %vm302_vm1, %v13000_v52  ;;  %v8369_v43 = vrot.slane %v8367_v33, 5  ;;  %v8373_v17 = vshll.u32 %v11236_v40, 16  ;;  %v3519_v47 = vor.u32 %v3518_v36, %v3514_v27  ;;  %v8377_v59 = vshrl.u32 %v11236_v40, 16  ;;  %v10658_v36 = vld [vmem:[%s13238_s11 + $0xdc] sm:$0xf] }
 0x17a   : > { %v3510_v46 = vrot.slane %v3509_v35, 4  ;;  %v8383_v48 = vshll.u32 %v11237_v31, 16  ;;  %v3527_v58 = vshrl.u32 %v10654_v42, 16  ;;  %v3530_v60 = vshll.u32 %v10654_v42, 16 }
 0x17b   : > { %v8370_v55 = vor.u32 %v8369_v43, %v8366_v62  ;;  %v8375_v11 = vrot.slane %v8373_v17, 5  ;;  %v3520_v1 = vrot.slane %v3519_v47, 4  ;;  %v8379_v3 = vrot.slane %v8377_v59, 4  ;;  %v10659_v17 = vld [vmem:[%s13238_s11 + $0xe0] sm:$0x1] }
 0x17c   : > { %v3515_v63 = vsel %vm13357_vm4, %v3510_v46, %v3514_v27  ;;  %v8385_v4 = vrot.slane %v8383_v48, 5  ;;  %v3529_v21 = vrot.slane %v3527_v58, 4  ;;  %v3532_v7 = vrot.slane %v3530_v60, 5  ;;  %v13008_v46 = vld [vmem:[%s13238_s11 + $0x1c8] sm:$0xff]  }
 0x17d   : > { %11976 = vmatmul.mubr.msk.bf16.gmra.mrb[8].mxu1 %vm302_vm1, %v13001_v0  ;;  %v8371_v5 = vrot.slane %v8370_v55, 4  ;;  %v3536_v8 = vshll.u32 %v10655_v50, 16  ;;  %v3525_v10 = vsel %vm13357_vm4, %v3520_v1, %v3524_v41  ;;  %v8380_v12 = vor.u32 %v8379_v3, %v8375_v11  ;;  %v13006_v41 = vld [vmem:[%s13238_s11 + $0x198] sm:$0xff]   ;;  %v11241_v58 = vld [vmem:[%s13238_s11 + $0x108] sm:$0xf] }
 0x17e   : > { %11979 = vmatprep.mubr.msk.bf16.mxu1 %vm302_vm1, %v13003_v44  ;;  %v3540_v24 = vshrl.u32 %v10655_v50, 16  ;;  %v3546_v52 = vshll.u32 %v10656_v56, 16  ;;  %v14137_v53 = vcombine.low %v3515_v63, %v3525_v10  ;;  %v3533_v15 = vor.u32 %v3532_v7, %v3529_v21  ;;  %v11242_v3 = vld [vmem:[%s13238_s11 + $0x10c] sm:$0xf] }
 0x17f   : > { %v8376_v14 = vsel %vm13357_vm4, %v8371_v5, %v8375_v11  ;;  %v3538_v18 = vrot.slane %v3536_v8, 5  ;;  %v8381_v22 = vrot.slane %v8380_v12, 4  ;;  %v8388_v26 = vshrl.u32 %v11238_v9, 16  ;;  %v13009_v8 = vld [vmem:[%s13238_s11 + $0x1c8] sm:$0xff]  }
 0x180   : > { %12248 = vmatmul.mubr.msk.bf16.gmra.mrb[8].mxu0 %vm302_vm1, %v13002_v28  ;;  %v3542_v23 = vrot.slane %v3540_v24, 4  ;;  %v3548_v25 = vrot.slane %v3546_v52, 5  ;;  %v3534_v40 = vrot.slane %v3533_v15, 4  ;;  %v8391_v29 = vshll.u32 %v11238_v9, 16  ;;  %v13011_v9 = vld [vmem:[%s13238_s11 + $0x1f8] sm:$0xff]  }
 0x181   : > { %12251 = vmatprep.mubr.msk.bf16.mxu0 %vm302_vm1, %v13004_v61  ;;  %v8397_v27 = vshll.u32 %v11239_v13, 16  ;;  %v8401_v31 = vshrl.u32 %v11239_v13, 16  ;;  %v8386_v33 = vsel %vm13357_vm4, %v8381_v22, %v8385_v4  ;;  %v8390_v34 = vrot.slane %v8388_v26, 4  ;;  %v11243_v15 = vld [vmem:[%s13238_s11 + $0x110] sm:$0x1] }
 0x182   : > { %v3543_v0 = vor.u32 %v3542_v23, %v3538_v18  ;;  %v8407_v35 = vshll.u32 %v11240_v19, 16  ;;  %v14150_v42 = vcombine.low %v8376_v14, %v8386_v33  ;;  %v3539_v44 = vsel %vm13357_vm4, %v3534_v40, %v3538_v18  ;;  %v10661_v26 = vld [vmem:[%s13238_s11 + $0x10c] sm:$0xf]  ;;  %v13010_v40 = vld [vmem:[%s13238_s11 + $0x1f8] sm:$0xff]  }
 0x183   : > { %v8393_v62 = vrot.slane %v8391_v29, 5  ;;  %v8399_v43 = vrot.slane %v8397_v27, 5  ;;  %v8403_v59 = vrot.slane %v8401_v31, 4  ;;  %v3551_v50 = vshrl.u32 %v10657_v32, 16  ;;  %v13012_v33 = vld [vmem:[%s13238_s11 + $0x228] sm:$0xff]  }
 0x184   : > { %v3544_v47 = vrot.slane %v3543_v0, 4  ;;  %v8409_v48 = vrot.slane %v8407_v35, 5  ;;  %v3554_v55 = vshll.u32 %v10657_v32, 16  ;;  %v3560_v11 = vshll.u32 %v10658_v36, 16 }
 0x185   : > { %11980 = vmatmul.mubr.msk.bf16.gmra.mrb[12].mxu1 %vm302_vm1, %v13005_v2  ;;  %v8394_v28 = vor.u32 %v8393_v62, %v8390_v34  ;;  %v3564_v56 = vshrl.u32 %v10658_v36, 16  ;;  %v8404_v61 = vor.u32 %v8403_v59, %v8399_v43  ;;  %v3553_v63 = vrot.slane %v3551_v50, 4  ;;  %v10660_v2 = vld [vmem:[%s13238_s11 + $0x108] sm:$0xf]  ;;  %v10662_v62 = vld [vmem:[%s13238_s11 + $0x110] sm:$0x1] }
 0x186   : > { %11983 = vmatprep.mubr.msk.bf16.mxu1 %vm302_vm1, %v13007_v6  ;;  %v3549_v60 = vsel %vm13357_vm4, %v3544_v47, %v3548_v25  ;;  %v3570_v1 = vshll.u32 %v10659_v17, 16  ;;  %v3556_v21 = vrot.slane %v3554_v55, 5  ;;  %v3562_v7 = vrot.slane %v3560_v11, 5 }
 0x187   : > { %v14163_v4 = vcombine.low %v3539_v44, %v3549_v60  ;;  %v8395_v5 = vrot.slane %v8394_v28, 4  ;;  %v8405_v10 = vrot.slane %v8404_v61, 4  ;;  %v3566_v12 = vrot.slane %v3564_v56, 4  ;;  %v11245_v28 = vld [vmem:[%s13238_s11 + $0x13c] sm:$0xf]  ;;  %v13013_v60 = vld [vmem:[%s13238_s11 + $0x228] sm:$0xff]  }
 0x188   : > { %12252 = vmatmul.mubr.msk.bf16.gmra.mrb[12].mxu0 %vm302_vm1, %v13006_v41  ;;  %v3572_v24 = vrot.slane %v3570_v1, 5  ;;  %v8412_v52 = vshrl.u32 %v11241_v58, 16  ;;  %v3557_v14 = vor.u32 %v3556_v21, %v3553_v63  ;;  %v8415_v18 = vshll.u32 %v11241_v58, 16  ;;  %v13015_v61 = vld [vmem:[%s13238_s11 + $0x258] sm:$0xff]  }
 0x189   : > { %12255 = vmatprep.mubr.msk.bf16.mxu0 %vm302_vm1, %v13008_v46  ;;  %v8400_v13 = vsel %vm13357_vm4, %v8395_v5, %v8399_v43  ;;  %v8421_v19 = vshll.u32 %v11242_v3, 16  ;;  %v8410_v6 = vsel %vm13357_vm4, %v8405_v10, %v8409_v48  ;;  %v3567_v22 = vor.u32 %v3566_v12, %v3562_v7  ;;  %v11244_v46 = vld [vmem:[%s13238_s11 + $0x138] sm:$0xf] }
 0x18a   : > { %v8414_v23 = vrot.slane %v8412_v52, 4  ;;  %v8425_v25 = vshrl.u32 %v11242_v3, 16  ;;  %v14176_v29 = vcombine.low %v8400_v13, %v8410_v6  ;;  %v3558_v27 = vrot.slane %v3557_v14, 4  ;;  %v10663_v12 = vld [vmem:[%s13238_s11 + $0x138] sm:$0xf] }
 0x18b   : > { %v8417_v31 = vrot.slane %v8415_v18, 5  ;;  %v8423_v32 = vrot.slane %v8421_v19, 5  ;;  %v3568_v0 = vrot.slane %v3567_v22, 4  ;;  %v8431_v35 = vshll.u32 %v11243_v15, 16  ;;  %v10664_v15 = vld [vmem:[%s13238_s11 + $0x13c] sm:$0xf] }
 0x18c   : > { %v8427_v34 = vrot.slane %v8425_v25, 4  ;;  %v3575_v36 = vshrl.u32 %v10660_v2, 16  ;;  %v3563_v41 = vsel %vm13357_vm4, %v3558_v27, %v3562_v7  ;;  %v3578_v43 = vshll.u32 %v10660_v2, 16  ;;  %v13014_v18 = vld [vmem:[%s13238_s11 + $0x258] sm:$0xff]  }
 0x18d   : > { %11984 = vmatmul.mubr.msk.bf16.gmra.mrb[16].mxu1 %vm302_vm1, %v13009_v8  ;;  %v8418_v44 = vor.u32 %v8417_v31, %v8414_v23  ;;  %v3584_v17 = vshll.u32 %v10661_v26, 16  ;;  %v3573_v47 = vsel %vm13357_vm4, %v3568_v0, %v3572_v24  ;;  %v8433_v48 = vrot.slane %v8431_v35, 5  ;;  %v11246_v8 = vld [vmem:[%s13238_s11 + $0x140] sm:$0x1]  ;;  %v13016_v23 = vld [vmem:[%s13238_s11 + $0x288] sm:$0xff]  }
 0x18e   : > { %11987 = vmatprep.mubr.msk.bf16.mxu1 %vm302_vm1, %v13011_v9  ;;  %v8428_v59 = vor.u32 %v8427_v34, %v8423_v32  ;;  %v3577_v50 = vrot.slane %v3575_v36, 4  ;;  %v14189_v55 = vcombine.low %v3563_v41, %v3573_v47  ;;  %v3580_v56 = vrot.slane %v3578_v43, 5  ;;  %v11247_v35 = vld [vmem:[%s13238_s11 + $0x168] sm:$0xf] }
 0x18f   : > { %v8419_v11 = vrot.slane %v8418_v44, 4  ;;  %v3586_v58 = vrot.slane %v3584_v17, 5  ;;  %v3588_v1 = vshrl.u32 %v10661_v26, 16  ;;  %v3594_v3 = vshll.u32 %v10662_v62, 16 }
 0x190   : > { %12256 = vmatmul.mubr.msk.bf16.gmra.mrb[16].mxu0 %vm302_vm1, %v13010_v40  ;;  %v8429_v63 = vrot.slane %v8428_v59, 4  ;;  %v8436_v5 = vshrl.u32 %v11244_v46, 16  ;;  %v3581_v7 = vor.u32 %v3580_v56, %v3577_v50  ;;  %v8439_v9 = vshll.u32 %v11244_v46, 16  ;;  %v13017_v59 = vld [vmem:[%s13238_s11 + $0x288] sm:$0xff]  }
 0x191   : > { %12259 = vmatprep.mubr.msk.bf16.mxu0 %vm302_vm1, %v13012_v33  ;;  %v8424_v21 = vsel %vm13357_vm4, %v8419_v11, %v8423_v32  ;;  %v8445_v10 = vshll.u32 %v11245_v28, 16  ;;  %v3590_v52 = vrot.slane %v3588_v1, 4  ;;  %v3596_v13 = vrot.slane %v3594_v3, 5  ;;  %v10665_v33 = vld [vmem:[%s13238_s11 + $0x140] sm:$0x1] }
 0x192   : > { %v8434_v24 = vsel %vm13357_vm4, %v8429_v63, %v8433_v48  ;;  %v8438_v14 = vrot.slane %v8436_v5, 4  ;;  %v3582_v2 = vrot.slane %v3581_v7, 4  ;;  %v8441_v6 = vrot.slane %v8439_v9, 5  ;;  %v11248_v11 = vld [vmem:[%s13238_s11 + $0x16c] sm:$0xf] }
 0x193   : > { %v14202_v19 = vcombine.low %v8424_v21, %v8434_v24  ;;  %v8447_v22 = vrot.slane %v8445_v10, 5  ;;  %v3591_v25 = vor.u32 %v3590_v52, %v3586_v58  ;;  %v8449_v26 = vshrl.u32 %v11245_v28, 16  ;;  %v11249_v3 = vld [vmem:[%s13238_s11 + $0x170] sm:$0x1]  ;;  %v10666_v5 = vld [vmem:[%s13238_s11 + $0x168] sm:$0xf] }
 0x194   : > { %v8455_v40 = vshll.u32 %v11246_v8, 16  ;;  %v3599_v27 = vshrl.u32 %v10663_v12, 16  ;;  %v3587_v31 = vsel %vm13357_vm4, %v3582_v2, %v3586_v58  ;;  %v8442_v32 = vor.u32 %v8441_v6, %v8438_v14  ;;  %v13019_v58 = vld [vmem:[%s13238_s11 + $0x2b8] sm:$0xff]   ;;  %v13020_v14 = vld [vmem:[%s13238_s11 + $0x2e8] sm:$0xff]  }
 0x195   : > { %11988 = vmatmul.mubr.msk.bf16.gmra.mrb[20].mxu1 %vm302_vm1, %v13013_v60  ;;  %v3602_v0 = vshll.u32 %v10663_v12, 16  ;;  %v3608_v34 = vshll.u32 %v10664_v15, 16  ;;  %v3592_v36 = vrot.slane %v3591_v25, 4  ;;  %v8451_v41 = vrot.slane %v8449_v26, 4  ;;  %v13018_v10 = vld [vmem:[%s13238_s11 + $0x2b8] sm:$0xff]  }
 0x196   : > { %11991 = vmatprep.mubr.msk.bf16.mxu1 %vm302_vm1, %v13015_v61  ;;  %v8457_v44 = vrot.slane %v8455_v40, 5  ;;  %v3601_v62 = vrot.slane %v3599_v27, 4  ;;  %v8443_v43 = vrot.slane %v8442_v32, 4  ;;  %v3612_v47 = vshrl.u32 %v10664_v15, 16  ;;  %v10667_v6 = vld [vmem:[%s13238_s11 + $0x16c] sm:$0xf] }
 0x197   : > { %v3604_v17 = vrot.slane %v3602_v0, 5  ;;  %v3610_v46 = vrot.slane %v3608_v34, 5  ;;  %v3597_v48 = vsel %vm13357_vm4, %v3592_v36, %v3596_v13  ;;  %v8452_v50 = vor.u32 %v8451_v41, %v8447_v22  ;;  %v10668_v27 = vld [vmem:[%s13238_s11 + $0x170] sm:$0x1]  ;;  %v11250_v34 = vld [vmem:[%s13238_s11 + $0x198] sm:$0xf] }
 0x198   : > { %12260 = vmatmul.mubr.msk.bf16.gmra.mrb[20].mxu0 %vm302_vm1, %v13014_v18  ;;  %v3618_v28 = vshll.u32 %v10665_v33, 16  ;;  %v8460_v56 = vshrl.u32 %v11247_v35, 16  ;;  %v14218_v60 = vcombine.low %v3587_v31, %v3597_v48  ;;  %v8448_v61 = vsel %vm13357_vm4, %v8443_v43, %v8447_v22  ;;  %v13023_v43 = vld [vmem:[%s13238_s11 + $0x24] sm:$0xff]   ;;  %v11251_v48 = vld [vmem:[%s13238_s11 + $0x19c] sm:$0xf] }
 0x199   : > { %12263 = vmatprep.mubr.msk.bf16.mxu0 %vm302_vm1, %v13016_v23  ;;  %v3605_v63 = vor.u32 %v3604_v17, %v3601_v62  ;;  %v3614_v1 = vrot.slane %v3612_v47, 4  ;;  %v8453_v21 = vrot.slane %v8452_v50, 4  ;;  %v8463_v9 = vshll.u32 %v11247_v35, 16  ;;  %v13021_v62 = vld [vmem:[%s13238_s11 + $0x2e8] sm:$0xff]  }
 0x19a   : > { %v3620_v7 = vrot.slane %v3618_v28, 5  ;;  %v8462_v8 = vrot.slane %v8460_v56, 4  ;;  %v8469_v52 = vshll.u32 %v11248_v11, 16  ;;  %v8473_v13 = vshrl.u32 %v11248_v11, 16  ;;  %v11252_v56 = vld [vmem:[%s13238_s11 + $0x1a0] sm:$0x1] }
 0x19b   : > { %v3606_v12 = vrot.slane %v3605_v63, 4  ;;  %v3615_v24 = vor.u32 %v3614_v1, %v3610_v46  ;;  %v8458_v15 = vsel %vm13357_vm4, %v8453_v21, %v8457_v44  ;;  %v8465_v18 = vrot.slane %v8463_v9, 5 }
 0x19c   : > { %v8479_v2 = vshll.u32 %v11249_v3, 16  ;;  %v3623_v22 = vshrl.u32 %v10666_v5, 16  ;;  %v14231_v23 = vcombine.low %v8448_v61, %v8458_v15  ;;  %v8471_v40 = vrot.slane %v8469_v52, 5  ;;  %v10670_v15 = vld [vmem:[%s13238_s11 + $0x19c] sm:$0xf] }
 0x19d   : > { %11992 = vmatmul.mubr.msk.bf16.gmra.mrb[24].mxu1 %vm302_vm1, %v13017_v59  ;;  %v3611_v25 = vsel %vm13357_vm4, %v3606_v12, %v3610_v46  ;;  %v3616_v26 = vrot.slane %v3615_v24, 4  ;;  %v8466_v31 = vor.u32 %v8465_v18, %v8462_v8  ;;  %v8475_v32 = vrot.slane %v8473_v13, 4  ;;  %v13024_v12 = vld [vmem:[%s13238_s11 + $0x54] sm:$0xff]  }
 0x19e   : > { %11995 = vmatprep.mubr.msk.bf16.mxu1 %vm302_vm1, %v13019_v58  ;;  %v8481_v33 = vrot.slane %v8479_v2, 5  ;;  %v3625_v0 = vrot.slane %v3623_v22, 4  ;;  %v3626_v36 = vshll.u32 %v10666_v5, 16  ;;  %v3632_v41 = vshll.u32 %v10667_v6, 16  ;;  %v13022_v5 = vld [vmem:[%s13238_s11 + $0x318] sm:$0xff]  }
 0x19f   : > { %v3621_v35 = vsel %vm13357_vm4, %v3616_v26, %v3620_v7  ;;  %v3636_v44 = vshrl.u32 %v10667_v6, 16  ;;  %v8467_v46 = vrot.slane %v8466_v31, 4  ;;  %v8476_v47 = vor.u32 %v8475_v32, %v8471_v40 }
 0x1a0   : > { %12264 = vmatmul.mubr.msk.bf16.gmra.mrb[24].mxu0 %vm302_vm1, %v13018_v10  ;;  %v14243_v17 = vcombine.low %v3611_v25, %v3621_v35  ;;  %v3642_v59 = vshll.u32 %v10668_v27, 16  ;;  %v3628_v50 = vrot.slane %v3626_v36, 5  ;;  %v3634_v28 = vrot.slane %v3632_v41, 5  ;;  %v10669_v10 = vld [vmem:[%s13238_s11 + $0x198] sm:$0xf] }
 0x1a1   : > { %12267 = vmatprep.mubr.msk.bf16.mxu0 %vm302_vm1, %v13020_v14  ;;  %v3638_v11 = vrot.slane %v3636_v44, 4  ;;  %v8484_v58 = vshrl.u32 %v11250_v34, 16  ;;  %v8472_v61 = vsel %vm13357_vm4, %v8467_v46, %v8471_v40  ;;  %v8477_v63 = vrot.slane %v8476_v47, 4  ;;  %v10671_v27 = vld [vmem:[%s13238_s11 + $0x1a0] sm:$0x1]  ;;  %v13025_v36 = vld [vmem:[%s13238_s11 + $0x54] sm:$0xff]  }
 0x1a2   : > { %v3644_v1 = vrot.slane %v3642_v59, 5  ;;  %v8487_v3 = vshll.u32 %v11250_v34, 16  ;;  %v3629_v21 = vor.u32 %v3628_v50, %v3625_v0  ;;  %v8493_v9 = vshll.u32 %v11251_v48, 16  ;;  %v11253_v35 = vld [vmem:[%s13238_s11 + $0x1c8] sm:$0xf] }
 0x1a3   : > { %v3639_v7 = vor.u32 %v3638_v11, %v3634_v28  ;;  %v8486_v8 = vrot.slane %v8484_v58, 4  ;;  %v8482_v24 = vsel %vm13357_vm4, %v8477_v63, %v8481_v33  ;;  %v8497_v13 = vshrl.u32 %v11251_v48, 16  ;;  %v11254_v46 = vld [vmem:[%s13238_s11 + $0x1cc] sm:$0xf]  ;;  %v13027_v47 = vld [vmem:[%s13238_s11 + $0x84] sm:$0xff]  }
 0x1a4   : > { %v8489_v52 = vrot.slane %v8487_v3, 5  ;;  %v8503_v14 = vshll.u32 %v11252_v56, 16  ;;  %v14257_v18 = vcombine.low %v8472_v61, %v8482_v24  ;;  %v3630_v2 = vrot.slane %v3629_v21, 4  ;;  %v11255_v58 = vld [vmem:[%s13238_s11 + $0x1d0] sm:$0x1] }
 0x1a5   : > { %11996 = vmatmul.mubr.msk.bf16.gmra.mrb[28].mxu1 %vm302_vm1, %v13021_v62  ;;  %v3640_v6 = vrot.slane %v3639_v7, 4  ;;  %v8495_v22 = vrot.slane %v8493_v9, 5  ;;  %v8499_v26 = vrot.slane %v8497_v13, 4  ;;  %v3647_v31 = vshrl.u32 %v10669_v10, 16  ;;  %v13028_v9 = vld [vmem:[%s13238_s11 + $0xb4] sm:$0xff]  }
 0x1a6   : > { %12001 = vmatprep.mubr.msk.bf16.mxu1 %vm302_vm1, %v13023_v43  ;;  %v8490_v25 = vor.u32 %v8489_v52, %v8486_v8  ;;  %v8505_v40 = vrot.slane %v8503_v14, 5  ;;  %v3635_v32 = vsel %vm13357_vm4, %v3630_v2, %v3634_v28  ;;  %v3650_v0 = vshll.u32 %v10669_v10, 16  ;;  %v10672_v8 = vld [vmem:[%s13238_s11 + $0x1c8] sm:$0xf]  ;;  %v10673_v13 = vld [vmem:[%s13238_s11 + $0x1cc] sm:$0xf] }
 0x1a7   : > { %v3645_v33 = vsel %vm13357_vm4, %v3640_v6, %v3644_v1  ;;  %v3656_v34 = vshll.u32 %v10670_v15, 16  ;;  %v8500_v62 = vor.u32 %v8499_v26, %v8495_v22  ;;  %v3649_v43 = vrot.slane %v3647_v31, 4  ;;  %v13026_v1 = vld [vmem:[%s13238_s11 + $0x84] sm:$0xff]   ;;  %v10674_v31 = vld [vmem:[%s13238_s11 + $0x1d0] sm:$0x1] }
 0x1a8   : > { %12268 = vmatmul.mubr.msk.bf16.gmra.mrb[28].mxu0 %vm302_vm1, %v13022_v5  ;;  %v14268_v41 = vcombine.low %v3635_v32, %v3645_v33  ;;  %v8491_v44 = vrot.slane %v8490_v25, 4  ;;  %v3652_v59 = vrot.slane %v3650_v0, 5  ;;  %v3660_v50 = vshrl.u32 %v10670_v15, 16 }
 0x1a9   : > { %12273 = vmatprep.mubr.msk.bf16.mxu0 %vm302_vm1, %v13024_v12  ;;  %v3658_v48 = vrot.slane %v3656_v34, 5  ;;  %v3666_v28 = vshll.u32 %v10671_v27, 16  ;;  %v8501_v56 = vrot.slane %v8500_v62, 4  ;;  %v8508_v61 = vshrl.u32 %v11253_v35, 16  ;;  %v13031_v62 = vld [vmem:[%s13238_s11 + $0xe4] sm:$0xff]  }
 0x1aa   : > { %v8496_v11 = vsel %vm13357_vm4, %v8491_v44, %v8495_v22  ;;  %v8511_v63 = vshll.u32 %v11253_v35, 16  ;;  %v3653_v3 = vor.u32 %v3652_v59, %v3649_v43  ;;  %v3662_v5 = vrot.slane %v3660_v50, 4  ;;  %v11256_v44 = vld [vmem:[%s13238_s11 + $0x1f8] sm:$0xf]  ;;  %v11257_v59 = vld [vmem:[%s13238_s11 + $0x1fc] sm:$0xf] }
 0x1ab   : > { %v3668_v21 = vrot.slane %v3666_v28, 5  ;;  %v8517_v7 = vshll.u32 %v11254_v46, 16  ;;  %v8506_v10 = vsel %vm13357_vm4, %v8501_v56, %v8505_v40  ;;  %v8510_v12 = vrot.slane %v8508_v61, 4  ;;  %v13030_v56 = vld [vmem:[%s13238_s11 + $0xe4] sm:$0xff]  }
 0x1ac   : > { %v8513_v24 = vrot.slane %v8511_v63, 5  ;;  %v8521_v52 = vshrl.u32 %v11254_v46, 16  ;;  %v14284_v14 = vcombine.low %v8496_v11, %v8506_v10  ;;  %v3654_v15 = vrot.slane %v3653_v3, 4  ;;  %v13032_v3 = vld [vmem:[%s13238_s11 + $0x114] sm:$0xff]  }
 0x1ad   : > { %12002 = vmatmul.mubr.msk.bf16.vlgmr.msra.gmra.mrb[0].mxu1 %vm302_vm1, %v13025_v36  ;;  %v3663_v2 = vor.u32 %v3662_v5, %v3658_v48  ;;  %v8519_v6 = vrot.slane %v8517_v7, 5  ;;  %v8527_v26 = vshll.u32 %v11255_v58, 16  ;;  %v3671_v40 = vshrl.u32 %v10672_v8, 16 }
 0x1ae   : > { %12034 = vmatpush3.bf16.msra.mxu1 %v14019_v38  ;;  %12005 = vmatprep.mubr.msk.bf16.mxu1 %vm302_vm1, %v13027_v47  ;;  %v8514_v22 = vor.u32 %v8513_v24, %v8510_v12  ;;  %v8523_v25 = vrot.slane %v8521_v52, 4  ;;  %v3659_v38 = vsel %vm13357_vm4, %v3654_v15, %v3658_v48  ;;  %v3674_v32 = vshll.u32 %v10672_v8, 16 }
 0x1af   : > { %12860 = vmatprep.subr.msk.bf16.mxu1 %vm351_vm0, %v14053_v20  ;;  %v3664_v27 = vrot.slane %v3663_v2, 4  ;;  %v3680_v33 = vshll.u32 %v10673_v13, 16  ;;  %v13029_v20 = vld [vmem:[%s13238_s11 + $0xb4] sm:$0xff]   ;;  %v8529_v35 = vrot.slane %v8527_v26, 5  ;;  %v3673_v36 = vrot.slane %v3671_v40, 4 }
 0x1b0   : > { %12274 = vmatmul.mubr.msk.bf16.vlgmr.msra.gmra.mrb[0].mxu0 %vm302_vm1, %v13026_v1  ;;  %v8515_v0 = vrot.slane %v8514_v22, 4  ;;  %v8524_v34 = vor.u32 %v8523_v25, %v8519_v6  ;;  %v3676_v46 = vrot.slane %v3674_v32, 5  ;;  %v3684_v47 = vshrl.u32 %v10673_v13, 16  ;;  %v10676_v13 = vld [vmem:[%s13238_s11 + $0x1fc] sm:$0xf]  ;;  %v13033_v25 = vld [vmem:[%s13238_s11 + $0x114] sm:$0xff]  }
 0x1b1   : > { %12306 = vmatpush3.bf16.msra.mxu0 %v14045_v49  ;;  %12277 = vmatprep.mubr.msk.bf16.mxu0 %vm302_vm1, %v13028_v9  ;;  %v3669_v43 = vsel %vm13357_vm4, %v3664_v27, %v3668_v21  ;;  %v3682_v49 = vrot.slane %v3680_v33, 5  ;;  %v3690_v11 = vshll.u32 %v10674_v31, 16  ;;  %v8532_v63 = vshrl.u32 %v11256_v44, 16  ;;  %v10675_v9 = vld [vmem:[%s13238_s11 + $0x1f8] sm:$0xf] }
 0x1b2   : > { %12868 = vmatprep.subr.msk.bf16.mxu0 %vm351_vm0, %v14086_v54  ;;  %v14302_v48 = vcombine.low %v3659_v38, %v3669_v43  ;;  %v8520_v50 = vsel %vm13357_vm4, %v8515_v0, %v8519_v6  ;;  %v8525_v28 = vrot.slane %v8524_v34, 4  ;;  %v3677_v58 = vor.u32 %v3676_v46, %v3673_v36  ;;  %v11258_v54 = vld [vmem:[%s13238_s11 + $0x200] sm:$0x1]  ;;  %v11259_v34 = vld [vmem:[%s13238_s11 + $0x228] sm:$0xf] }
 0x1b3   : > { %v3686_v61 = vrot.slane %v3684_v47, 4  ;;  %v8535_v1 = vshll.u32 %v11256_v44, 16  ;;  %v3692_v21 = vrot.slane %v3690_v11, 5  ;;  %v8541_v7 = vshll.u32 %v11257_v59, 16  ;;  %v11260_v46 = vld [vmem:[%s13238_s11 + $0x22c] sm:$0xf] }
 0x1b4   : > { %v8530_v5 = vsel %vm13357_vm4, %v8525_v28, %v8529_v35  ;;  %v8545_v8 = vshrl.u32 %v11257_v59, 16  ;;  %v3678_v12 = vrot.slane %v3677_v58, 4  ;;  %v8534_v52 = vrot.slane %v8532_v63, 4  ;;  %v13035_v35 = vld [vmem:[%s13238_s11 + $0x144] sm:$0xff]   ;;  %v13036_v11 = vld [vmem:[%s13238_s11 + $0x174] sm:$0xff]  }
 0x1b5   : > { %12006 = vmatmul.mubr.msk.bf16.gmra.mrb[4].mxu1 %vm302_vm1, %v13029_v20  ;;  %v14314_v10 = vcombine.low %v8520_v50, %v8530_v5  ;;  %v3687_v24 = vor.u32 %v3686_v61, %v3682_v49  ;;  %v8537_v15 = vrot.slane %v8535_v1, 5  ;;  %v8543_v2 = vrot.slane %v8541_v7, 5  ;;  %v10677_v20 = vld [vmem:[%s13238_s11 + $0x200] sm:$0x1]  ;;  %v13034_v28 = vld [vmem:[%s13238_s11 + $0x144] sm:$0xff]  }
 0x1b6   : > { %12009 = vmatprep.mubr.msk.bf16.mxu1 %vm302_vm1, %v13031_v62  ;;  %v8547_v6 = vrot.slane %v8545_v8, 4  ;;  %v8551_v22 = vshll.u32 %v11258_v54, 16  ;;  %v3683_v26 = vsel %vm13357_vm4, %v3678_v12, %v3682_v49  ;;  %v3695_v38 = vshrl.u32 %v10675_v9, 16  ;;  %v10678_v7 = vld [vmem:[%s13238_s11 + $0x228] sm:$0xf] }
 0x1b7   : > { %v3688_v40 = vrot.slane %v3687_v24, 4  ;;  %v3698_v27 = vshll.u32 %v10675_v9, 16  ;;  %v8538_v31 = vor.u32 %v8537_v15, %v8534_v52  ;;  %v3704_v0 = vshll.u32 %v10676_v13, 16  ;;  %v10679_v52 = vld [vmem:[%s13238_s11 + $0x22c] sm:$0xf] }
 0x1b8   : > { %12278 = vmatmul.mubr.msk.bf16.gmra.mrb[4].mxu0 %vm302_vm1, %v13030_v56  ;;  %v8548_v32 = vor.u32 %v8547_v6, %v8543_v2  ;;  %v8553_v33 = vrot.slane %v8551_v22, 5  ;;  %v3697_v44 = vrot.slane %v3695_v38, 4  ;;  %v3708_v43 = vshrl.u32 %v10676_v13, 16 }
 0x1b9   : > { %12281 = vmatprep.mubr.msk.bf16.mxu0 %vm302_vm1, %v13032_v3  ;;  %v3693_v36 = vsel %vm13357_vm4, %v3688_v40, %v3692_v21  ;;  %v3700_v62 = vrot.slane %v3698_v27, 5  ;;  %v8539_v47 = vrot.slane %v8538_v31, 4  ;;  %v3706_v50 = vrot.slane %v3704_v0, 5  ;;  %v11261_v3 = vld [vmem:[%s13238_s11 + $0x230] sm:$0x1]  ;;  %v13037_v27 = vld [vmem:[%s13238_s11 + $0x174] sm:$0xff]  }
 0x1ba   : > { %v14328_v49 = vcombine.low %v3683_v26, %v3693_v36  ;;  %v8549_v59 = vrot.slane %v8548_v32, 4  ;;  %v3710_v58 = vrot.slane %v3708_v43, 4  ;;  %v3714_v61 = vshll.u32 %v10677_v20, 16  ;;  %v10680_v40 = vld [vmem:[%s13238_s11 + $0x230] sm:$0x1] }
 0x1bb   : > { %v3701_v56 = vor.u32 %v3700_v62, %v3697_v44  ;;  %v8556_v54 = vshrl.u32 %v11259_v34, 16  ;;  %v8544_v63 = vsel %vm13357_vm4, %v8539_v47, %v8543_v2  ;;  %v8559_v5 = vshll.u32 %v11259_v34, 16  ;;  %v11262_v0 = vld [vmem:[%s13238_s11 + $0x258] sm:$0xf]  ;;  %v13039_v34 = vld [vmem:[%s13238_s11 + $0x1a4] sm:$0xff]  }
 0x1bc   : > { %v8554_v1 = vsel %vm13357_vm4, %v8549_v59, %v8553_v33  ;;  %v8565_v21 = vshll.u32 %v11260_v46, 16  ;;  %v3711_v12 = vor.u32 %v3710_v58, %v3706_v50  ;;  %v3716_v24 = vrot.slane %v3714_v61, 5 }
 0x1bd   : > { %12010 = vmatmul.mubr.msk.bf16.gmra.mrb[8].mxu1 %vm302_vm1, %v13033_v25  ;;  %v14340_v8 = vcombine.low %v8544_v63, %v8554_v1  ;;  %v3702_v9 = vrot.slane %v3701_v56, 4  ;;  %v8558_v13 = vrot.slane %v8556_v54, 4  ;;  %v8561_v15 = vrot.slane %v8559_v5, 5  ;;  %v13040_v54 = vld [vmem:[%s13238_s11 + $0x1d4] sm:$0xff]   ;;  %v11264_v5 = vld [vmem:[%s13238_s11 + $0x260] sm:$0x1] }
 0x1be   : > { %12013 = vmatprep.mubr.msk.bf16.mxu1 %vm302_vm1, %v13035_v35  ;;  %v8567_v2 = vrot.slane %v8565_v21, 5  ;;  %v8569_v6 = vshrl.u32 %v11260_v46, 16  ;;  %v3712_v25 = vrot.slane %v3711_v12, 4  ;;  %v8575_v26 = vshll.u32 %v11261_v3, 16 }
 0x1bf   : > { %v3707_v22 = vsel %vm13357_vm4, %v3702_v9, %v3706_v50  ;;  %v3719_v38 = vshrl.u32 %v10678_v7, 16  ;;  %v8562_v31 = vor.u32 %v8561_v15, %v8558_v13  ;;  %v3722_v33 = vshll.u32 %v10678_v7, 16  ;;  %v11263_v50 = vld [vmem:[%s13238_s11 + $0x25c] sm:$0xf] }
 0x1c0   : > { %12282 = vmatmul.mubr.msk.bf16.gmra.mrb[8].mxu0 %vm302_vm1, %v13034_v28  ;;  %v8571_v32 = vrot.slane %v8569_v6, 4  ;;  %v3728_v20 = vshll.u32 %v10679_v52, 16  ;;  %v3717_v35 = vsel %vm13357_vm4, %v3712_v25, %v3716_v24  ;;  %v8577_v36 = vrot.slane %v8575_v26, 5  ;;  %v13038_v28 = vld [vmem:[%s13238_s11 + $0x1a4] sm:$0xff]  }
 0x1c1   : > { %12285 = vmatprep.mubr.msk.bf16.mxu0 %vm302_vm1, %v13036_v11  ;;  %v3721_v44 = vrot.slane %v3719_v38, 4  ;;  %v3732_v62 = vshrl.u32 %v10679_v52, 16  ;;  %v14353_v43 = vcombine.low %v3707_v22, %v3717_v35  ;;  %v8563_v46 = vrot.slane %v8562_v31, 4  ;;  %v10681_v52 = vld [vmem:[%s13238_s11 + $0x258] sm:$0xf] }
 0x1c2   : > { %v8572_v47 = vor.u32 %v8571_v32, %v8567_v2  ;;  %v3724_v59 = vrot.slane %v3722_v33, 5  ;;  %v3730_v11 = vrot.slane %v3728_v20, 5  ;;  %v3738_v58 = vshll.u32 %v10680_v40, 16  ;;  %v10682_v22 = vld [vmem:[%s13238_s11 + $0x25c] sm:$0xf] }
 0x1c3   : > { %v3734_v56 = vrot.slane %v3732_v62, 4  ;;  %v8580_v61 = vshrl.u32 %v11262_v0, 16  ;;  %v8568_v63 = vsel %vm13357_vm4, %v8563_v46, %v8567_v2  ;;  %v8583_v21 = vshll.u32 %v11262_v0, 16  ;;  %v10683_v20 = vld [vmem:[%s13238_s11 + $0x260] sm:$0x1] }
 0x1c4   : > { %v8573_v1 = vrot.slane %v8572_v47, 4  ;;  %v3725_v3 = vor.u32 %v3724_v59, %v3721_v44  ;;  %v3740_v9 = vrot.slane %v3738_v58, 5  ;;  %v8589_v24 = vshll.u32 %v11263_v50, 16  ;;  %v11265_v46 = vld [vmem:[%s13238_s11 + $0x288] sm:$0xf] }
 0x1c5   : > { %12014 = vmatmul.mubr.msk.bf16.gmra.mrb[12].mxu1 %vm302_vm1, %v13037_v27  ;;  %v3735_v7 = vor.u32 %v3734_v56, %v3730_v11  ;;  %v8582_v12 = vrot.slane %v8580_v61, 4  ;;  %v8585_v6 = vrot.slane %v8583_v21, 5  ;;  %v8593_v2 = vshrl.u32 %v11263_v50, 16  ;;  %v13041_v27 = vld [vmem:[%s13238_s11 + $0x1d4] sm:$0xff]   ;;  %v13042_v56 = vld [vmem:[%s13238_s11 + $0x204] sm:$0xff]  }
 0x1c6   : > { %12017 = vmatprep.mubr.msk.bf16.mxu1 %vm302_vm1, %v13039_v34  ;;  %v8578_v13 = vsel %vm13357_vm4, %v8573_v1, %v8577_v36  ;;  %v3726_v15 = vrot.slane %v3725_v3, 4  ;;  %v8591_v40 = vrot.slane %v8589_v24, 5  ;;  %v8599_v38 = vshll.u32 %v11264_v5, 16  ;;  %v13043_v34 = vld [vmem:[%s13238_s11 + $0x204] sm:$0xff]   ;;  %v13044_v1 = vld [vmem:[%s13238_s11 + $0x234] sm:$0xff]  }
 0x1c7   : > { %v14368_v25 = vcombine.low %v8568_v63, %v8578_v13  ;;  %v3736_v26 = vrot.slane %v3735_v7, 4  ;;  %v8586_v32 = vor.u32 %v8585_v6, %v8582_v12  ;;  %v8595_v33 = vrot.slane %v8593_v2, 4  ;;  %v11267_v21 = vld [vmem:[%s13238_s11 + $0x290] sm:$0x1] }
 0x1c8   : > { %12286 = vmatmul.mubr.msk.bf16.gmra.mrb[12].mxu0 %vm302_vm1, %v13038_v28  ;;  %v3731_v31 = vsel %vm13357_vm4, %v3726_v15, %v3730_v11  ;;  %v3743_v0 = vshrl.u32 %v10681_v52, 16  ;;  %v8601_v36 = vrot.slane %v8599_v38, 5  ;;  %v3746_v44 = vshll.u32 %v10681_v52, 16  ;;  %v11266_v11 = vld [vmem:[%s13238_s11 + $0x28c] sm:$0xf] }
 0x1c9   : > { %12289 = vmatprep.mubr.msk.bf16.mxu0 %vm302_vm1, %v13040_v54  ;;  %v3741_v35 = vsel %vm13357_vm4, %v3736_v26, %v3740_v9  ;;  %v3752_v62 = vshll.u32 %v10682_v22, 16  ;;  %v8587_v59 = vrot.slane %v8586_v32, 4  ;;  %v8596_v50 = vor.u32 %v8595_v33, %v8591_v40  ;;  %v10684_v15 = vld [vmem:[%s13238_s11 + $0x288] sm:$0xf]  ;;  %v13045_v33 = vld [vmem:[%s13238_s11 + $0x234] sm:$0xff]  }
 0x1ca   : > { %v14379_v47 = vcombine.low %v3731_v31, %v3741_v35  ;;  %v3745_v28 = vrot.slane %v3743_v0, 4  ;;  %v3748_v58 = vrot.slane %v3746_v44, 5  ;;  %v3756_v54 = vshrl.u32 %v10682_v22, 16 }
 0x1cb   : > { %v3754_v61 = vrot.slane %v3752_v62, 5  ;;  %v3762_v63 = vshll.u32 %v10683_v20, 16  ;;  %v8592_v3 = vsel %vm13357_vm4, %v8587_v59, %v8591_v40  ;;  %v8597_v5 = vrot.slane %v8596_v50, 4  ;;  %v10685_v40 = vld [vmem:[%s13238_s11 + $0x28c] sm:$0xf] }
 0x1cc   : > { %v8604_v7 = vshrl.u32 %v11265_v46, 16  ;;  %v8607_v9 = vshll.u32 %v11265_v46, 16  ;;  %v3749_v12 = vor.u32 %v3748_v58, %v3745_v28  ;;  %v3758_v24 = vrot.slane %v3756_v54, 4  ;;  %v10686_v46 = vld [vmem:[%s13238_s11 + $0x290] sm:$0x1] }
 0x1cd   : > { %12018 = vmatmul.mubr.msk.bf16.gmra.mrb[16].mxu1 %vm302_vm1, %v13041_v27  ;;  %v3764_v52 = vrot.slane %v3762_v63, 5  ;;  %v8613_v13 = vshll.u32 %v11266_v11, 16  ;;  %v8602_v6 = vsel %vm13357_vm4, %v8597_v5, %v8601_v36  ;;  %v8617_v26 = vshrl.u32 %v11266_v11, 16  ;;  %v13047_v36 = vld [vmem:[%s13238_s11 + $0x264] sm:$0xff]   ;;  %v11268_v54 = vld [vmem:[%s13238_s11 + $0x2b8] sm:$0xf] }
 0x1ce   : > { %12021 = vmatprep.mubr.msk.bf16.mxu1 %vm302_vm1, %v13043_v34  ;;  %v8606_v2 = vrot.slane %v8604_v7, 4  ;;  %v8609_v22 = vrot.slane %v8607_v9, 5  ;;  %v14394_v38 = vcombine.low %v8592_v3, %v8602_v6  ;;  %v3750_v27 = vrot.slane %v3749_v12, 4  ;;  %v13046_v63 = vld [vmem:[%s13238_s11 + $0x264] sm:$0xff]   ;;  %v11269_v7 = vld [vmem:[%s13238_s11 + $0x2bc] sm:$0xf] }
 0x1cf   : > { %v3759_v31 = vor.u32 %v3758_v24, %v3754_v61  ;;  %v8615_v32 = vrot.slane %v8613_v13, 5  ;;  %v8619_v0 = vrot.slane %v8617_v26, 4  ;;  %v8623_v34 = vshll.u32 %v11267_v21, 16  ;;  %v11270_v6 = vld [vmem:[%s13238_s11 + $0x2c0] sm:$0x1] }
 0x1d0   : > { %12290 = vmatmul.mubr.msk.bf16.gmra.mrb[16].mxu0 %vm302_vm1, %v13042_v56  ;;  %v8610_v20 = vor.u32 %v8609_v22, %v8606_v2  ;;  %v3767_v35 = vshrl.u32 %v10684_v15, 16  ;;  %v3755_v44 = vsel %vm13357_vm4, %v3750_v27, %v3754_v61  ;;  %v3770_v59 = vshll.u32 %v10684_v15, 16  ;;  %v13048_v61 = vld [vmem:[%s13238_s11 + $0x294] sm:$0xff]  }
 0x1d1   : > { %12293 = vmatprep.mubr.msk.bf16.mxu0 %vm302_vm1, %v13044_v1  ;;  %v3760_v62 = vrot.slane %v3759_v31, 4  ;;  %v3776_v50 = vshll.u32 %v10685_v40, 16  ;;  %v8620_v11 = vor.u32 %v8619_v0, %v8615_v32  ;;  %v8625_v56 = vrot.slane %v8623_v34, 5 }
 0x1d2   : > { %v8611_v28 = vrot.slane %v8610_v20, 4  ;;  %v3769_v58 = vrot.slane %v3767_v35, 4  ;;  %v3772_v3 = vrot.slane %v3770_v59, 5  ;;  %v3780_v21 = vshrl.u32 %v10685_v40, 16  ;;  %v10688_v35 = vld [vmem:[%s13238_s11 + $0x2bc] sm:$0xf] }
 0x1d3   : > { %v3765_v1 = vsel %vm13357_vm4, %v3760_v62, %v3764_v52  ;;  %v3778_v5 = vrot.slane %v3776_v50, 5  ;;  %v8621_v24 = vrot.slane %v8620_v11, 4  ;;  %v3786_v13 = vshll.u32 %v10686_v46, 16  ;;  %v13051_v50 = vld [vmem:[%s13238_s11 + $0x2c4] sm:$0xff]  }
 0x1d4   : > { %v14409_v9 = vcombine.low %v3755_v44, %v3765_v1  ;;  %v8616_v12 = vsel %vm13357_vm4, %v8611_v28, %v8615_v32  ;;  %v3773_v15 = vor.u32 %v3772_v3, %v3769_v58  ;;  %v3782_v52 = vrot.slane %v3780_v21, 4  ;;  %v10689_v3 = vld [vmem:[%s13238_s11 + $0x2c0] sm:$0x1] }
 0x1d5   : > { %12022 = vmatmul.mubr.msk.bf16.gmra.mrb[20].mxu1 %vm302_vm1, %v13045_v33  ;;  %v8628_v2 = vshrl.u32 %v11268_v54, 16  ;;  %v8631_v22 = vshll.u32 %v11268_v54, 16  ;;  %v8626_v26 = vsel %vm13357_vm4, %v8621_v24, %v8625_v56  ;;  %v3788_v40 = vrot.slane %v3786_v13, 5  ;;  %v10687_v33 = vld [vmem:[%s13238_s11 + $0x2b8] sm:$0xf] }
 0x1d6   : > { %12025 = vmatprep.mubr.msk.bf16.mxu1 %vm302_vm1, %v13047_v36  ;;  %v8637_v27 = vshll.u32 %v11269_v7, 16  ;;  %v8641_v31 = vshrl.u32 %v11269_v7, 16  ;;  %v14419_v32 = vcombine.low %v8616_v12, %v8626_v26  ;;  %v3774_v20 = vrot.slane %v3773_v15, 4  ;;  %v13049_v36 = vld [vmem:[%s13238_s11 + $0x294] sm:$0xff]   ;;  %v11271_v7 = vld [vmem:[%s13238_s11 + $0x2e8] sm:$0xf] }
 0x1d7   : > { %v3783_v0 = vor.u32 %v3782_v52, %v3778_v5  ;;  %v8630_v34 = vrot.slane %v8628_v2, 4  ;;  %v8633_v44 = vrot.slane %v8631_v22, 5  ;;  %v8647_v59 = vshll.u32 %v11270_v6, 16  ;;  %v11272_v52 = vld [vmem:[%s13238_s11 + $0x2ec] sm:$0xf] }
 0x1d8   : > { %12294 = vmatmul.mubr.msk.bf16.gmra.mrb[20].mxu0 %vm302_vm1, %v13046_v63  ;;  %v8639_v62 = vrot.slane %v8637_v27, 5  ;;  %v8643_v46 = vrot.slane %v8641_v31, 4  ;;  %v3779_v28 = vsel %vm13357_vm4, %v3774_v20, %v3778_v5  ;;  %v3791_v56 = vshrl.u32 %v10687_v33, 16  ;;  %v13052_v5 = vld [vmem:[%s13238_s11 + $0x2f4] sm:$0xff]  }
 0x1d9   : > { %12297 = vmatprep.mubr.msk.bf16.mxu0 %vm302_vm1, %v13048_v61  ;;  %v3784_v11 = vrot.slane %v3783_v0, 4  ;;  %v3794_v58 = vshll.u32 %v10687_v33, 16  ;;  %v8634_v54 = vor.u32 %v8633_v44, %v8630_v34  ;;  %v8649_v1 = vrot.slane %v8647_v59, 5  ;;  %v13050_v61 = vld [vmem:[%s13238_s11 + $0x2c4] sm:$0xff]   ;;  %v11273_v34 = vld [vmem:[%s13238_s11 + $0x2f0] sm:$0x1] }
 0x1da   : > { %v8644_v63 = vor.u32 %v8643_v46, %v8639_v62  ;;  %v3800_v21 = vshll.u32 %v10688_v35, 16  ;;  %v3793_v24 = vrot.slane %v3791_v56, 4  ;;  %v3804_v15 = vshrl.u32 %v10688_v35, 16  ;;  %v10690_v44 = vld [vmem:[%s13238_s11 + $0x2e8] sm:$0xf] }
 0x1db   : > { %v3789_v12 = vsel %vm13357_vm4, %v3784_v11, %v3788_v40  ;;  %v3796_v13 = vrot.slane %v3794_v58, 5  ;;  %v8635_v2 = vrot.slane %v8634_v54, 4  ;;  %v3810_v40 = vshll.u32 %v10689_v3, 16  ;;  %v10691_v11 = vld [vmem:[%s13238_s11 + $0x2ec] sm:$0xf] }
 0x1dc   : > { %v14435_v6 = vcombine.low %v3779_v28, %v3789_v12  ;;  %v8645_v22 = vrot.slane %v8644_v63, 4  ;;  %v3802_v26 = vrot.slane %v3800_v21, 5  ;;  %v3806_v31 = vrot.slane %v3804_v15, 4 }
 0x1dd   : > { %12026 = vmatmul.mubr.msk.bf16.gmra.mrb[24].mxu1 %vm302_vm1, %v13049_v36  ;;  %v3797_v27 = vor.u32 %v3796_v13, %v3793_v24  ;;  %v8652_v33 = vshrl.u32 %v11271_v7, 16  ;;  %v8640_v20 = vsel %vm13357_vm4, %v8635_v2, %v8639_v62  ;;  %v8655_v35 = vshll.u32 %v11271_v7, 16  ;;  %v13053_v62 = vld [vmem:[%s13238_s11 + $0x2f4] sm:$0xff]   ;;  %v10692_v7 = vld [vmem:[%s13238_s11 + $0x2f0] sm:$0x1] }
 0x1de   : > { %12029 = vmatprep.mubr.msk.bf16.mxu1 %vm302_vm1, %v13051_v50  ;;  %v8650_v0 = vsel %vm13357_vm4, %v8645_v22, %v8649_v1  ;;  %v8661_v36 = vshll.u32 %v11272_v52, 16  ;;  %v3807_v50 = vor.u32 %v3806_v31, %v3802_v26  ;;  %v3812_v28 = vrot.slane %v3810_v40, 5  ;;  %v11274_v2 = vld [vmem:[%s13238_s11 + $0x318] sm:$0xf] }
 0x1df   : > { %v14445_v46 = vcombine.low %v8640_v20, %v8650_v0  ;;  %v3798_v59 = vrot.slane %v3797_v27, 4  ;;  %v8654_v56 = vrot.slane %v8652_v33, 4  ;;  %v8657_v58 = vrot.slane %v8655_v35, 5  ;;  %v11275_v0 = vld [vmem:[%s13238_s11 + $0x31c] sm:$0xf] }
 0x1e0   : > { %12298 = vmatmul.mubr.msk.bf16.gmra.mrb[24].mxu0 %vm302_vm1, %v13050_v61  ;;  %v8663_v54 = vrot.slane %v8661_v36, 5  ;;  %v8665_v63 = vshrl.u32 %v11272_v52, 16  ;;  %v3808_v3 = vrot.slane %v3807_v50, 4  ;;  %v8671_v21 = vshll.u32 %v11273_v34, 16 }
 0x1e1   : > { %12301 = vmatprep.mubr.msk.bf16.mxu0 %vm302_vm1, %v13052_v5  ;;  %v3803_v1 = vsel %vm13357_vm4, %v3798_v59, %v3802_v26  ;;  %v3815_v61 = vshrl.u32 %v10690_v44, 16  ;;  %v8658_v12 = vor.u32 %v8657_v58, %v8654_v56  ;;  %v3818_v13 = vshll.u32 %v10690_v44, 16  ;;  %v13054_v5 = vld [vmem:[%s13238_s11 + $0x324] sm:$0xff]  }
 0x1e2   : > { %v8667_v24 = vrot.slane %v8665_v63, 4  ;;  %v3824_v15 = vshll.u32 %v10691_v11, 16  ;;  %v3813_v22 = vsel %vm13357_vm4, %v3808_v3, %v3812_v28  ;;  %v8673_v27 = vrot.slane %v8671_v21, 5 }
 0x1e3   : > { %v3817_v31 = vrot.slane %v3815_v61, 4  ;;  %v3828_v52 = vshrl.u32 %v10691_v11, 16  ;;  %v14458_v26 = vcombine.low %v3803_v1, %v3813_v22  ;;  %v8659_v40 = vrot.slane %v8658_v12, 4  ;;  %v11276_v11 = vld [vmem:[%s13238_s11 + $0x320] sm:$0x1] }
 0x1e4   : > { %v8668_v33 = vor.u32 %v8667_v24, %v8663_v54  ;;  %v3820_v20 = vrot.slane %v3818_v13, 5  ;;  %v3826_v34 = vrot.slane %v3824_v15, 5  ;;  %v3834_v36 = vshll.u32 %v10692_v7, 16  ;;  %v10727_v61 = vld [vmem:[%s13238_s11 + $0x28] sm:$0xf] }
 0x1e5   : > { %12030 = vmatmul.mubr.msk.bf16.gmra.mrb[28].mxu1 %vm302_vm1, %v13053_v62  ;;  %v3830_v35 = vrot.slane %v3828_v52, 4  ;;  %v8676_v44 = vshrl.u32 %v11274_v2, 16  ;;  %v8664_v59 = vsel %vm13357_vm4, %v8659_v40, %v8663_v54  ;;  %v8679_v62 = vshll.u32 %v11274_v2, 16 }
 0x1e6   : > { %12035 = vmatprep.mubr.msk.bf16.mxu1 %vm302_vm1, %v14066_v39  ;;  %v8669_v50 = vrot.slane %v8668_v33, 4  ;;  %v3821_v28 = vor.u32 %v3820_v20, %v3817_v31  ;;  %v3836_v58 = vrot.slane %v3834_v36, 5  ;;  %v8685_v1 = vshll.u32 %v11275_v0, 16  ;;  %v10726_v39 = vld [vmem:[%s13238_s11 + $0x24] sm:$0xf] }
 0x1e7   : > { %v3831_v56 = vor.u32 %v3830_v35, %v3826_v34  ;;  %v8678_v63 = vrot.slane %v8676_v44, 4  ;;  %v8681_v21 = vrot.slane %v8679_v62, 5  ;;  %v8689_v7 = vshrl.u32 %v11275_v0, 16  ;;  %v11310_v20 = vld [vmem:[%s13238_s11 + $0x54] sm:$0xf] }
 0x1e8   : > { %12302 = vmatmul.mubr.msk.bf16.gmra.mrb[28].mxu0 %vm302_vm1, %v13054_v5  ;;  %v8674_v3 = vsel %vm13357_vm4, %v8669_v50, %v8673_v27  ;;  %v3822_v54 = vrot.slane %v3821_v28, 4  ;;  %v8687_v13 = vrot.slane %v8685_v1, 5  ;;  %v8695_v15 = vshll.u32 %v11276_v11, 16  ;;  %v11311_v44 = vld [vmem:[%s13238_s11 + $0x58] sm:$0xf] }
 0x1e9   : > { %12307 = vmatprep.mubr.msk.bf16.mxu0 %vm302_vm1, %v14092_v37  ;;  %v14473_v12 = vcombine.low %v8664_v59, %v8674_v3  ;;  %v3832_v24 = vrot.slane %v3831_v56, 4  ;;  %v8682_v5 = vor.u32 %v8681_v21, %v8678_v63  ;;  %v8691_v22 = vrot.slane %v8689_v7, 4  ;;  %v10728_v37 = vld [vmem:[%s13238_s11 + $0x2c] sm:$0x1]  ;;  %v11312_v56 = vld [vmem:[%s13238_s11 + $0x5c] sm:$0x1] }
 0x1ea   : > { %v3827_v2 = vsel %vm13357_vm4, %v3822_v54, %v3826_v34  ;;  %v4245_v31 = vshrl.u32 %v10726_v39, 16  ;;  %v8697_v52 = vrot.slane %v8695_v15, 5  ;;  %v4248_v40 = vshll.u32 %v10726_v39, 16 }
 0x1eb   : > { %v3837_v27 = vsel %vm13357_vm4, %v3832_v24, %v3836_v58  ;;  %v4254_v33 = vshll.u32 %v10727_v61, 16  ;;  %v8683_v35 = vrot.slane %v8682_v5, 4  ;;  %v8692_v36 = vor.u32 %v8691_v22, %v8687_v13  ;;  %v10730_v24 = vld [vmem:[%s13238_s11 + $0x58] sm:$0xf] }
 0x1ec   : > { %v14483_v0 = vcombine.low %v3827_v2, %v3837_v27  ;;  %v4247_v34 = vrot.slane %v4245_v31, 4  ;;  %v4250_v59 = vrot.slane %v4248_v40, 5  ;;  %v4258_v28 = vshrl.u32 %v10727_v61, 16  ;;  %v10731_v27 = vld [vmem:[%s13238_s11 + $0x5c] sm:$0x1] }
 0x1ed   : > { %12036 = vmatmul.mubr.msk.bf16.vlgmr.msra.gmra.mrb[0].mxu1 %vm302_vm1, %v14109_v51  ;;  %v4256_v50 = vrot.slane %v4254_v33, 5  ;;  %v4264_v11 = vshll.u32 %v10728_v37, 16  ;;  %v8688_v62 = vsel %vm13357_vm4, %v8683_v35, %v8687_v13  ;;  %v8693_v51 = vrot.slane %v8692_v36, 4 }
 0x1ee   : > { %12068 = vmatpush3.bf16.msra.mxu1 %v14074_v45  ;;  %12039 = vmatprep.mubr.msk.bf16.mxu1 %vm302_vm1, %v14137_v53  ;;  %v9106_v58 = vshrl.u32 %v11310_v20, 16  ;;  %v9109_v63 = vshll.u32 %v11310_v20, 16  ;;  %v4251_v45 = vor.u32 %v4250_v59, %v4247_v34  ;;  %v4260_v1 = vrot.slane %v4258_v28, 4  ;;  %v10729_v53 = vld [vmem:[%s13238_s11 + $0x54] sm:$0xf] }
 0x1ef   : > { %v4266_v39 = vrot.slane %v4264_v11, 5  ;;  %v9115_v3 = vshll.u32 %v11311_v44, 16  ;;  %v8698_v54 = vsel %vm13357_vm4, %v8693_v51, %v8697_v52  ;;  %v9119_v61 = vshrl.u32 %v11311_v44, 16  ;;  %v11313_v34 = vld [vmem:[%s13238_s11 + $0x84] sm:$0xf] }
 0x1f0   : > { %12308 = vmatmul.mubr.msk.bf16.vlgmr.msra.gmra.mrb[0].mxu0 %vm302_vm1, %v14122_v30  ;;  %v9108_v21 = vrot.slane %v9106_v58, 4  ;;  %v9111_v7 = vrot.slane %v9109_v63, 5  ;;  %v14501_v13 = vcombine.low %v8688_v62, %v8698_v54  ;;  %v4252_v30 = vrot.slane %v4251_v45, 4  ;;  %v11314_v11 = vld [vmem:[%s13238_s11 + $0x88] sm:$0xf] }
 0x1f1   : > { %12340 = vmatpush3.bf16.msra.mxu0 %v14100_v57  ;;  %12311 = vmatprep.mubr.msk.bf16.mxu0 %vm302_vm1, %v14150_v42  ;;  %v4261_v15 = vor.u32 %v4260_v1, %v4256_v50  ;;  %v9117_v2 = vrot.slane %v9115_v3, 5  ;;  %v9121_v22 = vrot.slane %v9119_v61, 4  ;;  %v9125_v57 = vshll.u32 %v11312_v56, 16  ;;  %v11315_v63 = vld [vmem:[%s13238_s11 + $0x8c] sm:$0x1] }
 0x1f2   : > { %v9112_v5 = vor.u32 %v9111_v7, %v9108_v21  ;;  %v4269_v37 = vshrl.u32 %v10729_v53, 16  ;;  %v4257_v42 = vsel %vm13357_vm4, %v4252_v30, %v4256_v50  ;;  %v4272_v52 = vshll.u32 %v10729_v53, 16  ;;  %v10732_v21 = vld [vmem:[%s13238_s11 + $0x84] sm:$0xf]  ;;  %v10733_v30 = vld [vmem:[%s13238_s11 + $0x88] sm:$0xf] }
 0x1f3   : > { %v4262_v31 = vrot.slane %v4261_v15, 4  ;;  %v4278_v40 = vshll.u32 %v10730_v24, 16  ;;  %v9122_v20 = vor.u32 %v9121_v22, %v9117_v2  ;;  %v9127_v35 = vrot.slane %v9125_v57, 5 }
 0x1f4   : > { %v9113_v33 = vrot.slane %v9112_v5, 4  ;;  %v4271_v36 = vrot.slane %v4269_v37, 4  ;;  %v4274_v59 = vrot.slane %v4272_v52, 5  ;;  %v4282_v28 = vshrl.u32 %v10730_v24, 16 }
 0x1f5   : > { %12040 = vmatmul.mubr.msk.bf16.gmra.mrb[4].mxu1 %vm302_vm1, %v14163_v4  ;;  %v4267_v44 = vsel %vm13357_vm4, %v4262_v31, %v4266_v39  ;;  %v4280_v50 = vrot.slane %v4278_v40, 5  ;;  %v9123_v51 = vrot.slane %v9122_v20, 4  ;;  %v4288_v56 = vshll.u32 %v10731_v27, 16  ;;  %v10734_v40 = vld [vmem:[%s13238_s11 + $0x8c] sm:$0x1] }
 0x1f6   : > { %12043 = vmatprep.mubr.msk.bf16.mxu1 %vm302_vm1, %v14189_v55  ;;  %v14514_v62 = vcombine.low %v4257_v42, %v4267_v44  ;;  %v9118_v4 = vsel %vm13357_vm4, %v9113_v33, %v9117_v2  ;;  %v4275_v55 = vor.u32 %v4274_v59, %v4271_v36  ;;  %v4284_v58 = vrot.slane %v4282_v28, 4  ;;  %v11316_v20 = vld [vmem:[%s13238_s11 + $0xb4] sm:$0xf]  ;;  %v11317_v59 = vld [vmem:[%s13238_s11 + $0xb8] sm:$0xf] }
 0x1f7   : > { %v9130_v45 = vshrl.u32 %v11313_v34, 16  ;;  %v9133_v1 = vshll.u32 %v11313_v34, 16  ;;  %v9128_v39 = vsel %vm13357_vm4, %v9123_v51, %v9127_v35  ;;  %v4290_v3 = vrot.slane %v4288_v56, 5 }
 0x1f8   : > { %12312 = vmatmul.mubr.msk.bf16.gmra.mrb[4].mxu0 %vm302_vm1, %v14176_v29  ;;  %v9139_v53 = vshll.u32 %v11314_v11, 16  ;;  %v9143_v54 = vshrl.u32 %v11314_v11, 16  ;;  %v14526_v7 = vcombine.low %v9118_v4, %v9128_v39  ;;  %v4276_v61 = vrot.slane %v4275_v55, 4  ;;  %v10735_v39 = vld [vmem:[%s13238_s11 + $0xb4] sm:$0xf] }
 0x1f9   : > { %12315 = vmatprep.mubr.msk.bf16.mxu0 %vm302_vm1, %v14202_v19  ;;  %v4285_v29 = vor.u32 %v4284_v58, %v4280_v50  ;;  %v9132_v24 = vrot.slane %v9130_v45, 4  ;;  %v9135_v15 = vrot.slane %v9133_v1, 5  ;;  %v9149_v22 = vshll.u32 %v11315_v63, 16  ;;  %v11318_v63 = vld [vmem:[%s13238_s11 + $0xbc] sm:$0x1] }
 0x1fa   : > { %v9141_v2 = vrot.slane %v9139_v53, 5  ;;  %v9145_v5 = vrot.slane %v9143_v54, 4  ;;  %v4281_v19 = vsel %vm13357_vm4, %v4276_v61, %v4280_v50  ;;  %v4293_v37 = vshrl.u32 %v10732_v21, 16 }
 0x1fb   : > { %v4286_v57 = vrot.slane %v4285_v29, 4  ;;  %v4296_v42 = vshll.u32 %v10732_v21, 16  ;;  %v9136_v31 = vor.u32 %v9135_v15, %v9132_v24  ;;  %v9151_v52 = vrot.slane %v9149_v22, 5  ;;  %v10736_v21 = vld [vmem:[%s13238_s11 + $0xb8] sm:$0xf] }
 0x1fc   : > { %v9146_v27 = vor.u32 %v9145_v5, %v9141_v2  ;;  %v4302_v33 = vshll.u32 %v10733_v30, 16  ;;  %v4295_v36 = vrot.slane %v4293_v37, 4  ;;  %v4306_v44 = vshrl.u32 %v10733_v30, 16  ;;  %v10737_v5 = vld [vmem:[%s13238_s11 + $0xbc] sm:$0x1] }
 0x1fd   : > { %12044 = vmatmul.mubr.msk.bf16.gmra.mrb[8].mxu1 %vm302_vm1, %v14218_v60  ;;  %v4291_v35 = vsel %vm13357_vm4, %v4286_v57, %v4290_v3  ;;  %v4298_v34 = vrot.slane %v4296_v42, 5  ;;  %v9137_v60 = vrot.slane %v9136_v31, 4  ;;  %v4312_v51 = vshll.u32 %v10734_v40, 16  ;;  %v11319_v31 = vld [vmem:[%s13238_s11 + $0xe4] sm:$0xf] }
 0x1fe   : > { %12047 = vmatprep.mubr.msk.bf16.mxu1 %vm302_vm1, %v14243_v17  ;;  %v14540_v50 = vcombine.low %v4281_v19, %v4291_v35  ;;  %v9147_v28 = vrot.slane %v9146_v27, 4  ;;  %v4304_v11 = vrot.slane %v4302_v33, 5  ;;  %v4308_v17 = vrot.slane %v4306_v44, 4 }
 0x1ff   : > { %v4299_v4 = vor.u32 %v4298_v34, %v4295_v36  ;;  %v9154_v56 = vshrl.u32 %v11316_v20, 16  ;;  %v9142_v55 = vsel %vm13357_vm4, %v9137_v60, %v9141_v2  ;;  %v9157_v45 = vshll.u32 %v11316_v20, 16  ;;  %v11320_v34 = vld [vmem:[%s13238_s11 + $0xe8] sm:$0xf] }
 0x200   : > { %12316 = vmatmul.mubr.msk.bf16.gmra.mrb[8].mxu0 %vm302_vm1, %v14231_v23  ;;  %v9152_v58 = vsel %vm13357_vm4, %v9147_v28, %v9151_v52  ;;  %v9163_v1 = vshll.u32 %v11317_v59, 16  ;;  %v4309_v53 = vor.u32 %v4308_v17, %v4304_v11  ;;  %v4314_v54 = vrot.slane %v4312_v51, 5  ;;  %v11321_v17 = vld [vmem:[%s13238_s11 + $0xec] sm:$0x1] }
 0x201   : > { %12319 = vmatprep.mubr.msk.bf16.mxu0 %vm302_vm1, %v14257_v18  ;;  %v14552_v23 = vcombine.low %v9142_v55, %v9152_v58  ;;  %v4300_v3 = vrot.slane %v4299_v4, 4  ;;  %v9156_v61 = vrot.slane %v9154_v56, 4  ;;  %v9159_v18 = vrot.slane %v9157_v45, 5 }
 0x202   : > { %v9165_v29 = vrot.slane %v9163_v1, 5  ;;  %v9167_v24 = vshrl.u32 %v11317_v59, 16  ;;  %v4310_v15 = vrot.slane %v4309_v53, 4  ;;  %v9173_v2 = vshll.u32 %v11318_v63, 16  ;;  %v10738_v63 = vld [vmem:[%s13238_s11 + $0xe4] sm:$0xf] }
 0x203   : > { %v4305_v30 = vsel %vm13357_vm4, %v4300_v3, %v4304_v11  ;;  %v4317_v22 = vshrl.u32 %v10735_v39, 16  ;;  %v9160_v19 = vor.u32 %v9159_v18, %v9156_v61  ;;  %v4320_v37 = vshll.u32 %v10735_v39, 16 }
 0x204   : > { %v9169_v57 = vrot.slane %v9167_v24, 4  ;;  %v4326_v42 = vshll.u32 %v10736_v21, 16  ;;  %v4315_v27 = vsel %vm13357_vm4, %v4310_v15, %v4314_v54  ;;  %v9175_v52 = vrot.slane %v9173_v2, 5 }
 0x205   : > { %12048 = vmatmul.mubr.msk.bf16.gmra.mrb[12].mxu1 %vm302_vm1, %v14268_v41  ;;  %v4319_v40 = vrot.slane %v4317_v22, 4  ;;  %v4330_v33 = vshrl.u32 %v10736_v21, 16  ;;  %v14565_v20 = vcombine.low %v4305_v30, %v4315_v27  ;;  %v9161_v35 = vrot.slane %v9160_v19, 4  ;;  %v10740_v30 = vld [vmem:[%s13238_s11 + $0xec] sm:$0x1] }
 0x206   : > { %12051 = vmatprep.mubr.msk.bf16.mxu1 %vm302_vm1, %v14302_v48  ;;  %v9170_v36 = vor.u32 %v9169_v57, %v9165_v29  ;;  %v4322_v41 = vrot.slane %v4320_v37, 5  ;;  %v4328_v44 = vrot.slane %v4326_v42, 5  ;;  %v4336_v48 = vshll.u32 %v10737_v5, 16  ;;  %v11322_v57 = vld [vmem:[%s13238_s11 + $0x114] sm:$0xf] }
 0x207   : > { %v4332_v59 = vrot.slane %v4330_v33, 4  ;;  %v9178_v60 = vshrl.u32 %v11319_v31, 16  ;;  %v9166_v28 = vsel %vm13357_vm4, %v9161_v35, %v9165_v29  ;;  %v9181_v51 = vshll.u32 %v11319_v31, 16  ;;  %v11323_v27 = vld [vmem:[%s13238_s11 + $0x118] sm:$0xf] }
 0x208   : > { %12320 = vmatmul.mubr.msk.bf16.gmra.mrb[12].mxu0 %vm302_vm1, %v14284_v14  ;;  %v9171_v11 = vrot.slane %v9170_v36, 4  ;;  %v4323_v4 = vor.u32 %v4322_v41, %v4319_v40  ;;  %v4338_v55 = vrot.slane %v4336_v48, 5  ;;  %v9187_v14 = vshll.u32 %v11320_v34, 16  ;;  %v11324_v41 = vld [vmem:[%s13238_s11 + $0x11c] sm:$0x1] }
 0x209   : > { %12323 = vmatprep.mubr.msk.bf16.mxu0 %vm302_vm1, %v14314_v10  ;;  %v4333_v56 = vor.u32 %v4332_v59, %v4328_v44  ;;  %v9180_v58 = vrot.slane %v9178_v60, 4  ;;  %v9183_v39 = vrot.slane %v9181_v51, 5  ;;  %v9191_v3 = vshrl.u32 %v11320_v34, 16  ;;  %v10739_v10 = vld [vmem:[%s13238_s11 + $0xe8] sm:$0xf] }
 0x20a   : > { %v9176_v45 = vsel %vm13357_vm4, %v9171_v11, %v9175_v52  ;;  %v4324_v1 = vrot.slane %v4323_v4, 4  ;;  %v9189_v21 = vrot.slane %v9187_v14, 5  ;;  %v9197_v61 = vshll.u32 %v11321_v17, 16 }
 0x20b   : > { %v14579_v53 = vcombine.low %v9166_v28, %v9176_v45  ;;  %v4334_v54 = vrot.slane %v4333_v56, 4  ;;  %v9184_v29 = vor.u32 %v9183_v39, %v9180_v58  ;;  %v9193_v24 = vrot.slane %v9191_v3, 4 }
 0x20c   : > { %v4329_v18 = vsel %vm13357_vm4, %v4324_v1, %v4328_v44  ;;  %v4341_v15 = vshrl.u32 %v10738_v63, 16  ;;  %v9199_v5 = vrot.slane %v9197_v61, 5  ;;  %v4344_v22 = vshll.u32 %v10738_v63, 16 }
 0x20d   : > { %12052 = vmatmul.mubr.msk.bf16.gmra.mrb[16].mxu1 %vm302_vm1, %v14328_v49  ;;  %v4339_v2 = vsel %vm13357_vm4, %v4334_v54, %v4338_v55  ;;  %v4350_v19 = vshll.u32 %v10739_v10, 16  ;;  %v9185_v37 = vrot.slane %v9184_v29, 4  ;;  %v9194_v42 = vor.u32 %v9193_v24, %v9189_v21  ;;  %v10743_v54 = vld [vmem:[%s13238_s11 + $0x11c] sm:$0x1] }
 0x20e   : > { %12055 = vmatprep.mubr.msk.bf16.mxu1 %vm302_vm1, %v14353_v43  ;;  %v14591_v49 = vcombine.low %v4329_v18, %v4339_v2  ;;  %v4343_v31 = vrot.slane %v4341_v15, 4  ;;  %v4346_v52 = vrot.slane %v4344_v22, 5  ;;  %v4354_v40 = vshrl.u32 %v10739_v10, 16  ;;  %v11326_v22 = vld [vmem:[%s13238_s11 + $0x148] sm:$0xf] }
 0x20f   : > { %v4352_v43 = vrot.slane %v4350_v19, 5  ;;  %v4360_v33 = vshll.u32 %v10740_v30, 16  ;;  %v9190_v35 = vsel %vm13357_vm4, %v9185_v37, %v9189_v21  ;;  %v9195_v36 = vrot.slane %v9194_v42, 4  ;;  %v11325_v30 = vld [vmem:[%s13238_s11 + $0x144] sm:$0xf] }
 0x210   : > { %12324 = vmatmul.mubr.msk.bf16.gmra.mrb[16].mxu0 %vm302_vm1, %v14340_v8  ;;  %v9202_v34 = vshrl.u32 %v11322_v57, 16  ;;  %v9205_v44 = vshll.u32 %v11322_v57, 16  ;;  %v4347_v59 = vor.u32 %v4346_v52, %v4343_v31  ;;  %v4356_v48 = vrot.slane %v4354_v40, 4  ;;  %v10741_v8 = vld [vmem:[%s13238_s11 + $0x114] sm:$0xf] }
 0x211   : > { %12327 = vmatprep.mubr.msk.bf16.mxu0 %vm302_vm1, %v14368_v25  ;;  %v4362_v60 = vrot.slane %v4360_v33, 5  ;;  %v9211_v28 = vshll.u32 %v11323_v27, 16  ;;  %v9200_v11 = vsel %vm13357_vm4, %v9195_v36, %v9199_v5  ;;  %v9215_v51 = vshrl.u32 %v11323_v27, 16  ;;  %v10742_v25 = vld [vmem:[%s13238_s11 + $0x118] sm:$0xf] }
 0x212   : > { %v9204_v4 = vrot.slane %v9202_v34, 4  ;;  %v9207_v17 = vrot.slane %v9205_v44, 5  ;;  %v14605_v56 = vcombine.low %v9190_v35, %v9200_v11  ;;  %v4348_v55 = vrot.slane %v4347_v59, 4  ;;  %v11327_v27 = vld [vmem:[%s13238_s11 + $0x14c] sm:$0x1] }
 0x213   : > { %v4357_v58 = vor.u32 %v4356_v48, %v4352_v43  ;;  %v9213_v14 = vrot.slane %v9211_v28, 5  ;;  %v9217_v45 = vrot.slane %v9215_v51, 4  ;;  %v9221_v1 = vshll.u32 %v11324_v41, 16  ;;  %v10745_v48 = vld [vmem:[%s13238_s11 + $0x148] sm:$0xf] }
 0x214   : > { %v9208_v63 = vor.u32 %v9207_v17, %v9204_v4  ;;  %v4365_v39 = vshrl.u32 %v10741_v8, 16  ;;  %v4353_v3 = vsel %vm13357_vm4, %v4348_v55, %v4352_v43  ;;  %v4368_v21 = vshll.u32 %v10741_v8, 16 }
 0x215   : > { %12056 = vmatmul.mubr.msk.bf16.gmra.mrb[20].mxu1 %vm302_vm1, %v14379_v47  ;;  %v4358_v10 = vrot.slane %v4357_v58, 4  ;;  %v4374_v61 = vshll.u32 %v10742_v25, 16  ;;  %v9218_v29 = vor.u32 %v9217_v45, %v9213_v14  ;;  %v9223_v24 = vrot.slane %v9221_v1, 5 }
 0x216   : > { %12059 = vmatprep.mubr.msk.bf16.mxu1 %vm302_vm1, %v14409_v9  ;;  %v9209_v18 = vrot.slane %v9208_v63, 4  ;;  %v4367_v47 = vrot.slane %v4365_v39, 4  ;;  %v4370_v15 = vrot.slane %v4368_v21, 5  ;;  %v4378_v5 = vshrl.u32 %v10742_v25, 16  ;;  %v10746_v63 = vld [vmem:[%s13238_s11 + $0x14c] sm:$0x1] }
 0x217   : > { %v4363_v9 = vsel %vm13357_vm4, %v4358_v10, %v4362_v60  ;;  %v4376_v2 = vrot.slane %v4374_v61, 5  ;;  %v9219_v37 = vrot.slane %v9218_v29, 4  ;;  %v4384_v42 = vshll.u32 %v10743_v54, 16  ;;  %v11329_v10 = vld [vmem:[%s13238_s11 + $0x178] sm:$0xf] }
 0x218   : > { %12328 = vmatmul.mubr.msk.bf16.gmra.mrb[20].mxu0 %vm302_vm1, %v14394_v38  ;;  %v14622_v19 = vcombine.low %v4353_v3, %v4363_v9  ;;  %v9214_v57 = vsel %vm13357_vm4, %v9209_v18, %v9213_v14  ;;  %v4371_v38 = vor.u32 %v4370_v15, %v4367_v47  ;;  %v4380_v31 = vrot.slane %v4378_v5, 4  ;;  %v11330_v15 = vld [vmem:[%s13238_s11 + $0x17c] sm:$0x1] }
 0x219   : > { %12331 = vmatprep.mubr.msk.bf16.mxu0 %vm302_vm1, %v14419_v32  ;;  %v9226_v52 = vshrl.u32 %v11325_v30, 16  ;;  %v9229_v43 = vshll.u32 %v11325_v30, 16  ;;  %v9224_v40 = vsel %vm13357_vm4, %v9219_v37, %v9223_v24  ;;  %v4386_v33 = vrot.slane %v4384_v42, 5  ;;  %v10744_v32 = vld [vmem:[%s13238_s11 + $0x144] sm:$0xf] }
 0x21a   : > { %v9235_v35 = vshll.u32 %v11326_v22, 16  ;;  %v9239_v36 = vshrl.u32 %v11326_v22, 16  ;;  %v14630_v41 = vcombine.low %v9214_v57, %v9224_v40  ;;  %v4372_v34 = vrot.slane %v4371_v38, 4  ;;  %v10748_v38 = vld [vmem:[%s13238_s11 + $0x178] sm:$0xf] }
 0x21b   : > { %v4381_v44 = vor.u32 %v4380_v31, %v4376_v2  ;;  %v9228_v59 = vrot.slane %v9226_v52, 4  ;;  %v9231_v60 = vrot.slane %v9229_v43, 5  ;;  %v9245_v11 = vshll.u32 %v11327_v27, 16 }
 0x21c   : > { %v9237_v28 = vrot.slane %v9235_v35, 5  ;;  %v9241_v8 = vrot.slane %v9239_v36, 4  ;;  %v4377_v4 = vsel %vm13357_vm4, %v4372_v34, %v4376_v2  ;;  %v4389_v51 = vshrl.u32 %v10744_v32, 16  ;;  %v10749_v36 = vld [vmem:[%s13238_s11 + $0x17c] sm:$0x1] }
 0x21d   : > { %12060 = vmatmul.mubr.msk.bf16.gmra.mrb[24].mxu1 %vm302_vm1, %v14435_v6  ;;  %v4382_v17 = vrot.slane %v4381_v44, 4  ;;  %v4392_v25 = vshll.u32 %v10744_v32, 16  ;;  %v9232_v55 = vor.u32 %v9231_v60, %v9228_v59  ;;  %v9247_v14 = vrot.slane %v9245_v11, 5  ;;  %v11328_v6 = vld [vmem:[%s13238_s11 + $0x174] sm:$0xf] }
 0x21e   : > { %12063 = vmatprep.mubr.msk.bf16.mxu1 %vm302_vm1, %v14458_v26  ;;  %v9242_v58 = vor.u32 %v9241_v8, %v9237_v28  ;;  %v4398_v45 = vshll.u32 %v10745_v48, 16  ;;  %v4391_v26 = vrot.slane %v4389_v51, 4  ;;  %v4402_v3 = vshrl.u32 %v10745_v48, 16 }
 0x21f   : > { %v4387_v1 = vsel %vm13357_vm4, %v4382_v17, %v4386_v33  ;;  %v4394_v39 = vrot.slane %v4392_v25, 5  ;;  %v9233_v21 = vrot.slane %v9232_v55, 4  ;;  %v4408_v24 = vshll.u32 %v10746_v63, 16  ;;  %v11332_v25 = vld [vmem:[%s13238_s11 + $0x1a8] sm:$0xf] }
 0x220   : > { %12332 = vmatmul.mubr.msk.bf16.gmra.mrb[24].mxu0 %vm302_vm1, %v14445_v46  ;;  %v14648_v54 = vcombine.low %v4377_v4, %v4387_v1  ;;  %v9243_v61 = vrot.slane %v9242_v58, 4  ;;  %v4400_v18 = vrot.slane %v4398_v45, 5  ;;  %v4404_v46 = vrot.slane %v4402_v3, 4  ;;  %v11333_v1 = vld [vmem:[%s13238_s11 + $0x1ac] sm:$0x1] }
 0x221   : > { %12335 = vmatprep.mubr.msk.bf16.mxu0 %vm302_vm1, %v14473_v12  ;;  %v4395_v29 = vor.u32 %v4394_v39, %v4391_v26  ;;  %v9250_v47 = vshrl.u32 %v11328_v6, 16  ;;  %v9238_v30 = vsel %vm13357_vm4, %v9233_v21, %v9237_v28  ;;  %v9253_v2 = vshll.u32 %v11328_v6, 16  ;;  %v10747_v12 = vld [vmem:[%s13238_s11 + $0x174] sm:$0xf]  ;;  %v10750_v21 = vld [vmem:[%s13238_s11 + $0x1a4] sm:$0xf] }
 0x222   : > { %v9248_v9 = vsel %vm13357_vm4, %v9243_v61, %v9247_v14  ;;  %v9259_v5 = vshll.u32 %v11329_v10, 16  ;;  %v4405_v37 = vor.u32 %v4404_v46, %v4400_v18  ;;  %v4410_v42 = vrot.slane %v4408_v24, 5  ;;  %v10751_v24 = vld [vmem:[%s13238_s11 + $0x1a8] sm:$0xf] }
 0x223   : > { %v14656_v22 = vcombine.low %v9238_v30, %v9248_v9  ;;  %v4396_v57 = vrot.slane %v4395_v29, 4  ;;  %v9252_v31 = vrot.slane %v9250_v47, 4  ;;  %v9255_v27 = vrot.slane %v9253_v2, 5 }
 0x224   : > { %v9261_v52 = vrot.slane %v9259_v5, 5  ;;  %v9263_v43 = vshrl.u32 %v11329_v10, 16  ;;  %v4406_v33 = vrot.slane %v4405_v37, 4  ;;  %v9269_v35 = vshll.u32 %v11330_v15, 16 }
 0x225   : > { %12064 = vmatmul.mubr.msk.bf16.gmra.mrb[28].mxu1 %vm302_vm1, %v14483_v0  ;;  %v4401_v40 = vsel %vm13357_vm4, %v4396_v57, %v4400_v18  ;;  %v4413_v32 = vshrl.u32 %v10747_v12, 16  ;;  %v9256_v34 = vor.u32 %v9255_v27, %v9252_v31  ;;  %v4416_v59 = vshll.u32 %v10747_v12, 16  ;;  %v11331_v0 = vld [vmem:[%s13238_s11 + $0x1a4] sm:$0xf]  ;;  %v10752_v12 = vld [vmem:[%s13238_s11 + $0x1ac] sm:$0x1] }
 0x226   : > { %12069 = vmatprep.mubr.msk.bf16.mxu1 %vm302_vm1, %v14514_v62  ;;  %v9265_v44 = vrot.slane %v9263_v43, 4  ;;  %v4422_v48 = vshll.u32 %v10748_v38, 16  ;;  %v4411_v60 = vsel %vm13357_vm4, %v4406_v33, %v4410_v42  ;;  %v9271_v62 = vrot.slane %v9269_v35, 5  ;;  %v11334_v31 = vld [vmem:[%s13238_s11 + $0x1d4] sm:$0xf] }
 0x227   : > { %v4415_v28 = vrot.slane %v4413_v32, 4  ;;  %v4426_v8 = vshrl.u32 %v10748_v38, 16  ;;  %v14673_v11 = vcombine.low %v4401_v40, %v4411_v60  ;;  %v9257_v4 = vrot.slane %v9256_v34, 4  ;;  %v11335_v33 = vld [vmem:[%s13238_s11 + $0x1d8] sm:$0xf] }
 0x228   : > { %12336 = vmatmul.mubr.msk.bf16.gmra.mrb[28].mxu0 %vm302_vm1, %v14501_v13  ;;  %v9266_v17 = vor.u32 %v9265_v44, %v9261_v52  ;;  %v4418_v51 = vrot.slane %v4416_v59, 5  ;;  %v4424_v55 = vrot.slane %v4422_v48, 5  ;;  %v4432_v13 = vshll.u32 %v10749_v36, 16  ;;  %v11336_v59 = vld [vmem:[%s13238_s11 + $0x1dc] sm:$0x1] }
 0x229   : > { %12341 = vmatprep.mubr.msk.bf16.mxu0 %vm302_vm1, %v14526_v7  ;;  %v4428_v58 = vrot.slane %v4426_v8, 4  ;;  %v9274_v14 = vshrl.u32 %v11331_v0, 16  ;;  %v9262_v63 = vsel %vm13357_vm4, %v9257_v4, %v9261_v52  ;;  %v9277_v26 = vshll.u32 %v11331_v0, 16  ;;  %v10753_v8 = vld [vmem:[%s13238_s11 + $0x1d4] sm:$0xf] }
 0x22a   : > { %v9267_v45 = vrot.slane %v9266_v17, 4  ;;  %v4419_v6 = vor.u32 %v4418_v51, %v4415_v28  ;;  %v4434_v39 = vrot.slane %v4432_v13, 5  ;;  %v9283_v10 = vshll.u32 %v11332_v25, 16 }
 0x22b   : > { %v4429_v7 = vor.u32 %v4428_v58, %v4424_v55  ;;  %v9276_v3 = vrot.slane %v9274_v14, 4  ;;  %v9279_v29 = vrot.slane %v9277_v26, 5  ;;  %v9287_v46 = vshrl.u32 %v11332_v25, 16 }
 0x22c   : > { %v9272_v61 = vsel %vm13357_vm4, %v9267_v45, %v9271_v62  ;;  %v4420_v18 = vrot.slane %v4419_v6, 4  ;;  %v9285_v9 = vrot.slane %v9283_v10, 5  ;;  %v9293_v15 = vshll.u32 %v11333_v1, 16 }
 0x22d   : > { %12070 = vmatmul.mubr.msk.bf16.vlgmr.msra.gmra.mrb[0].mxu1 %vm302_vm1, %v14540_v50  ;;  %v14687_v47 = vcombine.low %v9262_v63, %v9272_v61  ;;  %v4430_v30 = vrot.slane %v4429_v7, 4  ;;  %v9280_v50 = vor.u32 %v9279_v29, %v9276_v3  ;;  %v9289_v5 = vrot.slane %v9287_v46, 4  ;;  %v11337_v29 = vld [vmem:[%s13238_s11 + $0x204] sm:$0xf] }
 0x22e   : > { %12073 = vmatprep.mubr.msk.bf16.mxu1 %vm302_vm1, %v14565_v20  ;;  %v4425_v2 = vsel %vm13357_vm4, %v4420_v18, %v4424_v55  ;;  %v4437_v57 = vshrl.u32 %v10750_v21, 16  ;;  %v9295_v20 = vrot.slane %v9293_v15, 5  ;;  %v4440_v42 = vshll.u32 %v10750_v21, 16  ;;  %v10754_v55 = vld [vmem:[%s13238_s11 + $0x1d8] sm:$0xf] }
 0x22f   : > { %v4435_v37 = vsel %vm13357_vm4, %v4430_v30, %v4434_v39  ;;  %v4446_v38 = vshll.u32 %v10751_v24, 16  ;;  %v9281_v52 = vrot.slane %v9280_v50, 4  ;;  %v9290_v43 = vor.u32 %v9289_v5, %v9285_v9  ;;  %v10755_v39 = vld [vmem:[%s13238_s11 + $0x1dc] sm:$0x1] }
 0x230   : > { %12342 = vmatmul.mubr.msk.bf16.vlgmr.msra.gmra.mrb[0].mxu0 %vm302_vm1, %v14552_v23  ;;  %v14699_v27 = vcombine.low %v4425_v2, %v4435_v37  ;;  %v4439_v40 = vrot.slane %v4437_v57, 4  ;;  %v4442_v35 = vrot.slane %v4440_v42, 5  ;;  %v4450_v36 = vshrl.u32 %v10751_v24, 16  ;;  %v11339_v57 = vld [vmem:[%s13238_s11 + $0x20c] sm:$0x1] }
 0x231   : > { %12345 = vmatprep.mubr.msk.bf16.mxu0 %vm302_vm1, %v14579_v53  ;;  %v4448_v23 = vrot.slane %v4446_v38, 5  ;;  %v4456_v32 = vshll.u32 %v10752_v12, 16  ;;  %v9286_v34 = vsel %vm13357_vm4, %v9281_v52, %v9285_v9  ;;  %v9291_v44 = vrot.slane %v9290_v43, 4  ;;  %v11338_v9 = vld [vmem:[%s13238_s11 + $0x208] sm:$0xf] }
 0x232   : > { %v9298_v48 = vshrl.u32 %v11334_v31, 16  ;;  %v9301_v0 = vshll.u32 %v11334_v31, 16  ;;  %v4443_v53 = vor.u32 %v4442_v35, %v4439_v40  ;;  %v4452_v60 = vrot.slane %v4450_v36, 4  ;;  %v10756_v43 = vld [vmem:[%s13238_s11 + $0x204] sm:$0xf] }
 0x233   : > { %v4458_v62 = vrot.slane %v4456_v32, 5  ;;  %v9307_v28 = vshll.u32 %v11335_v33, 16  ;;  %v9296_v4 = vsel %vm13357_vm4, %v9291_v44, %v9295_v20  ;;  %v9311_v25 = vshrl.u32 %v11335_v33, 16  ;;  %v10757_v36 = vld [vmem:[%s13238_s11 + $0x208] sm:$0xf] }
 0x234   : > { %v9300_v17 = vrot.slane %v9298_v48, 4  ;;  %v9303_v51 = vrot.slane %v9301_v0, 5  ;;  %v14713_v58 = vcombine.low %v9286_v34, %v9296_v4  ;;  %v4444_v13 = vrot.slane %v4443_v53, 4  ;;  %v11340_v4 = vld [vmem:[%s13238_s11 + $0x234] sm:$0xf] }
 0x235   : > { %12074 = vmatmul.mubr.msk.bf16.gmra.mrb[4].mxu1 %vm302_vm1, %v14591_v49  ;;  %v4453_v14 = vor.u32 %v4452_v60, %v4448_v23  ;;  %v9309_v63 = vrot.slane %v9307_v28, 5  ;;  %v9313_v6 = vrot.slane %v9311_v25, 4  ;;  %v9317_v49 = vshll.u32 %v11336_v59, 16  ;;  %v10758_v28 = vld [vmem:[%s13238_s11 + $0x20c] sm:$0x1] }
 0x236   : > { %12077 = vmatprep.mubr.msk.bf16.mxu1 %vm302_vm1, %v14622_v19  ;;  %v9304_v45 = vor.u32 %v9303_v51, %v9300_v17  ;;  %v4461_v1 = vshrl.u32 %v10753_v8, 16  ;;  %v4449_v26 = vsel %vm13357_vm4, %v4444_v13, %v4448_v23  ;;  %v4464_v19 = vshll.u32 %v10753_v8, 16 }
 0x237   : > { %v4454_v7 = vrot.slane %v4453_v14, 4  ;;  %v4470_v3 = vshll.u32 %v10754_v55, 16  ;;  %v9314_v21 = vor.u32 %v9313_v6, %v9309_v63  ;;  %v9319_v61 = vrot.slane %v9317_v49, 5 }
 0x238   : > { %12346 = vmatmul.mubr.msk.bf16.gmra.mrb[4].mxu0 %vm302_vm1, %v14605_v56  ;;  %v9305_v10 = vrot.slane %v9304_v45, 4  ;;  %v4463_v18 = vrot.slane %v4461_v1, 4  ;;  %v4466_v46 = vrot.slane %v4464_v19, 5  ;;  %v4474_v30 = vshrl.u32 %v10754_v55, 16  ;;  %v11341_v55 = vld [vmem:[%s13238_s11 + $0x238] sm:$0xf] }
 0x239   : > { %12349 = vmatprep.mubr.msk.bf16.mxu0 %vm302_vm1, %v14630_v41  ;;  %v4459_v56 = vsel %vm13357_vm4, %v4454_v7, %v4458_v62  ;;  %v4472_v24 = vrot.slane %v4470_v3, 5  ;;  %v9315_v50 = vrot.slane %v9314_v21, 4  ;;  %v4480_v41 = vshll.u32 %v10755_v39, 16  ;;  %v11342_v39 = vld [vmem:[%s13238_s11 + $0x23c] sm:$0x1] }
 0x23a   : > { %v10783_v15 = vcombine.low %v4449_v26, %v4459_v56  ;;  %v9310_v2 = vsel %vm13357_vm4, %v9305_v10, %v9309_v63  ;;  %v4467_v5 = vor.u32 %v4466_v46, %v4463_v18  ;;  %v4476_v12 = vrot.slane %v4474_v30, 4  ;;  %v10759_v10 = vld [vmem:[%s13238_s11 + $0x234] sm:$0xf]  ;;  %v10760_v56 = vld [vmem:[%s13238_s11 + $0x238] sm:$0xf] }
 0x23b   : > { %v9322_v37 = vshrl.u32 %v11337_v29, 16  ;;  %v9325_v20 = vshll.u32 %v11337_v29, 16  ;;  %v9320_v42 = vsel %vm13357_vm4, %v9315_v50, %v9319_v61  ;;  %v4482_v38 = vrot.slane %v4480_v41, 5  ;;  %v10761_v41 = vld [vmem:[%s13238_s11 + $0x23c] sm:$0x1] }
 0x23c   : > { %v9331_v31 = vshll.u32 %v11338_v9, 16  ;;  %v9335_v52 = vshrl.u32 %v11338_v9, 16  ;;  %v11367_v40 = vcombine.low %v9310_v2, %v9320_v42  ;;  %v4468_v33 = vrot.slane %v4467_v5, 4 }
 0x23d   : > { %12078 = vmatmul.mubr.msk.bf16.gmra.mrb[8].mxu1 %vm302_vm1, %v14648_v54  ;;  %v4477_v35 = vor.u32 %v4476_v12, %v4472_v24  ;;  %v9324_v23 = vrot.slane %v9322_v37, 4  ;;  %v9327_v32 = vrot.slane %v9325_v20, 5  ;;  %v9341_v44 = vshll.u32 %v11339_v57, 16  ;;  %v11343_v20 = vld [vmem:[%s13238_s11 + $0x264] sm:$0xf] }
 0x23e   : > { %12081 = vmatprep.mubr.msk.bf16.mxu1 %vm302_vm1, %v14673_v11  ;;  %v9333_v34 = vrot.slane %v9331_v31, 5  ;;  %v9337_v54 = vrot.slane %v9335_v52, 4  ;;  %v4473_v59 = vsel %vm13357_vm4, %v4468_v33, %v4472_v24  ;;  %v4485_v11 = vshrl.u32 %v10756_v43, 16 }
 0x23f   : > { %v4478_v48 = vrot.slane %v4477_v35, 4  ;;  %v4488_v0 = vshll.u32 %v10756_v43, 16  ;;  %v9328_v53 = vor.u32 %v9327_v32, %v9324_v23  ;;  %v9343_v62 = vrot.slane %v9341_v44, 5  ;;  %v11344_v23 = vld [vmem:[%s13238_s11 + $0x268] sm:$0xf] }
 0x240   : > { %12350 = vmatmul.mubr.msk.bf16.gmra.mrb[8].mxu0 %vm302_vm1, %v14656_v22  ;;  %v9338_v60 = vor.u32 %v9337_v54, %v9333_v34  ;;  %v4494_v8 = vshll.u32 %v10757_v36, 16  ;;  %v4487_v22 = vrot.slane %v4485_v11, 4  ;;  %v4498_v25 = vshrl.u32 %v10757_v36, 16 }
 0x241   : > { %12353 = vmatprep.mubr.msk.bf16.mxu0 %vm302_vm1, %v14687_v47  ;;  %v4483_v17 = vsel %vm13357_vm4, %v4478_v48, %v4482_v38  ;;  %v4490_v51 = vrot.slane %v4488_v0, 5  ;;  %v9329_v14 = vrot.slane %v9328_v53, 4  ;;  %v4504_v49 = vshll.u32 %v10758_v28, 16  ;;  %v11345_v48 = vld [vmem:[%s13238_s11 + $0x26c] sm:$0x1] }
 0x242   : > { %v10784_v13 = vcombine.low %v4473_v59, %v4483_v17  ;;  %v9339_v63 = vrot.slane %v9338_v60, 4  ;;  %v4496_v45 = vrot.slane %v4494_v8, 5  ;;  %v4500_v6 = vrot.slane %v4498_v25, 4  ;;  %v10762_v28 = vld [vmem:[%s13238_s11 + $0x264] sm:$0xf] }
 0x243   : > { %v4491_v47 = vor.u32 %v4490_v51, %v4487_v22  ;;  %v9346_v1 = vshrl.u32 %v11340_v4, 16  ;;  %v9334_v26 = vsel %vm13357_vm4, %v9329_v14, %v9333_v34  ;;  %v9349_v19 = vshll.u32 %v11340_v4, 16  ;;  %v10763_v51 = vld [vmem:[%s13238_s11 + $0x268] sm:$0xf] }
 0x244   : > { %v9344_v7 = vsel %vm13357_vm4, %v9339_v63, %v9343_v62  ;;  %v9355_v3 = vshll.u32 %v11341_v55, 16  ;;  %v4501_v18 = vor.u32 %v4500_v6, %v4496_v45  ;;  %v4506_v29 = vrot.slane %v4504_v49, 5  ;;  %v10764_v6 = vld [vmem:[%s13238_s11 + $0x26c] sm:$0x1] }
 0x245   : > { %12082 = vmatmul.mubr.msk.bf16.gmra.mrb[12].mxu1 %vm302_vm1, %v14699_v27  ;;  %v11368_v21 = vcombine.low %v9334_v26, %v9344_v7  ;;  %v4492_v61 = vrot.slane %v4491_v47, 4  ;;  %v9348_v27 = vrot.slane %v9346_v1, 4  ;;  %v9351_v46 = vrot.slane %v9349_v19, 5  ;;  %v11346_v19 = vld [vmem:[%s13238_s11 + $0x294] sm:$0xf] }
 0x246   : > { %12085 = vmatprep.mubr.msk.bf16.mxu1 %vm302_vm1, %v10783_v15  ;;  %v9357_v24 = vrot.slane %v9355_v3, 5  ;;  %v9359_v30 = vshrl.u32 %v11341_v55, 16  ;;  %v4502_v2 = vrot.slane %v4501_v18, 4  ;;  %v9365_v50 = vshll.u32 %v11342_v39, 16  ;;  %v11347_v18 = vld [vmem:[%s13238_s11 + $0x298] sm:$0xf] }
 0x247   : > { %v4497_v9 = vsel %vm13357_vm4, %v4492_v61, %v4496_v45  ;;  %v4509_v15 = vshrl.u32 %v10759_v10, 16  ;;  %v9352_v5 = vor.u32 %v9351_v46, %v9348_v27  ;;  %v4512_v57 = vshll.u32 %v10759_v10, 16 }
 0x248   : > { %12354 = vmatmul.mubr.msk.bf16.gmra.mrb[12].mxu0 %vm302_vm1, %v14713_v58  ;;  %v9361_v12 = vrot.slane %v9359_v30, 4  ;;  %v4518_v37 = vshll.u32 %v10760_v56, 16  ;;  %v4507_v42 = vsel %vm13357_vm4, %v4502_v2, %v4506_v29  ;;  %v9367_v38 = vrot.slane %v9365_v50, 5 }
 0x249   : > { %12357 = vmatprep.mubr.msk.bf16.mxu0 %vm302_vm1, %v11367_v40  ;;  %v4511_v58 = vrot.slane %v4509_v15, 4  ;;  %v4522_v31 = vshrl.u32 %v10760_v56, 16  ;;  %v10785_v52 = vcombine.low %v4497_v9, %v4507_v42  ;;  %v9353_v43 = vrot.slane %v9352_v5, 4  ;;  %v11348_v9 = vld [vmem:[%s13238_s11 + $0x29c] sm:$0x1] }
 0x24a   : > { %v9362_v33 = vor.u32 %v9361_v12, %v9357_v24  ;;  %v4514_v35 = vrot.slane %v4512_v57, 5  ;;  %v4520_v36 = vrot.slane %v4518_v37, 5  ;;  %v4528_v32 = vshll.u32 %v10761_v41, 16  ;;  %v10765_v57 = vld [vmem:[%s13238_s11 + $0x294] sm:$0xf] }
 0x24b   : > { %v4524_v40 = vrot.slane %v4522_v31, 4  ;;  %v9370_v34 = vshrl.u32 %v11343_v20, 16  ;;  %v9358_v54 = vsel %vm13357_vm4, %v9353_v43, %v9357_v24  ;;  %v9373_v11 = vshll.u32 %v11343_v20, 16 }
 0x24c   : > { %v9363_v44 = vrot.slane %v9362_v33, 4  ;;  %v4515_v59 = vor.u32 %v4514_v35, %v4511_v58  ;;  %v4530_v53 = vrot.slane %v4528_v32, 5  ;;  %v9379_v62 = vshll.u32 %v11344_v23, 16  ;;  %v10766_v58 = vld [vmem:[%s13238_s11 + $0x298] sm:$0xf] }
 0x24d   : > { %12086 = vmatmul.mubr.msk.bf16.gmra.mrb[16].mxu1 %vm302_vm1, %v10784_v13  ;;  %v4525_v0 = vor.u32 %v4524_v40, %v4520_v36  ;;  %v9372_v60 = vrot.slane %v9370_v34, 4  ;;  %v9375_v17 = vrot.slane %v9373_v11, 5  ;;  %v9383_v22 = vshrl.u32 %v11344_v23, 16 }
 0x24e   : > { %12089 = vmatprep.mubr.msk.bf16.mxu1 %vm302_vm1, %v10785_v52  ;;  %v9368_v8 = vsel %vm13357_vm4, %v9363_v44, %v9367_v38  ;;  %v4516_v4 = vrot.slane %v4515_v59, 4  ;;  %v9381_v13 = vrot.slane %v9379_v62, 5  ;;  %v9389_v14 = vshll.u32 %v11345_v48, 16 }
 0x24f   : > { %v11369_v25 = vcombine.low %v9358_v54, %v9368_v8  ;;  %v4526_v55 = vrot.slane %v4525_v0, 4  ;;  %v9376_v45 = vor.u32 %v9375_v17, %v9372_v60  ;;  %v9385_v47 = vrot.slane %v9383_v22, 4  ;;  %v10767_v54 = vld [vmem:[%s13238_s11 + $0x29c] sm:$0x1]  ;;  %v11349_v60 = vld [vmem:[%s13238_s11 + $0x2c4] sm:$0xf] }
 0x250   : > { %12358 = vmatmul.mubr.msk.bf16.gmra.mrb[16].mxu0 %vm302_vm1, %v11368_v21  ;;  %v4521_v63 = vsel %vm13357_vm4, %v4516_v4, %v4520_v36  ;;  %v4533_v49 = vshrl.u32 %v10762_v28, 16  ;;  %v9391_v26 = vrot.slane %v9389_v14, 5  ;;  %v4536_v7 = vshll.u32 %v10762_v28, 16  ;;  %v11350_v17 = vld [vmem:[%s13238_s11 + $0x2c8] sm:$0xf] }
 0x251   : > { %12361 = vmatprep.mubr.msk.bf16.mxu0 %vm302_vm1, %v11369_v25  ;;  %v4531_v1 = vsel %vm13357_vm4, %v4526_v55, %v4530_v53  ;;  %v4542_v39 = vshll.u32 %v10763_v51, 16  ;;  %v9377_v10 = vrot.slane %v9376_v45, 4  ;;  %v9386_v21 = vor.u32 %v9385_v47, %v9381_v13 }
 0x252   : > { %v10786_v3 = vcombine.low %v4521_v63, %v4531_v1  ;;  %v4535_v61 = vrot.slane %v4533_v49, 4  ;;  %v4538_v29 = vrot.slane %v4536_v7, 5  ;;  %v4546_v27 = vshrl.u32 %v10763_v51, 16  ;;  %v11351_v63 = vld [vmem:[%s13238_s11 + $0x2cc] sm:$0x1] }
 0x253   : > { %v4544_v56 = vrot.slane %v4542_v39, 5  ;;  %v4552_v46 = vshll.u32 %v10764_v6, 16  ;;  %v9382_v24 = vsel %vm13357_vm4, %v9377_v10, %v9381_v13  ;;  %v9387_v30 = vrot.slane %v9386_v21, 4  ;;  %v10768_v7 = vld [vmem:[%s13238_s11 + $0x2c4] sm:$0xf] }
 0x254   : > { %v9394_v2 = vshrl.u32 %v11346_v19, 16  ;;  %v9397_v50 = vshll.u32 %v11346_v19, 16  ;;  %v4539_v41 = vor.u32 %v4538_v29, %v4535_v61  ;;  %v4548_v15 = vrot.slane %v4546_v27, 4  ;;  %v10769_v21 = vld [vmem:[%s13238_s11 + $0x2c8] sm:$0xf] }
 0x255   : > { %12090 = vmatmul.mubr.msk.bf16.gmra.mrb[20].mxu1 %vm302_vm1, %v10786_v3  ;;  %v4554_v5 = vrot.slane %v4552_v46, 5  ;;  %v9403_v12 = vshll.u32 %v11347_v18, 16  ;;  %v9392_v37 = vsel %vm13357_vm4, %v9387_v30, %v9391_v26  ;;  %v9407_v38 = vshrl.u32 %v11347_v18, 16 }
 0x256   : > { %v9396_v20 = vrot.slane %v9394_v2, 4  ;;  %v9399_v42 = vrot.slane %v9397_v50, 5  ;;  %v11370_v31 = vcombine.low %v9382_v24, %v9392_v37  ;;  %v4540_v52 = vrot.slane %v4539_v41, 4  ;;  %v10770_v41 = vld [vmem:[%s13238_s11 + $0x2cc] sm:$0x1] }
 0x257   : > { %v4549_v43 = vor.u32 %v4548_v15, %v4544_v56  ;;  %v9405_v33 = vrot.slane %v9403_v12, 5  ;;  %v9409_v23 = vrot.slane %v9407_v38, 4  ;;  %v9413_v36 = vshll.u32 %v11348_v9, 16 }
 0x258   : > { %v9400_v35 = vor.u32 %v9399_v42, %v9396_v20  ;;  %v4557_v40 = vshrl.u32 %v10765_v57, 16  ;;  %12362 = vmatmul.mubr.msk.bf16.gmra.mrb[20].mxu0 %vm302_vm1, %v11370_v31  ;;  %v4545_v32 = vsel %vm13357_vm4, %v4540_v52, %v4544_v56  ;;  %v4560_v44 = vshll.u32 %v10765_v57, 16  ;;  %v11353_v42 = vld [vmem:[%s13238_s11 + $0x2f8] sm:$0xf] }
 0x259   : > { %v4550_v34 = vrot.slane %v4549_v43, 4  ;;  %v4566_v59 = vshll.u32 %v10766_v58, 16  ;;  %v9410_v11 = vor.u32 %v9409_v23, %v9405_v33  ;;  %v9415_v0 = vrot.slane %v9413_v36, 5 }
 0x25a   : > { %v9401_v48 = vrot.slane %v9400_v35, 4  ;;  %v4559_v53 = vrot.slane %v4557_v40, 4  ;;  %v4562_v28 = vrot.slane %v4560_v44, 5  ;;  %v4570_v4 = vshrl.u32 %v10766_v58, 16  ;;  %v10771_v44 = vld [vmem:[%s13238_s11 + $0x2f4] sm:$0xf] }
 0x25b   : > { %v4555_v62 = vsel %vm13357_vm4, %v4550_v34, %v4554_v5  ;;  %v4568_v8 = vrot.slane %v4566_v59, 5  ;;  %v9411_v25 = vrot.slane %v9410_v11, 4  ;;  %v4576_v55 = vshll.u32 %v10767_v54, 16  ;;  %v11352_v5 = vld [vmem:[%s13238_s11 + $0x2f4] sm:$0xf] }
 0x25c   : > { %v10787_v22 = vcombine.low %v4545_v32, %v4555_v62  ;;  %v9406_v51 = vsel %vm13357_vm4, %v9401_v48, %v9405_v33  ;;  %v4563_v13 = vor.u32 %v4562_v28, %v4559_v53  ;;  %v4572_v14 = vrot.slane %v4570_v4, 4  ;;  %v11354_v32 = vld [vmem:[%s13238_s11 + $0x2fc] sm:$0x1]  ;;  %v10772_v53 = vld [vmem:[%s13238_s11 + $0x2f8] sm:$0xf] }
 0x25d   : > { %v9418_v45 = vshrl.u32 %v11349_v60, 16  ;;  %v9421_v47 = vshll.u32 %v11349_v60, 16  ;;  %v9416_v6 = vsel %vm13357_vm4, %v9411_v25, %v9415_v0  ;;  %v4578_v49 = vrot.slane %v4576_v55, 5 }
 0x25e   : > { %12093 = vmatprep.mubr.msk.bf16.mxu1 %vm302_vm1, %v10787_v22  ;;  %v9427_v1 = vshll.u32 %v11350_v17, 16  ;;  %v9431_v26 = vshrl.u32 %v11350_v17, 16  ;;  %v11371_v39 = vcombine.low %v9406_v51, %v9416_v6  ;;  %v4564_v19 = vrot.slane %v4563_v13, 4  ;;  %v10773_v51 = vld [vmem:[%s13238_s11 + $0x2fc] sm:$0x1] }
 0x25f   : > { %v4573_v3 = vor.u32 %v4572_v14, %v4568_v8  ;;  %v9420_v10 = vrot.slane %v9418_v45, 4  ;;  %v9423_v61 = vrot.slane %v9421_v47, 5  ;;  %v9437_v56 = vshll.u32 %v11351_v63, 16  ;;  %v11355_v45 = vld [vmem:[%s13238_s11 + $0x324] sm:$0xf] }
 0x260   : > { %v9429_v18 = vrot.slane %v9427_v1, 5  ;;  %v9433_v29 = vrot.slane %v9431_v26, 4  ;;  %12365 = vmatprep.mubr.msk.bf16.mxu0 %vm302_vm1, %v11371_v39  ;;  %v4569_v27 = vsel %vm13357_vm4, %v4564_v19, %v4568_v8  ;;  %v4581_v24 = vshrl.u32 %v10768_v7, 16 }
 0x261   : > { %v4574_v46 = vrot.slane %v4573_v3, 4  ;;  %v4584_v30 = vshll.u32 %v10768_v7, 16  ;;  %v9424_v9 = vor.u32 %v9423_v61, %v9420_v10  ;;  %v9439_v50 = vrot.slane %v9437_v56, 5  ;;  %v11356_v3 = vld [vmem:[%s13238_s11 + $0x328] sm:$0xf] }
 0x262   : > { %v9434_v2 = vor.u32 %v9433_v29, %v9429_v18  ;;  %v4590_v15 = vshll.u32 %v10769_v21, 16  ;;  %v4583_v57 = vrot.slane %v4581_v24, 4  ;;  %v4594_v20 = vshrl.u32 %v10769_v21, 16 }
 0x263   : > { %v4579_v12 = vsel %vm13357_vm4, %v4574_v46, %v4578_v49  ;;  %v4586_v37 = vrot.slane %v4584_v30, 5  ;;  %v9425_v58 = vrot.slane %v9424_v9, 4  ;;  %v4600_v35 = vshll.u32 %v10770_v41, 16  ;;  %v11357_v46 = vld [vmem:[%s13238_s11 + $0x32c] sm:$0x1] }
 0x264   : > { %v10788_v38 = vcombine.low %v4569_v27, %v4579_v12  ;;  %v9435_v31 = vrot.slane %v9434_v2, 4  ;;  %v4592_v52 = vrot.slane %v4590_v15, 5  ;;  %v4596_v33 = vrot.slane %v4594_v20, 4 }
 0x265   : > { %v4587_v43 = vor.u32 %v4586_v37, %v4583_v57  ;;  %v9442_v23 = vshrl.u32 %v11352_v5, 16  ;;  %v9430_v36 = vsel %vm13357_vm4, %v9425_v58, %v9429_v18  ;;  %v9445_v34 = vshll.u32 %v11352_v5, 16 }
 0x266   : > { %12094 = vmatmul.mubr.msk.bf16.gmra.mrb[24].mxu1 %vm302_vm1, %v10788_v38  ;;  %v9440_v40 = vsel %vm13357_vm4, %v9435_v31, %v9439_v50  ;;  %v9451_v54 = vshll.u32 %v11353_v42, 16  ;;  %v4597_v11 = vor.u32 %v4596_v33, %v4592_v52  ;;  %v4602_v0 = vrot.slane %v4600_v35, 5 }
 0x267   : > { %v11372_v59 = vcombine.low %v9430_v36, %v9440_v40  ;;  %v4588_v48 = vrot.slane %v4587_v43, 4  ;;  %v9444_v60 = vrot.slane %v9442_v23, 4  ;;  %v9447_v62 = vrot.slane %v9445_v34, 5 }
 0x268   : > { %v9453_v28 = vrot.slane %v9451_v54, 5  ;;  %v9455_v8 = vshrl.u32 %v11353_v42, 16  ;;  %v4598_v17 = vrot.slane %v4597_v11, 4  ;;  %v9461_v22 = vshll.u32 %v11354_v32, 16  ;;  %v14854_v11 = vld [vmem:[%s14968_s2] ss:$0 sm:$0xff] }
 0x269   : > { %12366 = vmatmul.mubr.msk.bf16.gmra.mrb[24].mxu0 %vm302_vm1, %v11372_v59  ;;  %v4593_v4 = vsel %vm13357_vm4, %v4588_v48, %v4592_v52  ;;  %v4605_v25 = vshrl.u32 %v10771_v44, 16  ;;  %v9448_v55 = vor.u32 %v9447_v62, %v9444_v60  ;;  %v4608_v14 = vshll.u32 %v10771_v44, 16 }
 0x26a   : > { %v9457_v13 = vrot.slane %v9455_v8, 4  ;;  %v4614_v63 = vshll.u32 %v10772_v53, 16  ;;  %v4603_v47 = vsel %vm13357_vm4, %v4598_v17, %v4602_v0  ;;  %v9463_v6 = vrot.slane %v9461_v22, 5 }
 0x26b   : > { %v4607_v49 = vrot.slane %v4605_v25, 4  ;;  %v4618_v1 = vshrl.u32 %v10772_v53, 16  ;;  %v10789_v26 = vcombine.low %v4593_v4, %v4603_v47  ;;  %v9449_v7 = vrot.slane %v9448_v55, 4 }
 0x26c   : > { %v9458_v39 = vor.u32 %v9457_v13, %v9453_v28  ;;  %v4610_v19 = vrot.slane %v4608_v14, 5  ;;  %v4616_v10 = vrot.slane %v4614_v63, 5  ;;  %v4624_v61 = vshll.u32 %v10773_v51, 16 }
 0x26d   : > { %v4620_v21 = vrot.slane %v4618_v1, 4  ;;  %v9466_v18 = vshrl.u32 %v11355_v45, 16  ;;  %12097 = vmatprep.mubr.msk.bf16.mxu1 %vm302_vm1, %v10789_v26  ;;  %v9454_v29 = vsel %vm13357_vm4, %v9449_v7, %v9453_v28  ;;  %v9469_v24 = vshll.u32 %v11355_v45, 16 }
 0x26e   : > { %v9459_v56 = vrot.slane %v9458_v39, 4  ;;  %v4611_v27 = vor.u32 %v4610_v19, %v4607_v49  ;;  %v4626_v9 = vrot.slane %v4624_v61, 5  ;;  %v9475_v50 = vshll.u32 %v11356_v3, 16 }
 0x26f   : > { %v4621_v30 = vor.u32 %v4620_v21, %v4616_v10  ;;  %v9468_v2 = vrot.slane %v9466_v18, 4  ;;  %v9471_v5 = vrot.slane %v9469_v24, 5  ;;  %v9479_v12 = vshrl.u32 %v11356_v3, 16 }
 0x270   : > { %v9464_v41 = vsel %vm13357_vm4, %v9459_v56, %v9463_v6  ;;  %v4612_v15 = vrot.slane %v4611_v27, 4  ;;  %v9477_v20 = vrot.slane %v9475_v50, 5  ;;  %v9485_v42 = vshll.u32 %v11357_v46, 16 }
 0x271   : > { %v11373_v57 = vcombine.low %v9454_v29, %v9464_v41  ;;  %v4622_v37 = vrot.slane %v4621_v30, 4  ;;  %v9472_v58 = vor.u32 %v9471_v5, %v9468_v2  ;;  %v9481_v31 = vrot.slane %v9479_v12, 4 }
 0x272   : > { %v4617_v38 = vsel %vm13357_vm4, %v4612_v15, %v4616_v10  ;;  %v9487_v23 = vrot.slane %v9485_v42, 5 }
 0x273   : > { %12369 = vmatprep.mubr.msk.bf16.mxu0 %vm302_vm1, %v11373_v57  ;;  %v4627_v52 = vsel %vm13357_vm4, %v4622_v37, %v4626_v9  ;;  %v9473_v33 = vrot.slane %v9472_v58, 4  ;;  %v9482_v35 = vor.u32 %v9481_v31, %v9477_v20 }
 0x274   : > { %v10790_v43 = vcombine.low %v4617_v38, %v4627_v52 }
 0x275   : > { %v9478_v36 = vsel %vm13357_vm4, %v9473_v33, %v9477_v20  ;;  %v9483_v40 = vrot.slane %v9482_v35, 4 }
 0x276   : > { %12098 = vmatmul.mubr.msk.bf16.gmra.mrb[28].mxu1 %vm302_vm1, %v10790_v43 }
 0x277   : > { %v9488_v32 = vsel %vm13357_vm4, %v9483_v40, %v9487_v23 }
 0x278   : > { %v11374_v34 = vcombine.low %v9478_v36, %v9488_v32 }
 0x27a   : > { %12370 = vmatmul.mubr.msk.bf16.gmra.mrb[28].mxu0 %vm302_vm1, %v11374_v34 }
 0x300   : > { %v12071_v54 = vpop.f32.mrb[0].mxu1 }
 0x301   : > { %v4763_v44 = vpop.f32.mrb[1].mxu1 }
 0x302   : > { %v12072_v59 = vpop.f32.mrb[2].mxu1 }
 0x303   : > { %v12343_v48 = vpop.f32.mrb[0].mxu0  ;;  %v4766_v0 = vpop.f32.mrb[3].mxu1 }
 0x304   : > { %v12373_v53 = vadd.f32 %v12343_v48, %v12071_v54  ;;  %v9624_v60 = vpop.f32.mrb[1].mxu0 }
 0x305   : > { %v12374_v62 = vadd.f32 %v9624_v60, %v4763_v44  ;;  %v12344_v28 = vpop.f32.mrb[2].mxu0 }
 0x306   : > { %v9888_v16 = vadd.f32 %v12373_v53, %v14854_v11  ;;  %v12375_v8 = vadd.f32 %v12344_v28, %v12072_v59  ;;  %v9627_v4 = vpop.f32.mrb[3].mxu0 }
 0x307   : > { %v9886_v17 = vadd.f32 %v12374_v62, %v14854_v11  ;;  %v12376_v22 = vadd.f32 %v9627_v4, %v4766_v0 }
 0x308   : > { %v9952_v51 = vmul.f32 0.2, %v9888_v16  ;;  %v9889_v25 = vadd.f32 %v12375_v8, %v14854_v11  ;;  %v12075_v55 = vpop.f32.mrb[4].mxu1  ;;  %vm9920_vm5 = vcmp.ge.f32.partialorder %v9888_v16, 0.0 }
 0x309   : > { %v9950_v13 = vmul.f32 0.2, %v9886_v17  ;;  %v9887_v14 = vadd.f32 %v12376_v22, %v14854_v11  ;;  %v4779_v63 = vpop.f32.mrb[5].mxu1  ;;  %vm9918_vm6 = vcmp.ge.f32.partialorder %v9886_v17, 0.0 }
 0x30a   : > { %vm9921_vm7 = vcmp.ge.f32.partialorder %v9889_v25, 0.0  ;;  %v9953_v45 = vmul.f32 0.2, %v9889_v25  ;;  %v12076_v47 = vpop.f32.mrb[6].mxu1  ;;  %v9984_v26 = vsel %vm9920_vm5, %v9888_v16, %v9952_v51 }
 0x30b   : > { %vm9919_vm8 = vcmp.ge.f32.partialorder %v9887_v14, 0.0  ;;  %v9951_v6 = vmul.f32 0.2, %v9887_v14  ;;  %v12347_v49 = vpop.f32.mrb[4].mxu0  ;;  %v4782_v1 = vpop.f32.mrb[7].mxu1  ;;  %v9982_v3 = vsel %vm9918_vm6, %v9886_v17, %v9950_v13 }
 0x30c   : > { %v9985_v7 = vsel %vm9921_vm7, %v9889_v25, %v9953_v45  ;;  %v12377_v39 = vadd.f32 %v12347_v49, %v12075_v55  ;;  %v9640_v19 = vpop.f32.mrb[5].mxu0 }
 0x30d   : > { %v11470_v10 = vpack.c.bf16 %v9985_v7, %v9984_v26  ;;  %v9983_v21 = vsel %vm9919_vm8, %v9887_v14, %v9951_v6  ;;  %v12378_v61 = vadd.f32 %v9640_v19, %v4779_v63  ;;  %v12348_v18 = vpop.f32.mrb[6].mxu0 }
 0x30e   : > { %v11465_v29 = vpack.c.bf16 %v9983_v21, %v9982_v3  ;;  %v9892_v56 = vadd.f32 %v12377_v39, %v14854_v11  ;;  %v12379_v27 = vadd.f32 %v12348_v18, %v12076_v47  ;;  %v9643_v46 = vpop.f32.mrb[7].mxu0 }
 0x30f   : > { %11542 = vst [vmem:[%s14864_s10 + $0x8] sm:$0xff] %v11470_v10   ;;  %v9890_v24 = vadd.f32 %v12378_v61, %v14854_v11  ;;  %v12380_v30 = vadd.f32 %v9643_v46, %v4782_v1 }
 0x310   : > { %11466 = vst [vmem:[%s14864_s10] sm:$0xff] %v11465_v29   ;;  %v9956_v9 = vmul.f32 0.2, %v9892_v56  ;;  %v9893_v2 = vadd.f32 %v12379_v27, %v14854_v11  ;;  %v12079_v50 = vpop.f32.mrb[8].mxu1  ;;  %vm9924_vm9 = vcmp.ge.f32.partialorder %v9892_v56, 0.0 }
 0x311   : > { %v9954_v41 = vmul.f32 0.2, %v9890_v24  ;;  %v9891_v15 = vadd.f32 %v12380_v30, %v14854_v11  ;;  %v4795_v5 = vpop.f32.mrb[9].mxu1  ;;  %vm9922_vm10 = vcmp.ge.f32.partialorder %v9890_v24, 0.0 }
 0x312   : > { %vm9925_vm11 = vcmp.ge.f32.partialorder %v9893_v2, 0.0  ;;  %v9957_v12 = vmul.f32 0.2, %v9893_v2  ;;  %v12080_v57 = vpop.f32.mrb[10].mxu1  ;;  %v9988_v38 = vsel %vm9924_vm9, %v9892_v56, %v9956_v9 }
 0x313   : > { %vm9923_vm12 = vcmp.ge.f32.partialorder %v9891_v15, 0.0  ;;  %v9955_v37 = vmul.f32 0.2, %v9891_v15  ;;  %v12351_v20 = vpop.f32.mrb[8].mxu0  ;;  %v4798_v42 = vpop.f32.mrb[11].mxu1  ;;  %v9986_v43 = vsel %vm9922_vm10, %v9890_v24, %v9954_v41 }
 0x314   : > { %v9989_v58 = vsel %vm9925_vm11, %v9893_v2, %v9957_v12  ;;  %v12381_v31 = vadd.f32 %v12351_v20, %v12079_v50  ;;  %v9656_v52 = vpop.f32.mrb[9].mxu0 }
 0x315   : > { %v11480_v33 = vpack.c.bf16 %v9989_v58, %v9988_v38  ;;  %v9987_v35 = vsel %vm9923_vm12, %v9891_v15, %v9955_v37  ;;  %v12382_v23 = vadd.f32 %v9656_v52, %v4795_v5  ;;  %v12352_v36 = vpop.f32.mrb[10].mxu0 }
 0x316   : > { %v11475_v40 = vpack.c.bf16 %v9987_v35, %v9986_v43  ;;  %v9896_v32 = vadd.f32 %v12381_v31, %v14854_v11  ;;  %v12383_v34 = vadd.f32 %v12352_v36, %v12080_v57  ;;  %v9659_v54 = vpop.f32.mrb[11].mxu0 }
 0x317   : > { %11544 = vst [vmem:[%s14864_s10 + $0x18] sm:$0xff] %v11480_v33   ;;  %v9894_v44 = vadd.f32 %v12382_v23, %v14854_v11  ;;  %v12384_v59 = vadd.f32 %v9659_v54, %v4798_v42 }
 0x318   : > { %11543 = vst [vmem:[%s14864_s10 + $0x10] sm:$0xff] %v11475_v40   ;;  %v9960_v48 = vmul.f32 0.2, %v9896_v32  ;;  %v9897_v0 = vadd.f32 %v12383_v34, %v14854_v11  ;;  %v12083_v53 = vpop.f32.mrb[12].mxu1  ;;  %vm9928_vm13 = vcmp.ge.f32.partialorder %v9896_v32, 0.0 }
 0x319   : > { %v9958_v60 = vmul.f32 0.2, %v9894_v44  ;;  %v9895_v62 = vadd.f32 %v12384_v59, %v14854_v11  ;;  %v4811_v28 = vpop.f32.mrb[13].mxu1  ;;  %vm9926_vm14 = vcmp.ge.f32.partialorder %v9894_v44, 0.0 }
 0x31a   : > { %vm9929_vm15 = vcmp.ge.f32.partialorder %v9897_v0, 0.0  ;;  %v9961_v16 = vmul.f32 0.2, %v9897_v0  ;;  %v12084_v8 = vpop.f32.mrb[14].mxu1  ;;  %v9992_v51 = vsel %vm9928_vm13, %v9896_v32, %v9960_v48 }
 0x31b   : > { %vm9927_vm0 = vcmp.ge.f32.partialorder %v9895_v62, 0.0  ;;  %v9959_v4 = vmul.f32 0.2, %v9895_v62  ;;  %v12355_v17 = vpop.f32.mrb[12].mxu0  ;;  %v4814_v22 = vpop.f32.mrb[15].mxu1  ;;  %v9990_v14 = vsel %vm9926_vm14, %v9894_v44, %v9958_v60 }
 0x31c   : > { %v9993_v25 = vsel %vm9929_vm15, %v9897_v0, %v9961_v16  ;;  %v12385_v55 = vadd.f32 %v12355_v17, %v12083_v53  ;;  %v9672_v13 = vpop.f32.mrb[13].mxu0 }
 0x31d   : > { %v11490_v63 = vpack.c.bf16 %v9993_v25, %v9992_v51  ;;  %v9991_v45 = vsel %vm9927_vm0, %v9895_v62, %v9959_v4  ;;  %v12386_v47 = vadd.f32 %v9672_v13, %v4811_v28  ;;  %v12356_v6 = vpop.f32.mrb[14].mxu0 }
 0x31e   : > { %v11485_v49 = vpack.c.bf16 %v9991_v45, %v9990_v14  ;;  %v9900_v1 = vadd.f32 %v12385_v55, %v14854_v11  ;;  %v12387_v26 = vadd.f32 %v12356_v6, %v12084_v8  ;;  %v9675_v7 = vpop.f32.mrb[15].mxu0 }
 0x31f   : > { %11546 = vst [vmem:[%s14864_s10 + $0x28] sm:$0xff] %v11490_v63   ;;  %v9898_v39 = vadd.f32 %v12386_v47, %v14854_v11  ;;  %v12388_v19 = vadd.f32 %v9675_v7, %v4814_v22 }
 0x320   : > { %11545 = vst [vmem:[%s14864_s10 + $0x20] sm:$0xff] %v11485_v49   ;;  %v9964_v3 = vmul.f32 0.2, %v9900_v1  ;;  %v9901_v10 = vadd.f32 %v12387_v26, %v14854_v11  ;;  %v12087_v21 = vpop.f32.mrb[16].mxu1  ;;  %vm9932_vm1 = vcmp.ge.f32.partialorder %v9900_v1, 0.0 }
 0x321   : > { %v9962_v61 = vmul.f32 0.2, %v9898_v39  ;;  %v9899_v18 = vadd.f32 %v12388_v19, %v14854_v11  ;;  %v4827_v29 = vpop.f32.mrb[17].mxu1  ;;  %vm9930_vm2 = vcmp.ge.f32.partialorder %v9898_v39, 0.0 }
 0x322   : > { %vm9933_vm3 = vcmp.ge.f32.partialorder %v9901_v10, 0.0  ;;  %v9965_v56 = vmul.f32 0.2, %v9901_v10  ;;  %v12088_v27 = vpop.f32.mrb[18].mxu1  ;;  %v9996_v9 = vsel %vm9932_vm1, %v9900_v1, %v9964_v3 }
 0x323   : > { %vm9931_vm4 = vcmp.ge.f32.partialorder %v9899_v18, 0.0  ;;  %v9963_v46 = vmul.f32 0.2, %v9899_v18  ;;  %v12359_v24 = vpop.f32.mrb[16].mxu0  ;;  %v4830_v30 = vpop.f32.mrb[19].mxu1  ;;  %v9994_v15 = vsel %vm9930_vm2, %v9898_v39, %v9962_v61 }
 0x324   : > { %v9997_v2 = vsel %vm9933_vm3, %v9901_v10, %v9965_v56  ;;  %v12389_v50 = vadd.f32 %v12359_v24, %v12087_v21  ;;  %v9688_v41 = vpop.f32.mrb[17].mxu0 }
 0x325   : > { %v11500_v5 = vpack.c.bf16 %v9997_v2, %v9996_v9  ;;  %v9995_v12 = vsel %vm9931_vm4, %v9899_v18, %v9963_v46  ;;  %v12390_v57 = vadd.f32 %v9688_v41, %v4827_v29  ;;  %v12360_v37 = vpop.f32.mrb[18].mxu0 }
 0x326   : > { %v11495_v20 = vpack.c.bf16 %v9995_v12, %v9994_v15  ;;  %v9904_v42 = vadd.f32 %v12389_v50, %v14854_v11  ;;  %v12391_v38 = vadd.f32 %v12360_v37, %v12088_v27  ;;  %v9691_v58 = vpop.f32.mrb[19].mxu0 }
 0x327   : > { %11548 = vst [vmem:[%s14864_s10 + $0x38] sm:$0xff] %v11500_v5   ;;  %v9902_v31 = vadd.f32 %v12390_v57, %v14854_v11  ;;  %v12392_v52 = vadd.f32 %v9691_v58, %v4830_v30 }
 0x328   : > { %11547 = vst [vmem:[%s14864_s10 + $0x30] sm:$0xff] %v11495_v20   ;;  %v9968_v43 = vmul.f32 0.2, %v9904_v42  ;;  %v9905_v33 = vadd.f32 %v12391_v38, %v14854_v11  ;;  %v12091_v35 = vpop.f32.mrb[20].mxu1  ;;  %vm9936_vm5 = vcmp.ge.f32.partialorder %v9904_v42, 0.0 }
 0x329   : > { %v9966_v23 = vmul.f32 0.2, %v9902_v31  ;;  %v9903_v36 = vadd.f32 %v12392_v52, %v14854_v11  ;;  %v4843_v40 = vpop.f32.mrb[21].mxu1  ;;  %vm9934_vm6 = vcmp.ge.f32.partialorder %v9902_v31, 0.0 }
 0x32a   : > { %vm9937_vm7 = vcmp.ge.f32.partialorder %v9905_v33, 0.0  ;;  %v9969_v32 = vmul.f32 0.2, %v9905_v33  ;;  %v12092_v34 = vpop.f32.mrb[22].mxu1  ;;  %v10000_v59 = vsel %vm9936_vm5, %v9904_v42, %v9968_v43 }
 0x32b   : > { %vm9935_vm8 = vcmp.ge.f32.partialorder %v9903_v36, 0.0  ;;  %v9967_v54 = vmul.f32 0.2, %v9903_v36  ;;  %v4846_v44 = vpop.f32.mrb[23].mxu1  ;;  %v9998_v0 = vsel %vm9934_vm6, %v9902_v31, %v9966_v23  ;;  %v12363_v62 = vpop.f32.mrb[20].mxu0 }
 0x32c   : > { %v10001_v48 = vsel %vm9937_vm7, %v9905_v33, %v9969_v32  ;;  %v12393_v16 = vadd.f32 %v12363_v62, %v12091_v35  ;;  %v9704_v8 = vpop.f32.mrb[21].mxu0 }
 0x32d   : > { %v11510_v53 = vpack.c.bf16 %v10001_v48, %v10000_v59  ;;  %v9999_v60 = vsel %vm9935_vm8, %v9903_v36, %v9967_v54  ;;  %v12394_v4 = vadd.f32 %v9704_v8, %v4843_v40  ;;  %v12364_v17 = vpop.f32.mrb[22].mxu0 }
 0x32e   : > { %v11505_v28 = vpack.c.bf16 %v9999_v60, %v9998_v0  ;;  %v9908_v22 = vadd.f32 %v12393_v16, %v14854_v11  ;;  %v12395_v51 = vadd.f32 %v12364_v17, %v12092_v34  ;;  %v9707_v25 = vpop.f32.mrb[23].mxu0 }
 0x32f   : > { %11550 = vst [vmem:[%s14864_s10 + $0x48] sm:$0xff] %v11510_v53   ;;  %v9906_v55 = vadd.f32 %v12394_v4, %v14854_v11  ;;  %v12396_v13 = vadd.f32 %v9707_v25, %v4846_v44 }
 0x330   : > { %11549 = vst [vmem:[%s14864_s10 + $0x40] sm:$0xff] %v11505_v28   ;;  %v9972_v14 = vmul.f32 0.2, %v9908_v22  ;;  %v9909_v63 = vadd.f32 %v12395_v51, %v14854_v11  ;;  %vm9940_vm9 = vcmp.ge.f32.partialorder %v9908_v22, 0.0 }
 0x331   : > { %v9970_v45 = vmul.f32 0.2, %v9906_v55  ;;  %v9907_v47 = vadd.f32 %v12396_v13, %v14854_v11  ;;  %vm9938_vm10 = vcmp.ge.f32.partialorder %v9906_v55, 0.0 }
 0x332   : > { %vm9941_vm11 = vcmp.ge.f32.partialorder %v9909_v63, 0.0  ;;  %v9973_v6 = vmul.f32 0.2, %v9909_v63  ;;  %v10004_v1 = vsel %vm9940_vm9, %v9908_v22, %v9972_v14 }
 0x333   : > { %vm9939_vm12 = vcmp.ge.f32.partialorder %v9907_v47, 0.0  ;;  %v9971_v49 = vmul.f32 0.2, %v9907_v47  ;;  %v10002_v7 = vsel %vm9938_vm10, %v9906_v55, %v9970_v45 }
 0x334   : > { %v10005_v26 = vsel %vm9941_vm11, %v9909_v63, %v9973_v6 }
 0x335   : > { %v11520_v39 = vpack.c.bf16 %v10005_v26, %v10004_v1  ;;  %v10003_v19 = vsel %vm9939_vm12, %v9907_v47, %v9971_v49 }
 0x336   : > { %v11515_v3 = vpack.c.bf16 %v10003_v19, %v10002_v7 }
 0x337   : > { %11552 = vst [vmem:[%s14864_s10 + $0x58] sm:$0xff] %v11520_v39  }
 0x338   : > { %11551 = vst [vmem:[%s14864_s10 + $0x50] sm:$0xff] %v11515_v3  }
 0x339   : > { %v12095_v10 = vpop.f32.mrb[24].mxu1 }
 0x33a   : > { %v4859_v21 = vpop.f32.mrb[25].mxu1 }
 0x33b   : > { %v12096_v61 = vpop.f32.mrb[26].mxu1 }
 0x33c   : > { %v12367_v18 = vpop.f32.mrb[24].mxu0  ;;  %v4862_v29 = vpop.f32.mrb[27].mxu1 }
 0x33d   : > { %v12397_v56 = vadd.f32 %v12367_v18, %v12095_v10  ;;  %v9720_v27 = vpop.f32.mrb[25].mxu0 }
 0x33e   : > { %v12398_v46 = vadd.f32 %v9720_v27, %v4859_v21  ;;  %v12368_v24 = vpop.f32.mrb[26].mxu0 }
 0x33f   : > { %v9912_v30 = vadd.f32 %v12397_v56, %v14854_v11  ;;  %v12399_v9 = vadd.f32 %v12368_v24, %v12096_v61  ;;  %v9723_v2 = vpop.f32.mrb[27].mxu0 }
 0x340   : > { %v9910_v50 = vadd.f32 %v12398_v46, %v14854_v11  ;;  %v12400_v41 = vadd.f32 %v9723_v2, %v4862_v29 }
 0x341   : > { %v9976_v15 = vmul.f32 0.2, %v9912_v30  ;;  %v9913_v5 = vadd.f32 %v12399_v9, %v14854_v11  ;;  %vm9944_vm13 = vcmp.ge.f32.partialorder %v9912_v30, 0.0 }
 0x342   : > { %v9974_v12 = vmul.f32 0.2, %v9910_v50  ;;  %v9911_v57 = vadd.f32 %v12400_v41, %v14854_v11  ;;  %vm9942_vm14 = vcmp.ge.f32.partialorder %v9910_v50, 0.0 }
 0x343   : > { %vm9945_vm15 = vcmp.ge.f32.partialorder %v9913_v5, 0.0  ;;  %v9977_v37 = vmul.f32 0.2, %v9913_v5  ;;  %v10008_v42 = vsel %vm9944_vm13, %v9912_v30, %v9976_v15 }
 0x344   : > { %vm9943_vm0 = vcmp.ge.f32.partialorder %v9911_v57, 0.0  ;;  %v9975_v20 = vmul.f32 0.2, %v9911_v57  ;;  %v10006_v58 = vsel %vm9942_vm14, %v9910_v50, %v9974_v12 }
 0x345   : > { %v10009_v38 = vsel %vm9945_vm15, %v9913_v5, %v9977_v37 }
 0x346   : > { %v11530_v31 = vpack.c.bf16 %v10009_v38, %v10008_v42  ;;  %v10007_v52 = vsel %vm9943_vm0, %v9911_v57, %v9975_v20 }
 0x347   : > { %v11525_v43 = vpack.c.bf16 %v10007_v52, %v10006_v58 }
 0x348   : > { %11554 = vst [vmem:[%s14864_s10 + $0x68] sm:$0xff] %v11530_v31  }
 0x349   : > { %11553 = vst [vmem:[%s14864_s10 + $0x60] sm:$0xff] %v11525_v43   ;;  %v12099_v33 = vpop.f32.mrb[28].mxu1 }
 0x34a   : > { %v4875_v35 = vpop.f32.mrb[29].mxu1 }
 0x34b   : > { %v12100_v23 = vpop.f32.mrb[30].mxu1 }
 0x34c   : > { %v4878_v36 = vpop.f32.mrb[31].mxu1 }
 0x34d   : > { %v12371_v40 = vpop.f32.mrb[28].mxu0 }
 0x34e   : > { %v12401_v32 = vadd.f32 %v12371_v40, %v12099_v33  ;;  %v9736_v34 = vpop.f32.mrb[29].mxu0 }
 0x34f   : > { %v12402_v54 = vadd.f32 %v9736_v34, %v4875_v35  ;;  %v12372_v44 = vpop.f32.mrb[30].mxu0 }
 0x350   : > { %v9916_v59 = vadd.f32 %v12401_v32, %v14854_v11  ;;  %v12403_v48 = vadd.f32 %v12372_v44, %v12100_v23  ;;  %v9739_v0 = vpop.f32.mrb[31].mxu0 }
 0x351   : > { %v9914_v53 = vadd.f32 %v12402_v54, %v14854_v11  ;;  %v12404_v60 = vadd.f32 %v9739_v0, %v4878_v36 }
 0x352   : > { %v9980_v62 = vmul.f32 0.2, %v9916_v59  ;;  %v9917_v28 = vadd.f32 %v12403_v48, %v14854_v11  ;;  %vm9948_vm1 = vcmp.ge.f32.partialorder %v9916_v59, 0.0 }
 0x353   : > { %v9978_v16 = vmul.f32 0.2, %v9914_v53  ;;  %v9915_v8 = vadd.f32 %v12404_v60, %v14854_v11  ;;  %vm9946_vm2 = vcmp.ge.f32.partialorder %v9914_v53, 0.0 }
 0x354   : > { %vm9949_vm3 = vcmp.ge.f32.partialorder %v9917_v28, 0.0  ;;  %v9981_v4 = vmul.f32 0.2, %v9917_v28  ;;  %v10012_v22 = vsel %vm9948_vm1, %v9916_v59, %v9980_v62 }
 0x355   : > { %vm9947_vm4 = vcmp.ge.f32.partialorder %v9915_v8, 0.0  ;;  %v9979_v17 = vmul.f32 0.2, %v9915_v8  ;;  %v10010_v25 = vsel %vm9946_vm2, %v9914_v53, %v9978_v16 }
 0x356   : > { %v10013_v51 = vsel %vm9949_vm3, %v9917_v28, %v9981_v4 }
 0x357   : > { %v11540_v55 = vpack.c.bf16 %v10013_v51, %v10012_v22  ;;  %v10011_v13 = vsel %vm9947_vm4, %v9915_v8, %v9979_v17 }
 0x358   : > { %v11535_v11 = vpack.c.bf16 %v10011_v13, %v10010_v25 }
 0x359   : > { %11556 = vst [vmem:[%s14864_s10 + $0x78] sm:$0xff] %v11540_v55  }
 0x35a   : > { %11555 = vst [vmem:[%s14864_s10 + $0x70] sm:$0xff] %v11535_v11  }
 0x35b   : > { %13070 = shalt.err (!%p13067_p5)
}
 0x35c   : > { %s13071_s4 = scalar_lea.hbm %s14912_s26, 2048  ;;  %s13075_s11 = scalar_lea.hbm %s14969_s3, 4096 }
 0x35d   : > { %p13072_p6 = scmp.ne.s32.totalorder %s14912_s26, %s13071_s4  ;;  %p13076_p10 = scmp.lt.u32.totalorder %s14912_s26, %s14969_s3 }
 0x35e   : > { %p13077_p11 = scmp.lt.u32.totalorder %s13075_s11, %s13071_s4  ;;  %p13079_p13 = scmp.lt.u32.totalorder %s13071_s4, %s14912_s26 }
 0x35f   : > { %p13073_p7 = pnand %p13072_p6, %p13200_p4 }
 0x360   : > { %p13078_p12 = por %p13077_p11, %p13076_p10 }
 0x361   : > { %p13074_p9 = pneg %p13073_p7 }
 0x362   : > { %p13080_p0 = por %p13079_p13, %p13078_p12 }
 0x364   : > { %p13081_p1 = pnand %p13080_p0, %p13074_p9 }
 0x366   : > { %13084 = shalt.err (!%p13081_p1)
}
 0x367   : > { %s13138_s9 = smov 64   ;;  %s13139_s10 = smov 4  }
 0x368   : > { %12870 = dma.vmem_to_hbm [thread:$0]  (%p13200_p4), %s14914_s19, 2048, %s14912_s26, %s14920_s15, %s13138_s9, %s13138_s9, %s13139_s10  }
 0x369 PF: > { %p12876_p2 = scmp.ge.s32.totalorder %s13135_s17, 2  ;;  %s10206_s18 = sand.u32 1, %s13115_s12  }
 0x36a   : > { %s10207_s21 = scalar_lea.sflag [#allocation4], %s10206_s18 }
 0x36b   : > { %p12873_p3 = pnand %p12876_p2, %p13207_p8 }
 0x36d   : > { %13110 = dma.done.wait (!%p12873_p3), %s10207_s21, 2048  }
 0x36e   : > { %13112 = vsyncadd (!%p12873_p3), %s10207_s21, 4294965248  ;;  %s16_s17 = sadd.s32 1, %s13135_s17   ;;  %s14974_s12 = smov %s13119_s13 }
 0x36f   : > { %p13_p5 = scmp.ge.s32.totalorder %s16_s17, 4   ;;  %s14975_s13 = smov %s13123_s14 }
 0x370   : > { %s14976_s14 = smov %s13213_s25  ;;  %s14977_s15 = smov %s13131_s16 }
 0x371   : > { %s14978_s16 = smov %s14980_s20  ;;  %15 = sbr.rel (!%p13_p5) target bundleno = 4 (0x4), region = 90 }
 0x378   :  { %10212 = vsyncpa [#allocation4], 1 }
 0x379   :  { %10214 = vsyncpa [#allocation4 + $0x1], 1 }

</bundles_post_ra>
